<compile_context>
chip_gen: v6e
topology: v6e:2x2x1
jax: 0.10.0
libtpu: 0.0.40
codegen_flags: <defaults>
</compile_context>

<pallas_src>
import functools

import jax
import jax.numpy as jnp
from jax import lax
from jax.experimental import pallas as pl
from jax.experimental.pallas import tpu as pltpu


def _dcblock_kernel(x_ref, u_ref, w_ref, m_ref, g_ref, b_ref, o_ref,
                    patches_ref, conv_ref, *, n_img, cin_p, H, W, KH, KW, eps):
    """Fused DCBlock forward for the whole batch in a single grid step.

    x_ref:   (n_img*cin_p, H0*W0)   original-resolution input, rows n-major
    u_ref:   (H0*W0, H*W)           0/1 nearest-upsample operator (VMEM-resident)
    w_ref:   (Cout, KH*KW*cin_p)    conv weight, columns ordered (kh, kw, cin)
    m_ref:   (KH*KW, H*W)           precomputed 0/1 border masks (zero padding)
    g_ref, b_ref: (Cout, 1)         BN gamma / beta
    o_ref:   (n_img, Cout, H*W)     output (NCHW-flat, lane-dense)
    patches_ref: (n_img, KH*KW*cin_p, H*W)  im2col VMEM scratch
    conv_ref:    (n_img, Cout, H*W)         f32 conv VMEM scratch (BN needs all)
    """
    HW = H * W
    cout = o_ref.shape[1]

    # 1) Nearest-neighbour upsample of every (image, channel) row with one MXU
    #    dot (keeps the HBM read at the pre-upsample size).
    up = jnp.dot(x_ref[...], u_ref[...],
                 preferred_element_type=jnp.float32)          # (n_img*cin_p, HW)

    # 2) im2col: each conv tap is a circular lane roll of `up`; the precomputed
    #    border mask implements the zero padding (and kills the wrapped lanes).
    #    Taps go straight into the patches scratch (no concatenate).
    masks = m_ref[...]                                        # (KH*KW, HW)
    for kh in range(KH):
        dr = kh - (KH - 1) // 2
        for kw in range(KW):
            dc = kw - (KW - 1) // 2
            t = kh * KW + kw
            off = dr * W + dc
            shifted = up if off == 0 else pltpu.roll(up, (-off) % HW, 1)
            masked = shifted * masks[t:t + 1, :]
            for n in range(n_img):
                patches_ref[n, t * cin_p:(t + 1) * cin_p, :] = (
                    masked[n * cin_p:(n + 1) * cin_p, :])

    # 3) One (Cout, KH*KW*cin_p) @ (KH*KW*cin_p, HW) MXU dot per image plus the
    #    BN sum accumulation.  Conv stays resident in VMEM scratch.
    w = w_ref[...]
    total = jnp.zeros((cout, 1), jnp.float32)
    for n in range(n_img):
        conv_n = jnp.dot(w, patches_ref[n],
                         preferred_element_type=jnp.float32)  # (Cout, HW)
        conv_ref[n] = conv_n
        total = total + jnp.sum(conv_n, axis=1, keepdims=True)

    # 4) BN epilogue (training-mode batch statistics, numerically two-pass) +
    #    ReLU, straight from the VMEM-resident conv values.
    inv_count = 1.0 / float(n_img * HW)
    mean = total * inv_count                                  # (Cout, 1)
    var = jnp.zeros((cout, 1), jnp.float32)
    for n in range(n_img):
        d = conv_ref[n] - mean
        var = var + jnp.sum(d * d, axis=1, keepdims=True)
    var = var * inv_count
    scale = g_ref[...] * lax.rsqrt(var + eps)                 # (Cout, 1)
    shift = b_ref[...] - mean * scale
    for n in range(n_img):
        y = conv_ref[n] * scale + shift
        o_ref[n] = jnp.maximum(y, 0.0).astype(o_ref.dtype)


def dcblock_forward(x_nchw, weight_oihw, gamma, beta, *, stride=2, eps=1e-5):
    """Pallas implementation of DCBlock.forward.  Input/output are NCHW."""
    N, Cin, H0, W0 = x_nchw.shape
    Cout, Cin_w, KH, KW = weight_oihw.shape
    assert Cin == Cin_w
    # padding=(k-1)//2 (PyTorch) only equals 'SAME' for odd kernel sizes.
    assert KH % 2 == 1 and KW % 2 == 1
    H, W = H0 * stride, W0 * stride
    HW, H0W0 = H * W, H0 * W0

    # Pad channels to the f32 sublane tile (8); padded channels get zero weight.
    cin_p = ((Cin + 7) // 8) * 8
    x_flat = x_nchw.reshape(N, Cin, H0W0).astype(jnp.float32)
    x_flat = jnp.pad(x_flat, ((0, 0), (0, cin_p - Cin), (0, 0)))
    x_stack = x_flat.reshape(N * cin_p, H0W0)                 # rows n-major

    # 0/1 nearest-upsample operator: U[p, q] = 1 iff upsampled pixel q copies
    # source pixel p.  Built once host-side, kept resident in VMEM.
    q = jnp.arange(HW, dtype=jnp.int32)
    p = jnp.arange(H0W0, dtype=jnp.int32)
    u = (((q // W) // stride == (p[:, None] // W0)) &
         ((q % W) // stride == (p[:, None] % W0))).astype(jnp.float32)

    # Conv weight OIHW -> (Cout, KH*KW*cin_p), column order (kh, kw, cin)
    # matching the tap-stacked im2col rows written in the kernel.
    w_pad = jnp.zeros((Cout, cin_p, KH, KW), jnp.float32)
    w_pad = w_pad.at[:, :Cin].set(weight_oihw.astype(jnp.float32))
    wmat = jnp.transpose(w_pad, (0, 2, 3, 1)).reshape(Cout, KH * KW * cin_p)

    # Precomputed 0/1 border masks per conv tap (implement the zero padding).
    row = q // W
    col = q % W
    mask_rows = []
    for kh in range(KH):
        dr = kh - (KH - 1) // 2
        for kw in range(KW):
            dc = kw - (KW - 1) // 2
            valid = ((row + dr >= 0) & (row + dr < H) &
                     (col + dc >= 0) & (col + dc < W))
            mask_rows.append(valid.astype(jnp.float32))
    masks = jnp.stack(mask_rows, axis=0)                      # (KH*KW, HW)

    g = gamma.reshape(Cout, 1).astype(jnp.float32)
    b = beta.reshape(Cout, 1).astype(jnp.float32)

    kernel = functools.partial(_dcblock_kernel, n_img=N, cin_p=cin_p,
                               H=H, W=W, KH=KH, KW=KW, eps=float(eps))

    out_flat = pl.pallas_call(
        kernel,
        grid=(1,),                      # whole batch fused into one step
        in_specs=[
            pl.BlockSpec((N * cin_p, H0W0), lambda i: (0, 0)),
            pl.BlockSpec((H0W0, HW), lambda i: (0, 0)),
            pl.BlockSpec((Cout, KH * KW * cin_p), lambda i: (0, 0)),
            pl.BlockSpec((KH * KW, HW), lambda i: (0, 0)),
            pl.BlockSpec((Cout, 1), lambda i: (0, 0)),
            pl.BlockSpec((Cout, 1), lambda i: (0, 0)),
        ],
        out_specs=pl.BlockSpec((N, Cout, HW), lambda i: (0, 0, 0)),
        out_shape=jax.ShapeDtypeStruct((N, Cout, HW), x_nchw.dtype),
        scratch_shapes=[
            pltpu.VMEM((N, KH * KW * cin_p, HW), jnp.float32),   # im2col patches
            pltpu.VMEM((N, Cout, HW), jnp.float32),              # conv activations
        ],
        compiler_params=pltpu.CompilerParams(
            dimension_semantics=("arbitrary",),
            vmem_limit_bytes=32 * 1024 * 1024,
        ),
    )(x_stack, u, wmat, masks, g, b)

    # (N, Cout, H*W) is already NCHW-flat: the final reshape is free.
    return out_flat.reshape(N, Cout, H, W)


def dcblock_reference(x_nchw, weight_oihw, gamma, beta, *, stride=2, eps=1e-5):
    """Pure-JAX reference matching the PyTorch forward (training-mode BN)."""
    x = jnp.repeat(jnp.repeat(x_nchw, stride, axis=2), stride, axis=3)
    conv = lax.conv_general_dilated(
        x, weight_oihw, window_strides=(1, 1), padding="SAME",
        dimension_numbers=("NCHW", "OIHW", "NCHW"),
    )
    mean = jnp.mean(conv, axis=(0, 2, 3), keepdims=True)
    var = jnp.mean((conv - mean) ** 2, axis=(0, 2, 3), keepdims=True)
    y = (gamma.reshape(1, -1, 1, 1) * (conv - mean) * lax.rsqrt(var + eps)
         + beta.reshape(1, -1, 1, 1))
    return jnp.maximum(y, 0.0)


if __name__ == "__main__":
    key = jax.random.PRNGKey(0)
    k_x, k_w, k_g, k_b = jax.random.split(key, 4)

    # DCBlock(in_channels=4, out_channels=8, kernel_size=3, stride=2)
    N, Cin, H0, W0 = 2, 4, 16, 16
    Cout, K, STRIDE = 8, 3, 2

    x = jax.random.normal(k_x, (N, Cin, H0, W0), dtype=jnp.float32)
    weight = jax.random.normal(k_w, (Cout, Cin, K, K), dtype=jnp.float32) * 0.1
    gamma = 1.0 + 0.1 * jax.random.normal(k_g, (Cout,), dtype=jnp.float32)
    beta = 0.1 * jax.random.normal(k_b, (Cout,), dtype=jnp.float32)

    out = dcblock_forward(x, weight, gamma, beta, stride=STRIDE)
    out = jax.block_until_ready(out)

    ref = dcblock_reference(x, weight, gamma, beta, stride=STRIDE)
    assert out.shape == (N, Cout, H0 * STRIDE, W0 * STRIDE), out.shape
    assert jnp.allclose(out, ref, rtol=2e-3, atol=2e-3), float(
        jnp.max(jnp.abs(out - ref))
    )

    print("KERNEL_OK")
</pallas_src>

<mosaic_0001>
module attributes {stable_mosaic.version = 11 : i64} {
  func.func @_dcblock_kernel(%arg0: i32, %arg1: memref<16x256xf32, #tpu.memory_space<vmem>>, %arg2: memref<256x1024xf32, #tpu.memory_space<vmem>>, %arg3: memref<8x72xf32, #tpu.memory_space<vmem>>, %arg4: memref<9x1024xf32, #tpu.memory_space<vmem>>, %arg5: memref<8x1xf32, #tpu.memory_space<vmem>>, %arg6: memref<8x1xf32, #tpu.memory_space<vmem>>, %arg7: memref<2x8x1024xf32, #tpu.memory_space<vmem>>, %arg8: memref<2x72x1024xf32, #tpu.memory_space<vmem>>, %arg9: memref<2x8x1024xf32, #tpu.memory_space<vmem>>) attributes {dimension_semantics = [#tpu.dimension_semantics<arbitrary>], iteration_bounds = array<i64: 1>, scalar_prefetch = 0 : i64, scratch_operands = 2 : i64, tpu.core_type = #tpu.core_type<tc>, window_params = [{pipeline_mode = #tpu.pipeline_mode<synchronous>, transform_indices = @transform_0, window_bounds = array<i64: 16, 256>}, {pipeline_mode = #tpu.pipeline_mode<synchronous>, transform_indices = @transform_1, window_bounds = array<i64: 256, 1024>}, {pipeline_mode = #tpu.pipeline_mode<synchronous>, transform_indices = @transform_2, window_bounds = array<i64: 8, 72>}, {pipeline_mode = #tpu.pipeline_mode<synchronous>, transform_indices = @transform_3, window_bounds = array<i64: 9, 1024>}, {pipeline_mode = #tpu.pipeline_mode<synchronous>, transform_indices = @transform_4, window_bounds = array<i64: 8, 1>}, {pipeline_mode = #tpu.pipeline_mode<synchronous>, transform_indices = @transform_5, window_bounds = array<i64: 8, 1>}, {pipeline_mode = #tpu.pipeline_mode<synchronous>, transform_indices = @transform_6, window_bounds = array<i64: 2, 8, 1024>}]} {
    %c0 = arith.constant 0 : index
    %c0_0 = arith.constant 0 : index
    %0 = vector.load %arg1[%c0, %c0_0] : memref<16x256xf32, #tpu.memory_space<vmem>>, vector<16x256xf32>
    %c0_1 = arith.constant 0 : index
    %c0_2 = arith.constant 0 : index
    %1 = vector.load %arg2[%c0_1, %c0_2] : memref<256x1024xf32, #tpu.memory_space<vmem>>, vector<256x1024xf32>
    %cst = arith.constant dense<0.000000e+00> : vector<16x1024xf32>
    %2 = tpu.matmul %0, %1, %cst {dimension_numbers = #tpu.dot_dimension_numbers<[1], [0], [0], [1], [0, 0, 1, 1], [], []>} : vector<16x256xf32>, vector<256x1024xf32>, vector<16x1024xf32> -> vector<16x1024xf32>
    %c0_3 = arith.constant 0 : index
    %c0_4 = arith.constant 0 : index
    %3 = vector.load %arg4[%c0_3, %c0_4] : memref<9x1024xf32, #tpu.memory_space<vmem>>, vector<9x1024xf32>
    %c33_i32 = arith.constant 33 : i32
    %4 = tpu.dynamic_rotate %2 by %c33_i32 dim 1 : vector<16x1024xf32>, i32 -> vector<16x1024xf32>
    %5 = vector.extract_strided_slice %3 {offsets = [0, 0], sizes = [1, 1024], strides = [1, 1]} : vector<9x1024xf32> to vector<1x1024xf32>
    %6 = vector.broadcast %5 : vector<1x1024xf32> to vector<16x1024xf32>
    %7 = arith.mulf %4, %6 : vector<16x1024xf32>
    %8 = vector.extract_strided_slice %7 {offsets = [0, 0], sizes = [8, 1024], strides = [1, 1]} : vector<16x1024xf32> to vector<8x1024xf32>
    %c0_5 = arith.constant 0 : index
    %c0_6 = arith.constant 0 : index
    %c0_7 = arith.constant 0 : index
    %9 = vector.load %arg8[%c0_5, %c0_6, %c0_7] : memref<2x72x1024xf32, #tpu.memory_space<vmem>>, vector<1x8x1024xf32>
    %10 = vector.shape_cast %9 : vector<1x8x1024xf32> to vector<8x1024xf32>
    %11 = vector.shape_cast %8 : vector<8x1024xf32> to vector<1x8x1024xf32>
    tpu.vector_store %arg8[%c0_5, %c0_6, %c0_7], %11 {strides = array<i32>} : memref<2x72x1024xf32, #tpu.memory_space<vmem>>, vector<1x8x1024xf32>,
    %12 = vector.extract_strided_slice %7 {offsets = [8, 0], sizes = [8, 1024], strides = [1, 1]} : vector<16x1024xf32> to vector<8x1024xf32>
    %c1 = arith.constant 1 : index
    %c0_8 = arith.constant 0 : index
    %c0_9 = arith.constant 0 : index
    %13 = vector.load %arg8[%c1, %c0_8, %c0_9] : memref<2x72x1024xf32, #tpu.memory_space<vmem>>, vector<1x8x1024xf32>
    %14 = vector.shape_cast %13 : vector<1x8x1024xf32> to vector<8x1024xf32>
    %15 = vector.shape_cast %12 : vector<8x1024xf32> to vector<1x8x1024xf32>
    tpu.vector_store %arg8[%c1, %c0_8, %c0_9], %15 {strides = array<i32>} : memref<2x72x1024xf32, #tpu.memory_space<vmem>>, vector<1x8x1024xf32>,
    %c32_i32 = arith.constant 32 : i32
    %16 = tpu.dynamic_rotate %2 by %c32_i32 dim 1 : vector<16x1024xf32>, i32 -> vector<16x1024xf32>
    %17 = vector.extract_strided_slice %3 {offsets = [1, 0], sizes = [1, 1024], strides = [1, 1]} : vector<9x1024xf32> to vector<1x1024xf32>
    %18 = vector.broadcast %17 : vector<1x1024xf32> to vector<16x1024xf32>
    %19 = arith.mulf %16, %18 : vector<16x1024xf32>
    %20 = vector.extract_strided_slice %19 {offsets = [0, 0], sizes = [8, 1024], strides = [1, 1]} : vector<16x1024xf32> to vector<8x1024xf32>
    %c0_10 = arith.constant 0 : index
    %c8 = arith.constant 8 : index
    %c0_11 = arith.constant 0 : index
    %21 = vector.load %arg8[%c0_10, %c8, %c0_11] : memref<2x72x1024xf32, #tpu.memory_space<vmem>>, vector<1x8x1024xf32>
    %22 = vector.shape_cast %21 : vector<1x8x1024xf32> to vector<8x1024xf32>
    %23 = vector.shape_cast %20 : vector<8x1024xf32> to vector<1x8x1024xf32>
    tpu.vector_store %arg8[%c0_10, %c8, %c0_11], %23 {strides = array<i32>} : memref<2x72x1024xf32, #tpu.memory_space<vmem>>, vector<1x8x1024xf32>,
    %24 = vector.extract_strided_slice %19 {offsets = [8, 0], sizes = [8, 1024], strides = [1, 1]} : vector<16x1024xf32> to vector<8x1024xf32>
    %c1_12 = arith.constant 1 : index
    %c8_13 = arith.constant 8 : index
    %c0_14 = arith.constant 0 : index
    %25 = vector.load %arg8[%c1_12, %c8_13, %c0_14] : memref<2x72x1024xf32, #tpu.memory_space<vmem>>, vector<1x8x1024xf32>
    %26 = vector.shape_cast %25 : vector<1x8x1024xf32> to vector<8x1024xf32>
    %27 = vector.shape_cast %24 : vector<8x1024xf32> to vector<1x8x1024xf32>
    tpu.vector_store %arg8[%c1_12, %c8_13, %c0_14], %27 {strides = array<i32>} : memref<2x72x1024xf32, #tpu.memory_space<vmem>>, vector<1x8x1024xf32>,
    %c31_i32 = arith.constant 31 : i32
    %28 = tpu.dynamic_rotate %2 by %c31_i32 dim 1 : vector<16x1024xf32>, i32 -> vector<16x1024xf32>
    %29 = vector.extract_strided_slice %3 {offsets = [2, 0], sizes = [1, 1024], strides = [1, 1]} : vector<9x1024xf32> to vector<1x1024xf32>
    %30 = vector.broadcast %29 : vector<1x1024xf32> to vector<16x1024xf32>
    %31 = arith.mulf %28, %30 : vector<16x1024xf32>
    %32 = vector.extract_strided_slice %31 {offsets = [0, 0], sizes = [8, 1024], strides = [1, 1]} : vector<16x1024xf32> to vector<8x1024xf32>
    %c0_15 = arith.constant 0 : index
    %c16 = arith.constant 16 : index
    %c0_16 = arith.constant 0 : index
    %33 = vector.load %arg8[%c0_15, %c16, %c0_16] : memref<2x72x1024xf32, #tpu.memory_space<vmem>>, vector<1x8x1024xf32>
    %34 = vector.shape_cast %33 : vector<1x8x1024xf32> to vector<8x1024xf32>
    %35 = vector.shape_cast %32 : vector<8x1024xf32> to vector<1x8x1024xf32>
    tpu.vector_store %arg8[%c0_15, %c16, %c0_16], %35 {strides = array<i32>} : memref<2x72x1024xf32, #tpu.memory_space<vmem>>, vector<1x8x1024xf32>,
    %36 = vector.extract_strided_slice %31 {offsets = [8, 0], sizes = [8, 1024], strides = [1, 1]} : vector<16x1024xf32> to vector<8x1024xf32>
    %c1_17 = arith.constant 1 : index
    %c16_18 = arith.constant 16 : index
    %c0_19 = arith.constant 0 : index
    %37 = vector.load %arg8[%c1_17, %c16_18, %c0_19] : memref<2x72x1024xf32, #tpu.memory_space<vmem>>, vector<1x8x1024xf32>
    %38 = vector.shape_cast %37 : vector<1x8x1024xf32> to vector<8x1024xf32>
    %39 = vector.shape_cast %36 : vector<8x1024xf32> to vector<1x8x1024xf32>
    tpu.vector_store %arg8[%c1_17, %c16_18, %c0_19], %39 {strides = array<i32>} : memref<2x72x1024xf32, #tpu.memory_space<vmem>>, vector<1x8x1024xf32>,
    %c1_i32 = arith.constant 1 : i32
    %40 = tpu.dynamic_rotate %2 by %c1_i32 dim 1 : vector<16x1024xf32>, i32 -> vector<16x1024xf32>
    %41 = vector.extract_strided_slice %3 {offsets = [3, 0], sizes = [1, 1024], strides = [1, 1]} : vector<9x1024xf32> to vector<1x1024xf32>
    %42 = vector.broadcast %41 : vector<1x1024xf32> to vector<16x1024xf32>
    %43 = arith.mulf %40, %42 : vector<16x1024xf32>
    %44 = vector.extract_strided_slice %43 {offsets = [0, 0], sizes = [8, 1024], strides = [1, 1]} : vector<16x1024xf32> to vector<8x1024xf32>
    %c0_20 = arith.constant 0 : index
    %c24 = arith.constant 24 : index
    %c0_21 = arith.constant 0 : index
    %45 = vector.load %arg8[%c0_20, %c24, %c0_21] : memref<2x72x1024xf32, #tpu.memory_space<vmem>>, vector<1x8x1024xf32>
    %46 = vector.shape_cast %45 : vector<1x8x1024xf32> to vector<8x1024xf32>
    %47 = vector.shape_cast %44 : vector<8x1024xf32> to vector<1x8x1024xf32>
    tpu.vector_store %arg8[%c0_20, %c24, %c0_21], %47 {strides = array<i32>} : memref<2x72x1024xf32, #tpu.memory_space<vmem>>, vector<1x8x1024xf32>,
    %48 = vector.extract_strided_slice %43 {offsets = [8, 0], sizes = [8, 1024], strides = [1, 1]} : vector<16x1024xf32> to vector<8x1024xf32>
    %c1_22 = arith.constant 1 : index
    %c24_23 = arith.constant 24 : index
    %c0_24 = arith.constant 0 : index
    %49 = vector.load %arg8[%c1_22, %c24_23, %c0_24] : memref<2x72x1024xf32, #tpu.memory_space<vmem>>, vector<1x8x1024xf32>
    %50 = vector.shape_cast %49 : vector<1x8x1024xf32> to vector<8x1024xf32>
    %51 = vector.shape_cast %48 : vector<8x1024xf32> to vector<1x8x1024xf32>
    tpu.vector_store %arg8[%c1_22, %c24_23, %c0_24], %51 {strides = array<i32>} : memref<2x72x1024xf32, #tpu.memory_space<vmem>>, vector<1x8x1024xf32>,
    %52 = vector.extract_strided_slice %3 {offsets = [4, 0], sizes = [1, 1024], strides = [1, 1]} : vector<9x1024xf32> to vector<1x1024xf32>
    %53 = vector.broadcast %52 : vector<1x1024xf32> to vector<16x1024xf32>
    %54 = arith.mulf %2, %53 : vector<16x1024xf32>
    %55 = vector.extract_strided_slice %54 {offsets = [0, 0], sizes = [8, 1024], strides = [1, 1]} : vector<16x1024xf32> to vector<8x1024xf32>
    %c0_25 = arith.constant 0 : index
    %c32 = arith.constant 32 : index
    %c0_26 = arith.constant 0 : index
    %56 = vector.load %arg8[%c0_25, %c32, %c0_26] : memref<2x72x1024xf32, #tpu.memory_space<vmem>>, vector<1x8x1024xf32>
    %57 = vector.shape_cast %56 : vector<1x8x1024xf32> to vector<8x1024xf32>
    %58 = vector.shape_cast %55 : vector<8x1024xf32> to vector<1x8x1024xf32>
    tpu.vector_store %arg8[%c0_25, %c32, %c0_26], %58 {strides = array<i32>} : memref<2x72x1024xf32, #tpu.memory_space<vmem>>, vector<1x8x1024xf32>,
    %59 = vector.extract_strided_slice %54 {offsets = [8, 0], sizes = [8, 1024], strides = [1, 1]} : vector<16x1024xf32> to vector<8x1024xf32>
    %c1_27 = arith.constant 1 : index
    %c32_28 = arith.constant 32 : index
    %c0_29 = arith.constant 0 : index
    %60 = vector.load %arg8[%c1_27, %c32_28, %c0_29] : memref<2x72x1024xf32, #tpu.memory_space<vmem>>, vector<1x8x1024xf32>
    %61 = vector.shape_cast %60 : vector<1x8x1024xf32> to vector<8x1024xf32>
    %62 = vector.shape_cast %59 : vector<8x1024xf32> to vector<1x8x1024xf32>
    tpu.vector_store %arg8[%c1_27, %c32_28, %c0_29], %62 {strides = array<i32>} : memref<2x72x1024xf32, #tpu.memory_space<vmem>>, vector<1x8x1024xf32>,
    %c1023_i32 = arith.constant 1023 : i32
    %63 = tpu.dynamic_rotate %2 by %c1023_i32 dim 1 : vector<16x1024xf32>, i32 -> vector<16x1024xf32>
    %64 = vector.extract_strided_slice %3 {offsets = [5, 0], sizes = [1, 1024], strides = [1, 1]} : vector<9x1024xf32> to vector<1x1024xf32>
    %65 = vector.broadcast %64 : vector<1x1024xf32> to vector<16x1024xf32>
    %66 = arith.mulf %63, %65 : vector<16x1024xf32>
    %67 = vector.extract_strided_slice %66 {offsets = [0, 0], sizes = [8, 1024], strides = [1, 1]} : vector<16x1024xf32> to vector<8x1024xf32>
    %c0_30 = arith.constant 0 : index
    %c40 = arith.constant 40 : index
    %c0_31 = arith.constant 0 : index
    %68 = vector.load %arg8[%c0_30, %c40, %c0_31] : memref<2x72x1024xf32, #tpu.memory_space<vmem>>, vector<1x8x1024xf32>
    %69 = vector.shape_cast %68 : vector<1x8x1024xf32> to vector<8x1024xf32>
    %70 = vector.shape_cast %67 : vector<8x1024xf32> to vector<1x8x1024xf32>
    tpu.vector_store %arg8[%c0_30, %c40, %c0_31], %70 {strides = array<i32>} : memref<2x72x1024xf32, #tpu.memory_space<vmem>>, vector<1x8x1024xf32>,
    %71 = vector.extract_strided_slice %66 {offsets = [8, 0], sizes = [8, 1024], strides = [1, 1]} : vector<16x1024xf32> to vector<8x1024xf32>
    %c1_32 = arith.constant 1 : index
    %c40_33 = arith.constant 40 : index
    %c0_34 = arith.constant 0 : index
    %72 = vector.load %arg8[%c1_32, %c40_33, %c0_34] : memref<2x72x1024xf32, #tpu.memory_space<vmem>>, vector<1x8x1024xf32>
    %73 = vector.shape_cast %72 : vector<1x8x1024xf32> to vector<8x1024xf32>
    %74 = vector.shape_cast %71 : vector<8x1024xf32> to vector<1x8x1024xf32>
    tpu.vector_store %arg8[%c1_32, %c40_33, %c0_34], %74 {strides = array<i32>} : memref<2x72x1024xf32, #tpu.memory_space<vmem>>, vector<1x8x1024xf32>,
    %c993_i32 = arith.constant 993 : i32
    %75 = tpu.dynamic_rotate %2 by %c993_i32 dim 1 : vector<16x1024xf32>, i32 -> vector<16x1024xf32>
    %76 = vector.extract_strided_slice %3 {offsets = [6, 0], sizes = [1, 1024], strides = [1, 1]} : vector<9x1024xf32> to vector<1x1024xf32>
    %77 = vector.broadcast %76 : vector<1x1024xf32> to vector<16x1024xf32>
    %78 = arith.mulf %75, %77 : vector<16x1024xf32>
    %79 = vector.extract_strided_slice %78 {offsets = [0, 0], sizes = [8, 1024], strides = [1, 1]} : vector<16x1024xf32> to vector<8x1024xf32>
    %c0_35 = arith.constant 0 : index
    %c48 = arith.constant 48 : index
    %c0_36 = arith.constant 0 : index
    %80 = vector.load %arg8[%c0_35, %c48, %c0_36] : memref<2x72x1024xf32, #tpu.memory_space<vmem>>, vector<1x8x1024xf32>
    %81 = vector.shape_cast %80 : vector<1x8x1024xf32> to vector<8x1024xf32>
    %82 = vector.shape_cast %79 : vector<8x1024xf32> to vector<1x8x1024xf32>
    tpu.vector_store %arg8[%c0_35, %c48, %c0_36], %82 {strides = array<i32>} : memref<2x72x1024xf32, #tpu.memory_space<vmem>>, vector<1x8x1024xf32>,
    %83 = vector.extract_strided_slice %78 {offsets = [8, 0], sizes = [8, 1024], strides = [1, 1]} : vector<16x1024xf32> to vector<8x1024xf32>
    %c1_37 = arith.constant 1 : index
    %c48_38 = arith.constant 48 : index
    %c0_39 = arith.constant 0 : index
    %84 = vector.load %arg8[%c1_37, %c48_38, %c0_39] : memref<2x72x1024xf32, #tpu.memory_space<vmem>>, vector<1x8x1024xf32>
    %85 = vector.shape_cast %84 : vector<1x8x1024xf32> to vector<8x1024xf32>
    %86 = vector.shape_cast %83 : vector<8x1024xf32> to vector<1x8x1024xf32>
    tpu.vector_store %arg8[%c1_37, %c48_38, %c0_39], %86 {strides = array<i32>} : memref<2x72x1024xf32, #tpu.memory_space<vmem>>, vector<1x8x1024xf32>,
    %c992_i32 = arith.constant 992 : i32
    %87 = tpu.dynamic_rotate %2 by %c992_i32 dim 1 : vector<16x1024xf32>, i32 -> vector<16x1024xf32>
    %88 = vector.extract_strided_slice %3 {offsets = [7, 0], sizes = [1, 1024], strides = [1, 1]} : vector<9x1024xf32> to vector<1x1024xf32>
    %89 = vector.broadcast %88 : vector<1x1024xf32> to vector<16x1024xf32>
    %90 = arith.mulf %87, %89 : vector<16x1024xf32>
    %91 = vector.extract_strided_slice %90 {offsets = [0, 0], sizes = [8, 1024], strides = [1, 1]} : vector<16x1024xf32> to vector<8x1024xf32>
    %c0_40 = arith.constant 0 : index
    %c56 = arith.constant 56 : index
    %c0_41 = arith.constant 0 : index
    %92 = vector.load %arg8[%c0_40, %c56, %c0_41] : memref<2x72x1024xf32, #tpu.memory_space<vmem>>, vector<1x8x1024xf32>
    %93 = vector.shape_cast %92 : vector<1x8x1024xf32> to vector<8x1024xf32>
    %94 = vector.shape_cast %91 : vector<8x1024xf32> to vector<1x8x1024xf32>
    tpu.vector_store %arg8[%c0_40, %c56, %c0_41], %94 {strides = array<i32>} : memref<2x72x1024xf32, #tpu.memory_space<vmem>>, vector<1x8x1024xf32>,
    %95 = vector.extract_strided_slice %90 {offsets = [8, 0], sizes = [8, 1024], strides = [1, 1]} : vector<16x1024xf32> to vector<8x1024xf32>
    %c1_42 = arith.constant 1 : index
    %c56_43 = arith.constant 56 : index
    %c0_44 = arith.constant 0 : index
    %96 = vector.load %arg8[%c1_42, %c56_43, %c0_44] : memref<2x72x1024xf32, #tpu.memory_space<vmem>>, vector<1x8x1024xf32>
    %97 = vector.shape_cast %96 : vector<1x8x1024xf32> to vector<8x1024xf32>
    %98 = vector.shape_cast %95 : vector<8x1024xf32> to vector<1x8x1024xf32>
    tpu.vector_store %arg8[%c1_42, %c56_43, %c0_44], %98 {strides = array<i32>} : memref<2x72x1024xf32, #tpu.memory_space<vmem>>, vector<1x8x1024xf32>,
    %c991_i32 = arith.constant 991 : i32
    %99 = tpu.dynamic_rotate %2 by %c991_i32 dim 1 : vector<16x1024xf32>, i32 -> vector<16x1024xf32>
    %100 = vector.extract_strided_slice %3 {offsets = [8, 0], sizes = [1, 1024], strides = [1, 1]} : vector<9x1024xf32> to vector<1x1024xf32>
    %101 = vector.broadcast %100 : vector<1x1024xf32> to vector<16x1024xf32>
    %102 = arith.mulf %99, %101 : vector<16x1024xf32>
    %103 = vector.extract_strided_slice %102 {offsets = [0, 0], sizes = [8, 1024], strides = [1, 1]} : vector<16x1024xf32> to vector<8x1024xf32>
    %c0_45 = arith.constant 0 : index
    %c64 = arith.constant 64 : index
    %c0_46 = arith.constant 0 : index
    %104 = vector.load %arg8[%c0_45, %c64, %c0_46] : memref<2x72x1024xf32, #tpu.memory_space<vmem>>, vector<1x8x1024xf32>
    %105 = vector.shape_cast %104 : vector<1x8x1024xf32> to vector<8x1024xf32>
    %106 = vector.shape_cast %103 : vector<8x1024xf32> to vector<1x8x1024xf32>
    tpu.vector_store %arg8[%c0_45, %c64, %c0_46], %106 {strides = array<i32>} : memref<2x72x1024xf32, #tpu.memory_space<vmem>>, vector<1x8x1024xf32>,
    %107 = vector.extract_strided_slice %102 {offsets = [8, 0], sizes = [8, 1024], strides = [1, 1]} : vector<16x1024xf32> to vector<8x1024xf32>
    %c1_47 = arith.constant 1 : index
    %c64_48 = arith.constant 64 : index
    %c0_49 = arith.constant 0 : index
    %108 = vector.load %arg8[%c1_47, %c64_48, %c0_49] : memref<2x72x1024xf32, #tpu.memory_space<vmem>>, vector<1x8x1024xf32>
    %109 = vector.shape_cast %108 : vector<1x8x1024xf32> to vector<8x1024xf32>
    %110 = vector.shape_cast %107 : vector<8x1024xf32> to vector<1x8x1024xf32>
    tpu.vector_store %arg8[%c1_47, %c64_48, %c0_49], %110 {strides = array<i32>} : memref<2x72x1024xf32, #tpu.memory_space<vmem>>, vector<1x8x1024xf32>,
    %c0_50 = arith.constant 0 : index
    %c0_51 = arith.constant 0 : index
    %111 = vector.load %arg3[%c0_50, %c0_51] : memref<8x72xf32, #tpu.memory_space<vmem>>, vector<8x72xf32>
    %cst_52 = arith.constant 0.000000e+00 : f32
    %112 = vector.broadcast %cst_52 : f32 to vector<8x1xf32>
    %c0_53 = arith.constant 0 : index
    %c0_54 = arith.constant 0 : index
    %c0_55 = arith.constant 0 : index
    %113 = vector.load %arg8[%c0_53, %c0_54, %c0_55] : memref<2x72x1024xf32, #tpu.memory_space<vmem>>, vector<1x72x1024xf32>
    %114 = vector.shape_cast %113 : vector<1x72x1024xf32> to vector<72x1024xf32>
    %cst_56 = arith.constant dense<0.000000e+00> : vector<8x1024xf32>
    %115 = tpu.matmul %111, %114, %cst_56 {dimension_numbers = #tpu.dot_dimension_numbers<[1], [0], [0], [1], [0, 0, 1, 1], [], []>} : vector<8x72xf32>, vector<72x1024xf32>, vector<8x1024xf32> -> vector<8x1024xf32>
    %c0_57 = arith.constant 0 : index
    %c0_58 = arith.constant 0 : index
    %c0_59 = arith.constant 0 : index
    %116 = vector.load %arg9[%c0_57, %c0_58, %c0_59] : memref<2x8x1024xf32, #tpu.memory_space<vmem>>, vector<1x8x1024xf32>
    %117 = vector.shape_cast %116 : vector<1x8x1024xf32> to vector<8x1024xf32>
    %118 = vector.shape_cast %115 : vector<8x1024xf32> to vector<1x8x1024xf32>
    tpu.vector_store %arg9[%c0_57, %c0_58, %c0_59], %118 {strides = array<i32>} : memref<2x8x1024xf32, #tpu.memory_space<vmem>>, vector<1x8x1024xf32>,
    %cst_60 = arith.constant dense<0.000000e+00> : vector<8xf32>
    %119 = vector.multi_reduction <add>, %115, %cst_60 [1] : vector<8x1024xf32> to vector<8xf32>
    %120 = vector.shape_cast %119 : vector<8xf32> to vector<8x1xf32>
    %121 = arith.addf %112, %120 : vector<8x1xf32>
    %c1_61 = arith.constant 1 : index
    %c0_62 = arith.constant 0 : index
    %c0_63 = arith.constant 0 : index
    %122 = vector.load %arg8[%c1_61, %c0_62, %c0_63] : memref<2x72x1024xf32, #tpu.memory_space<vmem>>, vector<1x72x1024xf32>
    %123 = vector.shape_cast %122 : vector<1x72x1024xf32> to vector<72x1024xf32>
    %cst_64 = arith.constant dense<0.000000e+00> : vector<8x1024xf32>
    %124 = tpu.matmul %111, %123, %cst_64 {dimension_numbers = #tpu.dot_dimension_numbers<[1], [0], [0], [1], [0, 0, 1, 1], [], []>} : vector<8x72xf32>, vector<72x1024xf32>, vector<8x1024xf32> -> vector<8x1024xf32>
    %c1_65 = arith.constant 1 : index
    %c0_66 = arith.constant 0 : index
    %c0_67 = arith.constant 0 : index
    %125 = vector.load %arg9[%c1_65, %c0_66, %c0_67] : memref<2x8x1024xf32, #tpu.memory_space<vmem>>, vector<1x8x1024xf32>
    %126 = vector.shape_cast %125 : vector<1x8x1024xf32> to vector<8x1024xf32>
    %127 = vector.shape_cast %124 : vector<8x1024xf32> to vector<1x8x1024xf32>
    tpu.vector_store %arg9[%c1_65, %c0_66, %c0_67], %127 {strides = array<i32>} : memref<2x8x1024xf32, #tpu.memory_space<vmem>>, vector<1x8x1024xf32>,
    %cst_68 = arith.constant dense<0.000000e+00> : vector<8xf32>
    %128 = vector.multi_reduction <add>, %124, %cst_68 [1] : vector<8x1024xf32> to vector<8xf32>
    %129 = vector.shape_cast %128 : vector<8xf32> to vector<8x1xf32>
    %130 = arith.addf %121, %129 : vector<8x1xf32>
    %cst_69 = arith.constant 4.8828125E-4 : f32
    %131 = vector.broadcast %cst_69 : f32 to vector<8x1xf32>
    %132 = arith.mulf %130, %131 : vector<8x1xf32>
    %cst_70 = arith.constant 0.000000e+00 : f32
    %133 = vector.broadcast %cst_70 : f32 to vector<8x1xf32>
    %c0_71 = arith.constant 0 : index
    %c0_72 = arith.constant 0 : index
    %c0_73 = arith.constant 0 : index
    %134 = vector.load %arg9[%c0_71, %c0_72, %c0_73] : memref<2x8x1024xf32, #tpu.memory_space<vmem>>, vector<1x8x1024xf32>
    %135 = vector.shape_cast %134 : vector<1x8x1024xf32> to vector<8x1024xf32>
    %136 = vector.broadcast %132 : vector<8x1xf32> to vector<8x1024xf32>
    %137 = arith.subf %135, %136 : vector<8x1024xf32>
    %138 = arith.mulf %137, %137 : vector<8x1024xf32>
    %cst_74 = arith.constant dense<0.000000e+00> : vector<8xf32>
    %139 = vector.multi_reduction <add>, %138, %cst_74 [1] : vector<8x1024xf32> to vector<8xf32>
    %140 = vector.shape_cast %139 : vector<8xf32> to vector<8x1xf32>
    %141 = arith.addf %133, %140 : vector<8x1xf32>
    %c1_75 = arith.constant 1 : index
    %c0_76 = arith.constant 0 : index
    %c0_77 = arith.constant 0 : index
    %142 = vector.load %arg9[%c1_75, %c0_76, %c0_77] : memref<2x8x1024xf32, #tpu.memory_space<vmem>>, vector<1x8x1024xf32>
    %143 = vector.shape_cast %142 : vector<1x8x1024xf32> to vector<8x1024xf32>
    %144 = vector.broadcast %132 : vector<8x1xf32> to vector<8x1024xf32>
    %145 = arith.subf %143, %144 : vector<8x1024xf32>
    %146 = arith.mulf %145, %145 : vector<8x1024xf32>
    %cst_78 = arith.constant dense<0.000000e+00> : vector<8xf32>
    %147 = vector.multi_reduction <add>, %146, %cst_78 [1] : vector<8x1024xf32> to vector<8xf32>
    %148 = vector.shape_cast %147 : vector<8xf32> to vector<8x1xf32>
    %149 = arith.addf %141, %148 : vector<8x1xf32>
    %cst_79 = arith.constant 4.8828125E-4 : f32
    %150 = vector.broadcast %cst_79 : f32 to vector<8x1xf32>
    %151 = arith.mulf %149, %150 : vector<8x1xf32>
    %c0_80 = arith.constant 0 : index
    %c0_81 = arith.constant 0 : index
    %152 = vector.load %arg5[%c0_80, %c0_81] : memref<8x1xf32, #tpu.memory_space<vmem>>, vector<8x1xf32>
    %cst_82 = arith.constant 9.99999974E-6 : f32
    %153 = vector.broadcast %cst_82 : f32 to vector<8x1xf32>
    %154 = arith.addf %151, %153 : vector<8x1xf32>
    %155 = math.rsqrt %154 : vector<8x1xf32>
    %156 = arith.mulf %152, %155 : vector<8x1xf32>
    %c0_83 = arith.constant 0 : index
    %c0_84 = arith.constant 0 : index
    %157 = vector.load %arg6[%c0_83, %c0_84] : memref<8x1xf32, #tpu.memory_space<vmem>>, vector<8x1xf32>
    %158 = arith.mulf %132, %156 : vector<8x1xf32>
    %159 = arith.subf %157, %158 : vector<8x1xf32>
    %c0_85 = arith.constant 0 : index
    %c0_86 = arith.constant 0 : index
    %c0_87 = arith.constant 0 : index
    %160 = vector.load %arg9[%c0_85, %c0_86, %c0_87] : memref<2x8x1024xf32, #tpu.memory_space<vmem>>, vector<1x8x1024xf32>
    %161 = vector.shape_cast %160 : vector<1x8x1024xf32> to vector<8x1024xf32>
    %162 = vector.broadcast %156 : vector<8x1xf32> to vector<8x1024xf32>
    %163 = arith.mulf %161, %162 : vector<8x1024xf32>
    %164 = vector.broadcast %159 : vector<8x1xf32> to vector<8x1024xf32>
    %165 = arith.addf %163, %164 : vector<8x1024xf32>
    %cst_88 = arith.constant 0.000000e+00 : f32
    %166 = vector.broadcast %cst_88 : f32 to vector<8x1024xf32>
    %167 = arith.maximumf %165, %166 : vector<8x1024xf32>
    %c0_89 = arith.constant 0 : index
    %c0_90 = arith.constant 0 : index
    %c0_91 = arith.constant 0 : index
    %168 = vector.load %arg7[%c0_89, %c0_90, %c0_91] : memref<2x8x1024xf32, #tpu.memory_space<vmem>>, vector<1x8x1024xf32>
    %169 = vector.shape_cast %168 : vector<1x8x1024xf32> to vector<8x1024xf32>
    %170 = vector.shape_cast %167 : vector<8x1024xf32> to vector<1x8x1024xf32>
    tpu.vector_store %arg7[%c0_89, %c0_90, %c0_91], %170 {strides = array<i32>} : memref<2x8x1024xf32, #tpu.memory_space<vmem>>, vector<1x8x1024xf32>,
    %c1_92 = arith.constant 1 : index
    %c0_93 = arith.constant 0 : index
    %c0_94 = arith.constant 0 : index
    %171 = vector.load %arg9[%c1_92, %c0_93, %c0_94] : memref<2x8x1024xf32, #tpu.memory_space<vmem>>, vector<1x8x1024xf32>
    %172 = vector.shape_cast %171 : vector<1x8x1024xf32> to vector<8x1024xf32>
    %173 = vector.broadcast %156 : vector<8x1xf32> to vector<8x1024xf32>
    %174 = arith.mulf %172, %173 : vector<8x1024xf32>
    %175 = vector.broadcast %159 : vector<8x1xf32> to vector<8x1024xf32>
    %176 = arith.addf %174, %175 : vector<8x1024xf32>
    %cst_95 = arith.constant 0.000000e+00 : f32
    %177 = vector.broadcast %cst_95 : f32 to vector<8x1024xf32>
    %178 = arith.maximumf %176, %177 : vector<8x1024xf32>
    %c1_96 = arith.constant 1 : index
    %c0_97 = arith.constant 0 : index
    %c0_98 = arith.constant 0 : index
    %179 = vector.load %arg7[%c1_96, %c0_97, %c0_98] : memref<2x8x1024xf32, #tpu.memory_space<vmem>>, vector<1x8x1024xf32>
    %180 = vector.shape_cast %179 : vector<1x8x1024xf32> to vector<8x1024xf32>
    %181 = vector.shape_cast %178 : vector<8x1024xf32> to vector<1x8x1024xf32>
    tpu.vector_store %arg7[%c1_96, %c0_97, %c0_98], %181 {strides = array<i32>} : memref<2x8x1024xf32, #tpu.memory_space<vmem>>, vector<1x8x1024xf32>,
    return
  }
  func.func @transform_0(%arg0: i32) -> (i32, i32) {
    %c0_i32 = arith.constant 0 : i32
    %c0_i32_0 = arith.constant 0 : i32
    %c0_i32_1 = arith.constant 0 : i32
    return %c0_i32, %c0_i32_0 : i32, i32
  }
  func.func @transform_1(%arg0: i32) -> (i32, i32) {
    %c0_i32 = arith.constant 0 : i32
    %c0_i32_0 = arith.constant 0 : i32
    %c0_i32_1 = arith.constant 0 : i32
    return %c0_i32, %c0_i32_0 : i32, i32
  }
  func.func @transform_2(%arg0: i32) -> (i32, i32) {
    %c0_i32 = arith.constant 0 : i32
    %c0_i32_0 = arith.constant 0 : i32
    %c0_i32_1 = arith.constant 0 : i32
    return %c0_i32, %c0_i32_0 : i32, i32
  }
  func.func @transform_3(%arg0: i32) -> (i32, i32) {
    %c0_i32 = arith.constant 0 : i32
    %c0_i32_0 = arith.constant 0 : i32
    %c0_i32_1 = arith.constant 0 : i32
    return %c0_i32, %c0_i32_0 : i32, i32
  }
  func.func @transform_4(%arg0: i32) -> (i32, i32) {
    %c0_i32 = arith.constant 0 : i32
    %c0_i32_0 = arith.constant 0 : i32
    %c0_i32_1 = arith.constant 0 : i32
    return %c0_i32, %c0_i32_0 : i32, i32
  }
  func.func @transform_5(%arg0: i32) -> (i32, i32) {
    %c0_i32 = arith.constant 0 : i32
    %c0_i32_0 = arith.constant 0 : i32
    %c0_i32_1 = arith.constant 0 : i32
    return %c0_i32, %c0_i32_0 : i32, i32
  }
  func.func @transform_6(%arg0: i32) -> (i32, i32, i32) {
    %c0_i32 = arith.constant 0 : i32
    %c0_i32_0 = arith.constant 0 : i32
    %c0_i32_1 = arith.constant 0 : i32
    %c0_i32_2 = arith.constant 0 : i32
    return %c0_i32, %c0_i32_0, %c0_i32_1 : i32, i32, i32
  }
}

</mosaic_0001>

<bundles_post_ra>
// kernel: tpu_custom_call.1
= control target key start
LH: loop header
LB: loop body
LE: loop exit
PB: predicated region body
PF: predicated region fallthrough
CT: control target
= control target key end

     0   :  { %11 = vsyncpa [#allocation5], 0  ;;  %s4345_s0 = inlined_call_operand.hbm [shape: f32[16,256], index: 0, kind: input, shape index: {}]   ;;  %s4346_s1 = inlined_call_operand.hbm [shape: f32[256,1024], index: 1, kind: input, shape index: {}]   ;;  %s4347_s2 = inlined_call_operand.vmem [shape: f32[8,72], index: 2, kind: input, shape index: {}]   ;;  %s4348_s3 = inlined_call_operand.hbm [shape: f32[9,1024], index: 3, kind: input, shape index: {}]   ;;  %s4349_s4 = inlined_call_operand.vmem [shape: f32[8,1], index: 4, kind: input, shape index: {}]   ;;  %s4350_s5 = inlined_call_operand.vmem [shape: f32[8,1], index: 5, kind: input, shape index: {}]   ;;  %s4351_s6 = inlined_call_operand.hbm [shape: f32[2,8,1024], index: 6, kind: output, shape index: {}]  }
   0x1   :  { %12 = vsyncpa [#allocation8], 0 }
   0x2   :  { %13 = vsyncpa [#allocation6], 0  ;;  %s2676_s21 = smov [#allocation7]  }
   0x3   :  { %s31_s22 = sshll.u32 %s2676_s21, 4  ;;  %s32_s22 = int_to_ptr.vmem [resolvable:$true] %s31_s22 }
   0x4   :  { %s2598_s23 = scalar_lea.vmem %s32_s22, 32768  ;;  %p2603_p1 = scmp.lt.s32.totalorder %s32_s22, %s32_s22 }
   0x5   :  { %p2599_p0 = scmp.ne.s32.totalorder %s32_s22, %s2598_s23  ;;  %p2604_p2 = scmp.lt.s32.totalorder %s2598_s23, %s2598_s23 }
   0x7   :  { %p2605_p3 = por %p2604_p2, %p2603_p1 }
   0x9   :  { %p2606_p4 = pnand %p2605_p3, %p2599_p0 }
   0xb   :  { %2609 = shalt.err (!%p2606_p4)
}
   0xc   :  { %s2677_s24 = smov 1024   ;;  %s2678_s25 = smov 64  }
   0xd   :  { %37 = dma.hbm_to_vmem [thread:$0]  %s4346_s1, 32768, %s32_s22, [#allocation8], %s2677_s24, %s2677_s24, %s2678_s25  }
   0xe   :  { %s2679_s28 = smov [#allocation4]  }
   0xf   :  { %s19_s29 = sshll.u32 %s2679_s28, 4  ;;  %s20_s29 = int_to_ptr.vmem [resolvable:$true] %s19_s29 }
  0x10   :  { %s2618_s30 = scalar_lea.vmem %s20_s29, 512  ;;  %p2623_p6 = scmp.lt.s32.totalorder %s20_s29, %s20_s29 }
  0x11   :  { %p2619_p5 = scmp.ne.s32.totalorder %s20_s29, %s2618_s30  ;;  %p2624_p7 = scmp.lt.s32.totalorder %s2618_s30, %s2618_s30 }
  0x13   :  { %p2625_p8 = por %p2624_p7, %p2623_p6 }
  0x15   :  { %p2626_p9 = pnand %p2625_p8, %p2619_p5 }
  0x17   :  { %2629 = shalt.err (!%p2626_p9)
}
  0x18   :  { %s2680_s7 = smov 256   ;;  %s2681_s8 = smov 16  }
  0x19   :  { %25 = dma.hbm_to_vmem [thread:$0]  %s4345_s0, 512, %s20_s29, [#allocation5], %s2680_s7, %s2680_s7, %s2681_s8  }
  0x1a   :  { %s2682_s11 = smov [#allocation9]  }
  0x1b   :  { %s45_s12 = sshll.u32 %s2682_s11, 4  ;;  %s46_s12 = int_to_ptr.vmem [resolvable:$true] %s45_s12 }
  0x1c   :  { %s2638_s1 = scalar_lea.vmem %s46_s12, 2048  ;;  %p2643_p11 = scmp.lt.s32.totalorder %s46_s12, %s46_s12 }
  0x1d   :  { %p2639_p10 = scmp.ne.s32.totalorder %s46_s12, %s2638_s1  ;;  %p2644_p12 = scmp.lt.s32.totalorder %s2638_s1, %s2638_s1 }
  0x1f   :  { %p2645_p13 = por %p2644_p12, %p2643_p11 }
  0x21   :  { %p2646_p0 = pnand %p2645_p13, %p2639_p10 }
  0x23   :  { %2649 = shalt.err (!%p2646_p0)
}
  0x24   :  { %51 = dma.hbm_to_vmem [thread:$0]  %s4348_s3, 2048, %s46_s12, [#allocation8], %s2677_s24, %s2677_s24, %s2678_s25  }
  0x25   :  { %2670 = dma.done.wait [#allocation5], 512  }
  0x26   :  { %2671 = vsyncadd [#allocation5], 4294966784 }
  0x27   :  { %2672 = dma.done.wait [#allocation8], 34816  }
  0x28   :  { %2673 = vsyncadd [#allocation8], 4294932480  ;;  %v190_v0 = vld [vmem:[#allocation7 + $0x3c8] sm:$0xff]  ;;  %v192_v1 = vld [vmem:[#allocation7 + $0x3d8] sm:$0xff]  ;;  %s2683_s0 = smov 95   ;;  %s2684_s3 = smov 96  }
  0x29   :  { %v189_v2 = vld [vmem:[#allocation7 + $0x3c0] sm:$0xff]  ;;  %325 = vmatprep.subr.mxu0 %v190_v0  ;;  %402 = vmatprep.subr.mxu1 %v192_v1  ;;  %v191_v3 = vld [vmem:[#allocation7 + $0x3d0] sm:$0xff]  ;;  %v182_v4 = vld [vmem:[#allocation7 + $0x388] sm:$0xff]  ;;  %s2685_s15 = smov 97   ;;  %s2686_s16 = smov 127   ;;  %vm1693_vm8 = vcmask 588800  }
  0x2a   :  { %v184_v5 = vld [vmem:[#allocation7 + $0x398] sm:$0xff]  ;;  %326 = vmatpush1.msra.mxu0 %v189_v2  ;;  %403 = vmatpush1.msra.mxu1 %v191_v3  ;;  %v181_v6 = vld [vmem:[#allocation7 + $0x380] sm:$0xff]  ;;  %v183_v7 = vld [vmem:[#allocation7 + $0x390] sm:$0xff]  ;;  %s2687_s17 = smov 1   ;;  %s2688_s18 = smov 31  }
  0x2b   :  { %v174_v8 = vld [vmem:[#allocation7 + $0x348] sm:$0xff]  ;;  %327 = vmatprep.subr.mxu0 %v182_v4  ;;  %404 = vmatprep.subr.mxu1 %v184_v5  ;;  %v176_v9 = vld [vmem:[#allocation7 + $0x358] sm:$0xff]  ;;  %v173_v10 = vld [vmem:[#allocation7 + $0x340] sm:$0xff]  ;;  %s2689_s19 = smov 32   ;;  %s2690_s20 = smov 33  }
  0x2c   :  { %v175_v11 = vld [vmem:[#allocation7 + $0x350] sm:$0xff]  ;;  %328 = vmatpush1.msra.mxu0 %v181_v6  ;;  %405 = vmatpush1.msra.mxu1 %v183_v7  ;;  %v166_v12 = vld [vmem:[#allocation7 + $0x308] sm:$0xff]  ;;  %v168_v13 = vld [vmem:[#allocation7 + $0x318] sm:$0xff] }
  0x2d   :  { %329 = vmatprep.subr.mxu0 %v174_v8  ;;  %406 = vmatprep.subr.mxu1 %v176_v9  ;;  %v165_v14 = vld [vmem:[#allocation7 + $0x300] sm:$0xff]  ;;  %v167_v15 = vld [vmem:[#allocation7 + $0x310] sm:$0xff]  ;;  %v158_v16 = vld [vmem:[#allocation7 + $0x2c8] sm:$0xff] }
  0x2e   :  { %330 = vmatpush1.msra.mxu0 %v173_v10  ;;  %407 = vmatpush1.msra.mxu1 %v175_v11  ;;  %v160_v17 = vld [vmem:[#allocation7 + $0x2d8] sm:$0xff]  ;;  %v157_v18 = vld [vmem:[#allocation7 + $0x2c0] sm:$0xff]  ;;  %v159_v19 = vld [vmem:[#allocation7 + $0x2d0] sm:$0xff] }
  0x2f   :  { %331 = vmatprep.subr.mxu0 %v166_v12  ;;  %408 = vmatprep.subr.mxu1 %v168_v13  ;;  %v150_v20 = vld [vmem:[#allocation7 + $0x288] sm:$0xff]  ;;  %v152_v21 = vld [vmem:[#allocation7 + $0x298] sm:$0xff]  ;;  %v149_v22 = vld [vmem:[#allocation7 + $0x280] sm:$0xff] }
  0x30   :  { %332 = vmatpush1.msra.mxu0 %v165_v14  ;;  %409 = vmatpush1.msra.mxu1 %v167_v15  ;;  %v151_v23 = vld [vmem:[#allocation7 + $0x290] sm:$0xff]  ;;  %v142_v24 = vld [vmem:[#allocation7 + $0x248] sm:$0xff]  ;;  %v144_v25 = vld [vmem:[#allocation7 + $0x258] sm:$0xff] }
  0x31   :  { %333 = vmatprep.subr.mxu0 %v158_v16  ;;  %410 = vmatprep.subr.mxu1 %v160_v17  ;;  %v141_v26 = vld [vmem:[#allocation7 + $0x240] sm:$0xff]  ;;  %v143_v27 = vld [vmem:[#allocation7 + $0x250] sm:$0xff]  ;;  %v134_v28 = vld [vmem:[#allocation7 + $0x208] sm:$0xff] }
  0x32   :  { %334 = vmatpush1.msra.mxu0 %v157_v18  ;;  %411 = vmatpush1.msra.mxu1 %v159_v19  ;;  %v136_v29 = vld [vmem:[#allocation7 + $0x218] sm:$0xff]  ;;  %v133_v30 = vld [vmem:[#allocation7 + $0x200] sm:$0xff]  ;;  %v135_v31 = vld [vmem:[#allocation7 + $0x210] sm:$0xff] }
  0x33   :  { %335 = vmatprep.subr.mxu0 %v150_v20  ;;  %412 = vmatprep.subr.mxu1 %v152_v21  ;;  %v126_v32 = vld [vmem:[#allocation7 + $0x1c8] sm:$0xff]  ;;  %v128_v33 = vld [vmem:[#allocation7 + $0x1d8] sm:$0xff]  ;;  %v125_v34 = vld [vmem:[#allocation7 + $0x1c0] sm:$0xff] }
  0x34   :  { %336 = vmatpush1.msra.mxu0 %v149_v22  ;;  %413 = vmatpush1.msra.mxu1 %v151_v23  ;;  %v127_v35 = vld [vmem:[#allocation7 + $0x1d0] sm:$0xff]  ;;  %v118_v36 = vld [vmem:[#allocation7 + $0x188] sm:$0xff]  ;;  %v120_v37 = vld [vmem:[#allocation7 + $0x198] sm:$0xff] }
  0x35   :  { %337 = vmatprep.subr.mxu0 %v142_v24  ;;  %414 = vmatprep.subr.mxu1 %v144_v25  ;;  %v117_v38 = vld [vmem:[#allocation7 + $0x180] sm:$0xff]  ;;  %v119_v39 = vld [vmem:[#allocation7 + $0x190] sm:$0xff]  ;;  %v110_v40 = vld [vmem:[#allocation7 + $0x148] sm:$0xff] }
  0x36   :  { %338 = vmatpush1.msra.mxu0 %v141_v26  ;;  %415 = vmatpush1.msra.mxu1 %v143_v27  ;;  %v112_v41 = vld [vmem:[#allocation7 + $0x158] sm:$0xff]  ;;  %v109_v42 = vld [vmem:[#allocation7 + $0x140] sm:$0xff]  ;;  %v111_v43 = vld [vmem:[#allocation7 + $0x150] sm:$0xff] }
  0x37   :  { %339 = vmatprep.subr.mxu0 %v134_v28  ;;  %416 = vmatprep.subr.mxu1 %v136_v29  ;;  %v102_v44 = vld [vmem:[#allocation7 + $0x108] sm:$0xff]  ;;  %v104_v45 = vld [vmem:[#allocation7 + $0x118] sm:$0xff]  ;;  %v101_v46 = vld [vmem:[#allocation7 + $0x100] sm:$0xff] }
  0x38   :  { %340 = vmatpush1.msra.mxu0 %v133_v30  ;;  %417 = vmatpush1.msra.mxu1 %v135_v31  ;;  %v103_v47 = vld [vmem:[#allocation7 + $0x110] sm:$0xff]  ;;  %v94_v48 = vld [vmem:[#allocation7 + $0xc8] sm:$0xff]  ;;  %v96_v49 = vld [vmem:[#allocation7 + $0xd8] sm:$0xff] }
  0x39   :  { %341 = vmatprep.subr.mxu0 %v126_v32  ;;  %418 = vmatprep.subr.mxu1 %v128_v33  ;;  %v93_v50 = vld [vmem:[#allocation7 + $0xc0] sm:$0xff]  ;;  %v95_v51 = vld [vmem:[#allocation7 + $0xd0] sm:$0xff]  ;;  %v86_v52 = vld [vmem:[#allocation7 + $0x88] sm:$0xff] }
  0x3a   :  { %342 = vmatpush1.msra.mxu0 %v125_v34  ;;  %419 = vmatpush1.msra.mxu1 %v127_v35  ;;  %v88_v53 = vld [vmem:[#allocation7 + $0x98] sm:$0xff]  ;;  %v85_v54 = vld [vmem:[#allocation7 + $0x80] sm:$0xff]  ;;  %v87_v55 = vld [vmem:[#allocation7 + $0x90] sm:$0xff] }
  0x3b   :  { %343 = vmatprep.subr.mxu0 %v118_v36  ;;  %420 = vmatprep.subr.mxu1 %v120_v37  ;;  %v78_v56 = vld [vmem:[#allocation7 + $0x48] sm:$0xff]  ;;  %v80_v57 = vld [vmem:[#allocation7 + $0x58] sm:$0xff]  ;;  %v77_v58 = vld [vmem:[#allocation7 + $0x40] sm:$0xff] }
  0x3c   :  { %344 = vmatpush1.msra.mxu0 %v117_v38  ;;  %421 = vmatpush1.msra.mxu1 %v119_v39  ;;  %v79_v59 = vld [vmem:[#allocation7 + $0x50] sm:$0xff]  ;;  %v70_v60 = vld [vmem:[#allocation7 + $0x8] sm:$0xff]  ;;  %v72_v61 = vld [vmem:[#allocation7 + $0x18] sm:$0xff] }
  0x3d   :  { %345 = vmatprep.subr.mxu0 %v110_v40  ;;  %422 = vmatprep.subr.mxu1 %v112_v41  ;;  %v69_v62 = vld [vmem:[#allocation7] sm:$0xff]  ;;  %v71_v63 = vld [vmem:[#allocation7 + $0x10] sm:$0xff]  ;;  %v318_v0 = vld [vmem:[#allocation7 + $0x7c8] sm:$0xff] }
  0x3e   :  { %346 = vmatpush1.msra.mxu0 %v109_v42  ;;  %423 = vmatpush1.msra.mxu1 %v111_v43  ;;  %v320_v1 = vld [vmem:[#allocation7 + $0x7d8] sm:$0xff]  ;;  %v317_v2 = vld [vmem:[#allocation7 + $0x7c0] sm:$0xff]  ;;  %v319_v3 = vld [vmem:[#allocation7 + $0x7d0] sm:$0xff] }
  0x3f   :  { %347 = vmatprep.subr.mxu0 %v102_v44  ;;  %424 = vmatprep.subr.mxu1 %v104_v45  ;;  %v310_v4 = vld [vmem:[#allocation7 + $0x788] sm:$0xff]  ;;  %v312_v5 = vld [vmem:[#allocation7 + $0x798] sm:$0xff]  ;;  %v309_v6 = vld [vmem:[#allocation7 + $0x780] sm:$0xff] }
  0x40   :  { %348 = vmatpush1.msra.mxu0 %v101_v46  ;;  %425 = vmatpush1.msra.mxu1 %v103_v47  ;;  %v311_v7 = vld [vmem:[#allocation7 + $0x790] sm:$0xff]  ;;  %v302_v8 = vld [vmem:[#allocation7 + $0x748] sm:$0xff]  ;;  %v304_v9 = vld [vmem:[#allocation7 + $0x758] sm:$0xff] }
  0x41   :  { %349 = vmatprep.subr.mxu0 %v94_v48  ;;  %426 = vmatprep.subr.mxu1 %v96_v49  ;;  %v301_v10 = vld [vmem:[#allocation7 + $0x740] sm:$0xff]  ;;  %v303_v11 = vld [vmem:[#allocation7 + $0x750] sm:$0xff]  ;;  %v294_v12 = vld [vmem:[#allocation7 + $0x708] sm:$0xff] }
  0x42   :  { %350 = vmatpush1.msra.mxu0 %v93_v50  ;;  %427 = vmatpush1.msra.mxu1 %v95_v51  ;;  %v296_v13 = vld [vmem:[#allocation7 + $0x718] sm:$0xff]  ;;  %v293_v14 = vld [vmem:[#allocation7 + $0x700] sm:$0xff]  ;;  %v295_v15 = vld [vmem:[#allocation7 + $0x710] sm:$0xff] }
  0x43   :  { %351 = vmatprep.subr.mxu0 %v86_v52  ;;  %428 = vmatprep.subr.mxu1 %v88_v53  ;;  %v286_v16 = vld [vmem:[#allocation7 + $0x6c8] sm:$0xff]  ;;  %v288_v17 = vld [vmem:[#allocation7 + $0x6d8] sm:$0xff]  ;;  %v285_v18 = vld [vmem:[#allocation7 + $0x6c0] sm:$0xff] }
  0x44   :  { %352 = vmatpush1.msra.mxu0 %v85_v54  ;;  %429 = vmatpush1.msra.mxu1 %v87_v55  ;;  %v287_v19 = vld [vmem:[#allocation7 + $0x6d0] sm:$0xff]  ;;  %v278_v20 = vld [vmem:[#allocation7 + $0x688] sm:$0xff]  ;;  %v280_v21 = vld [vmem:[#allocation7 + $0x698] sm:$0xff] }
  0x45   :  { %353 = vmatprep.subr.mxu0 %v78_v56  ;;  %430 = vmatprep.subr.mxu1 %v80_v57  ;;  %v277_v22 = vld [vmem:[#allocation7 + $0x680] sm:$0xff]  ;;  %v279_v23 = vld [vmem:[#allocation7 + $0x690] sm:$0xff]  ;;  %v270_v24 = vld [vmem:[#allocation7 + $0x648] sm:$0xff] }
  0x46   :  { %354 = vmatpush1.msra.mxu0 %v77_v58  ;;  %431 = vmatpush1.msra.mxu1 %v79_v59  ;;  %v272_v25 = vld [vmem:[#allocation7 + $0x658] sm:$0xff]  ;;  %v269_v26 = vld [vmem:[#allocation7 + $0x640] sm:$0xff]  ;;  %v271_v27 = vld [vmem:[#allocation7 + $0x650] sm:$0xff] }
  0x47   :  { %355 = vmatprep.subr.mxu0 %v70_v60  ;;  %432 = vmatprep.subr.mxu1 %v72_v61  ;;  %v262_v28 = vld [vmem:[#allocation7 + $0x608] sm:$0xff]  ;;  %v264_v29 = vld [vmem:[#allocation7 + $0x618] sm:$0xff]  ;;  %v261_v30 = vld [vmem:[#allocation7 + $0x600] sm:$0xff] }
  0x48   :  { %356 = vmatpush1.msra.mxu0 %v69_v62  ;;  %433 = vmatpush1.msra.mxu1 %v71_v63  ;;  %v263_v31 = vld [vmem:[#allocation7 + $0x610] sm:$0xff]  ;;  %v254_v32 = vld [vmem:[#allocation7 + $0x5c8] sm:$0xff]  ;;  %v256_v33 = vld [vmem:[#allocation7 + $0x5d8] sm:$0xff] }
  0x49   :  { %357 = vmatprep.subr.mxu0 %v318_v0  ;;  %434 = vmatprep.subr.mxu1 %v320_v1  ;;  %v253_v34 = vld [vmem:[#allocation7 + $0x5c0] sm:$0xff]  ;;  %v255_v35 = vld [vmem:[#allocation7 + $0x5d0] sm:$0xff]  ;;  %v246_v36 = vld [vmem:[#allocation7 + $0x588] sm:$0xff] }
  0x4a   :  { %358 = vmatpush2.msra.mxu0 %v317_v2  ;;  %435 = vmatpush2.msra.mxu1 %v319_v3  ;;  %v248_v37 = vld [vmem:[#allocation7 + $0x598] sm:$0xff]  ;;  %v245_v38 = vld [vmem:[#allocation7 + $0x580] sm:$0xff]  ;;  %v247_v39 = vld [vmem:[#allocation7 + $0x590] sm:$0xff] }
  0x4b   :  { %359 = vmatprep.subr.mxu0 %v310_v4  ;;  %436 = vmatprep.subr.mxu1 %v312_v5  ;;  %v238_v40 = vld [vmem:[#allocation7 + $0x548] sm:$0xff]  ;;  %v240_v41 = vld [vmem:[#allocation7 + $0x558] sm:$0xff]  ;;  %v237_v42 = vld [vmem:[#allocation7 + $0x540] sm:$0xff] }
  0x4c   :  { %360 = vmatpush2.msra.mxu0 %v309_v6  ;;  %437 = vmatpush2.msra.mxu1 %v311_v7  ;;  %v239_v43 = vld [vmem:[#allocation7 + $0x550] sm:$0xff]  ;;  %v230_v44 = vld [vmem:[#allocation7 + $0x508] sm:$0xff]  ;;  %v232_v45 = vld [vmem:[#allocation7 + $0x518] sm:$0xff] }
  0x4d   :  { %361 = vmatprep.subr.mxu0 %v302_v8  ;;  %438 = vmatprep.subr.mxu1 %v304_v9  ;;  %v229_v46 = vld [vmem:[#allocation7 + $0x500] sm:$0xff]  ;;  %v231_v47 = vld [vmem:[#allocation7 + $0x510] sm:$0xff]  ;;  %v222_v48 = vld [vmem:[#allocation7 + $0x4c8] sm:$0xff] }
  0x4e   :  { %362 = vmatpush2.msra.mxu0 %v301_v10  ;;  %439 = vmatpush2.msra.mxu1 %v303_v11  ;;  %v224_v49 = vld [vmem:[#allocation7 + $0x4d8] sm:$0xff]  ;;  %v221_v50 = vld [vmem:[#allocation7 + $0x4c0] sm:$0xff]  ;;  %v223_v51 = vld [vmem:[#allocation7 + $0x4d0] sm:$0xff] }
  0x4f   :  { %363 = vmatprep.subr.mxu0 %v294_v12  ;;  %440 = vmatprep.subr.mxu1 %v296_v13  ;;  %v214_v52 = vld [vmem:[#allocation7 + $0x488] sm:$0xff]  ;;  %v216_v53 = vld [vmem:[#allocation7 + $0x498] sm:$0xff]  ;;  %v213_v54 = vld [vmem:[#allocation7 + $0x480] sm:$0xff] }
  0x50   :  { %364 = vmatpush2.msra.mxu0 %v293_v14  ;;  %441 = vmatpush2.msra.mxu1 %v295_v15  ;;  %v215_v55 = vld [vmem:[#allocation7 + $0x490] sm:$0xff]  ;;  %v206_v56 = vld [vmem:[#allocation7 + $0x448] sm:$0xff]  ;;  %v208_v57 = vld [vmem:[#allocation7 + $0x458] sm:$0xff] }
  0x51   :  { %365 = vmatprep.subr.mxu0 %v286_v16  ;;  %442 = vmatprep.subr.mxu1 %v288_v17  ;;  %v205_v58 = vld [vmem:[#allocation7 + $0x440] sm:$0xff]  ;;  %v207_v59 = vld [vmem:[#allocation7 + $0x450] sm:$0xff]  ;;  %v198_v60 = vld [vmem:[#allocation7 + $0x408] sm:$0xff] }
  0x52   :  { %366 = vmatpush2.msra.mxu0 %v285_v18  ;;  %443 = vmatpush2.msra.mxu1 %v287_v19  ;;  %v200_v61 = vld [vmem:[#allocation7 + $0x418] sm:$0xff]  ;;  %v197_v62 = vld [vmem:[#allocation7 + $0x400] sm:$0xff]  ;;  %v2744_v63 = vld [vmem:[#allocation4 + $0x8] sm:$0xff] }
  0x53   :  { %367 = vmatprep.subr.mxu0 %v278_v20  ;;  %444 = vmatprep.subr.mxu1 %v280_v21  ;;  %v199_v0 = vld [vmem:[#allocation7 + $0x410] sm:$0xff]  ;;  %v2746_v1 = vld [vmem:[#allocation4] sm:$0xff]  ;;  %v2749_v2 = vld [vmem:[#allocation4 + $0x18] sm:$0xff] }
  0x54   :  { %368 = vmatpush2.msra.mxu0 %v277_v22  ;;  %445 = vmatpush2.msra.mxu1 %v279_v23  ;;  %v194_v3 = vld [vmem:[#allocation7 + $0x3e8] sm:$0xff]  ;;  %v193_v4 = vld [vmem:[#allocation7 + $0x3e0] sm:$0xff]  ;;  %v196_v6 = vld [vmem:[#allocation7 + $0x3f8] sm:$0xff] }
  0x55   :  { %369 = vmatprep.subr.mxu0 %v270_v24  ;;  %446 = vmatprep.subr.mxu1 %v272_v25  ;;  %v186_v5 = vld [vmem:[#allocation7 + $0x3a8] sm:$0xff]  ;;  %v2755_v7 = vld [vmem:[#allocation4 + $0x10] sm:$0xff]  ;;  %v185_v8 = vld [vmem:[#allocation7 + $0x3a0] sm:$0xff] }
  0x56   :  { %370 = vmatpush2.msra.mxu0 %v269_v26  ;;  %447 = vmatpush2.msra.mxu1 %v271_v27  ;;  %v195_v9 = vld [vmem:[#allocation7 + $0x3f0] sm:$0xff]  ;;  %v178_v10 = vld [vmem:[#allocation7 + $0x368] sm:$0xff]  ;;  %v188_v11 = vld [vmem:[#allocation7 + $0x3b8] sm:$0xff] }
  0x57   :  { %371 = vmatprep.subr.mxu0 %v262_v28  ;;  %448 = vmatprep.subr.mxu1 %v264_v29  ;;  %v177_v12 = vld [vmem:[#allocation7 + $0x360] sm:$0xff]  ;;  %v187_v13 = vld [vmem:[#allocation7 + $0x3b0] sm:$0xff]  ;;  %v170_v14 = vld [vmem:[#allocation7 + $0x328] sm:$0xff] }
  0x58   :  { %372 = vmatpush2.msra.mxu0 %v261_v30  ;;  %449 = vmatpush2.msra.mxu1 %v263_v31  ;;  %v180_v15 = vld [vmem:[#allocation7 + $0x378] sm:$0xff]  ;;  %v169_v16 = vld [vmem:[#allocation7 + $0x320] sm:$0xff]  ;;  %v179_v17 = vld [vmem:[#allocation7 + $0x370] sm:$0xff] }
  0x59   :  { %373 = vmatprep.subr.mxu0 %v254_v32  ;;  %450 = vmatprep.subr.mxu1 %v256_v33  ;;  %v162_v18 = vld [vmem:[#allocation7 + $0x2e8] sm:$0xff]  ;;  %v172_v19 = vld [vmem:[#allocation7 + $0x338] sm:$0xff]  ;;  %v161_v20 = vld [vmem:[#allocation7 + $0x2e0] sm:$0xff] }
  0x5a   :  { %374 = vmatpush2.msra.mxu0 %v253_v34  ;;  %451 = vmatpush2.msra.mxu1 %v255_v35  ;;  %v171_v21 = vld [vmem:[#allocation7 + $0x330] sm:$0xff]  ;;  %v154_v22 = vld [vmem:[#allocation7 + $0x2a8] sm:$0xff]  ;;  %v164_v23 = vld [vmem:[#allocation7 + $0x2f8] sm:$0xff] }
  0x5b   :  { %375 = vmatprep.subr.mxu0 %v246_v36  ;;  %452 = vmatprep.subr.mxu1 %v248_v37  ;;  %v153_v24 = vld [vmem:[#allocation7 + $0x2a0] sm:$0xff]  ;;  %v163_v25 = vld [vmem:[#allocation7 + $0x2f0] sm:$0xff]  ;;  %v146_v26 = vld [vmem:[#allocation7 + $0x268] sm:$0xff] }
  0x5c   :  { %376 = vmatpush2.msra.mxu0 %v245_v38  ;;  %453 = vmatpush2.msra.mxu1 %v247_v39  ;;  %v156_v27 = vld [vmem:[#allocation7 + $0x2b8] sm:$0xff]  ;;  %v145_v28 = vld [vmem:[#allocation7 + $0x260] sm:$0xff]  ;;  %v155_v29 = vld [vmem:[#allocation7 + $0x2b0] sm:$0xff] }
  0x5d   :  { %377 = vmatprep.subr.mxu0 %v238_v40  ;;  %454 = vmatprep.subr.mxu1 %v240_v41  ;;  %v138_v30 = vld [vmem:[#allocation7 + $0x228] sm:$0xff]  ;;  %v148_v31 = vld [vmem:[#allocation7 + $0x278] sm:$0xff]  ;;  %v137_v32 = vld [vmem:[#allocation7 + $0x220] sm:$0xff] }
  0x5e   :  { %378 = vmatpush2.msra.mxu0 %v237_v42  ;;  %455 = vmatpush2.msra.mxu1 %v239_v43  ;;  %v147_v33 = vld [vmem:[#allocation7 + $0x270] sm:$0xff]  ;;  %v130_v34 = vld [vmem:[#allocation7 + $0x1e8] sm:$0xff]  ;;  %v140_v35 = vld [vmem:[#allocation7 + $0x238] sm:$0xff] }
  0x5f   :  { %379 = vmatprep.subr.mxu0 %v230_v44  ;;  %456 = vmatprep.subr.mxu1 %v232_v45  ;;  %v129_v36 = vld [vmem:[#allocation7 + $0x1e0] sm:$0xff]  ;;  %v139_v37 = vld [vmem:[#allocation7 + $0x230] sm:$0xff]  ;;  %v122_v38 = vld [vmem:[#allocation7 + $0x1a8] sm:$0xff] }
  0x60   :  { %380 = vmatpush2.msra.mxu0 %v229_v46  ;;  %457 = vmatpush2.msra.mxu1 %v231_v47  ;;  %v132_v39 = vld [vmem:[#allocation7 + $0x1f8] sm:$0xff]  ;;  %v121_v40 = vld [vmem:[#allocation7 + $0x1a0] sm:$0xff]  ;;  %v131_v41 = vld [vmem:[#allocation7 + $0x1f0] sm:$0xff] }
  0x61   :  { %381 = vmatprep.subr.mxu0 %v222_v48  ;;  %458 = vmatprep.subr.mxu1 %v224_v49  ;;  %v114_v42 = vld [vmem:[#allocation7 + $0x168] sm:$0xff]  ;;  %v124_v43 = vld [vmem:[#allocation7 + $0x1b8] sm:$0xff]  ;;  %v113_v44 = vld [vmem:[#allocation7 + $0x160] sm:$0xff] }
  0x62   :  { %382 = vmatpush2.msra.mxu0 %v221_v50  ;;  %459 = vmatpush2.msra.mxu1 %v223_v51  ;;  %v123_v45 = vld [vmem:[#allocation7 + $0x1b0] sm:$0xff]  ;;  %v106_v46 = vld [vmem:[#allocation7 + $0x128] sm:$0xff]  ;;  %v116_v47 = vld [vmem:[#allocation7 + $0x178] sm:$0xff] }
  0x63   :  { %383 = vmatprep.subr.mxu0 %v214_v52  ;;  %460 = vmatprep.subr.mxu1 %v216_v53  ;;  %v105_v48 = vld [vmem:[#allocation7 + $0x120] sm:$0xff]  ;;  %v115_v49 = vld [vmem:[#allocation7 + $0x170] sm:$0xff]  ;;  %v98_v50 = vld [vmem:[#allocation7 + $0xe8] sm:$0xff] }
  0x64   :  { %384 = vmatpush2.msra.mxu0 %v213_v54  ;;  %461 = vmatpush2.msra.mxu1 %v215_v55  ;;  %v108_v51 = vld [vmem:[#allocation7 + $0x138] sm:$0xff]  ;;  %v97_v52 = vld [vmem:[#allocation7 + $0xe0] sm:$0xff]  ;;  %v107_v53 = vld [vmem:[#allocation7 + $0x130] sm:$0xff] }
  0x65   :  { %385 = vmatprep.subr.mxu0 %v206_v56  ;;  %462 = vmatprep.subr.mxu1 %v208_v57  ;;  %v90_v54 = vld [vmem:[#allocation7 + $0xa8] sm:$0xff]  ;;  %v100_v55 = vld [vmem:[#allocation7 + $0xf8] sm:$0xff]  ;;  %v89_v56 = vld [vmem:[#allocation7 + $0xa0] sm:$0xff] }
  0x66   :  { %386 = vmatpush2.msra.mxu0 %v205_v58  ;;  %463 = vmatpush2.msra.mxu1 %v207_v59  ;;  %v99_v57 = vld [vmem:[#allocation7 + $0xf0] sm:$0xff]  ;;  %v82_v58 = vld [vmem:[#allocation7 + $0x68] sm:$0xff]  ;;  %v92_v59 = vld [vmem:[#allocation7 + $0xb8] sm:$0xff] }
  0x67   :  { %387 = vmatprep.subr.mxu0 %v198_v60  ;;  %464 = vmatprep.subr.mxu1 %v200_v61  ;;  %v81_v60 = vld [vmem:[#allocation7 + $0x60] sm:$0xff]  ;;  %v91_v61 = vld [vmem:[#allocation7 + $0xb0] sm:$0xff] }
  0x68   :  { %388 = vmatpush2.msra.mxu0 %v197_v62  ;;  %389 = vmatprep.mubr.f32.mxu0 %v2744_v63  ;;  %v74_v62 = vld [vmem:[#allocation7 + $0x28] sm:$0xff] }
  0x69   :  { %465 = vmatpush2.msra.mxu1 %v199_v0  ;;  %466 = vmatprep.mubr.f32.mxu1 %v2744_v63  ;;  %v84_v0 = vld [vmem:[#allocation7 + $0x78] sm:$0xff] }
  0x6a   :  { %390 = vmatmul.mubr.f32.vlgmr.msra.gmra.mxu0 %v2746_v1  ;;  %467 = vmatmul.mubr.f32.vlgmr.msra.gmra.mxu1 %v2746_v1 }
  0x6b   :  { %395 = vmatprep.mubr.f32.mxu0 %v2749_v2  ;;  %479 = vmatprep.subr.mxu0 %v194_v3  ;;  %v73_v3 = vld [vmem:[#allocation7 + $0x20] sm:$0xff] }
  0x6c   :  { %480 = vmatpush1.msra.mxu0 %v193_v4  ;;  %472 = vmatprep.mubr.f32.mxu1 %v2749_v2  ;;  %v83_v4 = vld [vmem:[#allocation7 + $0x70] sm:$0xff] }
  0x6d   :  { %481 = vmatprep.subr.mxu0 %v186_v5  ;;  %556 = vmatprep.subr.mxu1 %v196_v6  ;;  %v322_v5 = vld [vmem:[#allocation7 + $0x7e8] sm:$0xff]  ;;  %v76_v6 = vld [vmem:[#allocation7 + $0x38] sm:$0xff] }
  0x6e   :  { %396 = vmatmul.mubr.f32.gmra.mxu0 %v2755_v7  ;;  %473 = vmatmul.mubr.f32.gmra.mxu1 %v2755_v7 }
  0x6f   :  { %482 = vmatpush1.msra.mxu0 %v185_v8  ;;  %557 = vmatpush1.msra.mxu1 %v195_v9  ;;  %v321_v8 = vld [vmem:[#allocation7 + $0x7e0] sm:$0xff]  ;;  %v75_v9 = vld [vmem:[#allocation7 + $0x30] sm:$0xff] }
  0x70   :  { %483 = vmatprep.subr.mxu0 %v178_v10  ;;  %558 = vmatprep.subr.mxu1 %v188_v11  ;;  %v314_v10 = vld [vmem:[#allocation7 + $0x7a8] sm:$0xff]  ;;  %v324_v11 = vld [vmem:[#allocation7 + $0x7f8] sm:$0xff] }
  0x71   :  { %484 = vmatpush1.msra.mxu0 %v177_v12  ;;  %559 = vmatpush1.msra.mxu1 %v187_v13  ;;  %v313_v12 = vld [vmem:[#allocation7 + $0x7a0] sm:$0xff]  ;;  %v323_v13 = vld [vmem:[#allocation7 + $0x7f0] sm:$0xff] }
  0x72   :  { %485 = vmatprep.subr.mxu0 %v170_v14  ;;  %560 = vmatprep.subr.mxu1 %v180_v15  ;;  %v306_v14 = vld [vmem:[#allocation7 + $0x768] sm:$0xff]  ;;  %v316_v15 = vld [vmem:[#allocation7 + $0x7b8] sm:$0xff] }
  0x73   :  { %486 = vmatpush1.msra.mxu0 %v169_v16  ;;  %561 = vmatpush1.msra.mxu1 %v179_v17  ;;  %v305_v16 = vld [vmem:[#allocation7 + $0x760] sm:$0xff]  ;;  %v315_v17 = vld [vmem:[#allocation7 + $0x7b0] sm:$0xff] }
  0x74   :  { %487 = vmatprep.subr.mxu0 %v162_v18  ;;  %562 = vmatprep.subr.mxu1 %v172_v19  ;;  %v298_v18 = vld [vmem:[#allocation7 + $0x728] sm:$0xff]  ;;  %v308_v19 = vld [vmem:[#allocation7 + $0x778] sm:$0xff] }
  0x75   :  { %488 = vmatpush1.msra.mxu0 %v161_v20  ;;  %563 = vmatpush1.msra.mxu1 %v171_v21  ;;  %v297_v20 = vld [vmem:[#allocation7 + $0x720] sm:$0xff]  ;;  %v307_v21 = vld [vmem:[#allocation7 + $0x770] sm:$0xff] }
  0x76   :  { %489 = vmatprep.subr.mxu0 %v154_v22  ;;  %564 = vmatprep.subr.mxu1 %v164_v23  ;;  %v290_v22 = vld [vmem:[#allocation7 + $0x6e8] sm:$0xff]  ;;  %v300_v23 = vld [vmem:[#allocation7 + $0x738] sm:$0xff] }
  0x77   :  { %490 = vmatpush1.msra.mxu0 %v153_v24  ;;  %565 = vmatpush1.msra.mxu1 %v163_v25  ;;  %v289_v24 = vld [vmem:[#allocation7 + $0x6e0] sm:$0xff]  ;;  %v299_v25 = vld [vmem:[#allocation7 + $0x730] sm:$0xff] }
  0x78   :  { %491 = vmatprep.subr.mxu0 %v146_v26  ;;  %566 = vmatprep.subr.mxu1 %v156_v27  ;;  %v282_v26 = vld [vmem:[#allocation7 + $0x6a8] sm:$0xff]  ;;  %v292_v27 = vld [vmem:[#allocation7 + $0x6f8] sm:$0xff] }
  0x79   :  { %492 = vmatpush1.msra.mxu0 %v145_v28  ;;  %567 = vmatpush1.msra.mxu1 %v155_v29  ;;  %v281_v28 = vld [vmem:[#allocation7 + $0x6a0] sm:$0xff]  ;;  %v291_v29 = vld [vmem:[#allocation7 + $0x6f0] sm:$0xff] }
  0x7a   :  { %493 = vmatprep.subr.mxu0 %v138_v30  ;;  %568 = vmatprep.subr.mxu1 %v148_v31  ;;  %v274_v30 = vld [vmem:[#allocation7 + $0x668] sm:$0xff]  ;;  %v284_v31 = vld [vmem:[#allocation7 + $0x6b8] sm:$0xff] }
  0x7b   :  { %494 = vmatpush1.msra.mxu0 %v137_v32  ;;  %569 = vmatpush1.msra.mxu1 %v147_v33  ;;  %v273_v32 = vld [vmem:[#allocation7 + $0x660] sm:$0xff]  ;;  %v283_v33 = vld [vmem:[#allocation7 + $0x6b0] sm:$0xff] }
  0x7c   :  { %495 = vmatprep.subr.mxu0 %v130_v34  ;;  %570 = vmatprep.subr.mxu1 %v140_v35  ;;  %v266_v34 = vld [vmem:[#allocation7 + $0x628] sm:$0xff]  ;;  %v276_v35 = vld [vmem:[#allocation7 + $0x678] sm:$0xff] }
  0x7d   :  { %496 = vmatpush1.msra.mxu0 %v129_v36  ;;  %571 = vmatpush1.msra.mxu1 %v139_v37  ;;  %v265_v36 = vld [vmem:[#allocation7 + $0x620] sm:$0xff]  ;;  %v275_v37 = vld [vmem:[#allocation7 + $0x670] sm:$0xff] }
  0x7e   :  { %497 = vmatprep.subr.mxu0 %v122_v38  ;;  %572 = vmatprep.subr.mxu1 %v132_v39  ;;  %v258_v38 = vld [vmem:[#allocation7 + $0x5e8] sm:$0xff]  ;;  %v268_v39 = vld [vmem:[#allocation7 + $0x638] sm:$0xff] }
  0x7f   :  { %498 = vmatpush1.msra.mxu0 %v121_v40  ;;  %573 = vmatpush1.msra.mxu1 %v131_v41  ;;  %v257_v40 = vld [vmem:[#allocation7 + $0x5e0] sm:$0xff]  ;;  %v267_v41 = vld [vmem:[#allocation7 + $0x630] sm:$0xff] }
  0x80   :  { %499 = vmatprep.subr.mxu0 %v114_v42  ;;  %574 = vmatprep.subr.mxu1 %v124_v43  ;;  %v250_v42 = vld [vmem:[#allocation7 + $0x5a8] sm:$0xff]  ;;  %v260_v43 = vld [vmem:[#allocation7 + $0x5f8] sm:$0xff] }
  0x81   :  { %500 = vmatpush1.msra.mxu0 %v113_v44  ;;  %575 = vmatpush1.msra.mxu1 %v123_v45  ;;  %v249_v44 = vld [vmem:[#allocation7 + $0x5a0] sm:$0xff]  ;;  %v259_v45 = vld [vmem:[#allocation7 + $0x5f0] sm:$0xff] }
  0x82   :  { %501 = vmatprep.subr.mxu0 %v106_v46  ;;  %576 = vmatprep.subr.mxu1 %v116_v47  ;;  %v242_v46 = vld [vmem:[#allocation7 + $0x568] sm:$0xff]  ;;  %v252_v47 = vld [vmem:[#allocation7 + $0x5b8] sm:$0xff] }
  0x83   :  { %502 = vmatpush1.msra.mxu0 %v105_v48  ;;  %577 = vmatpush1.msra.mxu1 %v115_v49  ;;  %v241_v48 = vld [vmem:[#allocation7 + $0x560] sm:$0xff]  ;;  %v251_v49 = vld [vmem:[#allocation7 + $0x5b0] sm:$0xff] }
  0x84   :  { %503 = vmatprep.subr.mxu0 %v98_v50  ;;  %578 = vmatprep.subr.mxu1 %v108_v51  ;;  %v234_v50 = vld [vmem:[#allocation7 + $0x528] sm:$0xff]  ;;  %v244_v51 = vld [vmem:[#allocation7 + $0x578] sm:$0xff] }
  0x85   :  { %504 = vmatpush1.msra.mxu0 %v97_v52  ;;  %579 = vmatpush1.msra.mxu1 %v107_v53  ;;  %v233_v52 = vld [vmem:[#allocation7 + $0x520] sm:$0xff]  ;;  %v226_v53 = vld [vmem:[#allocation7 + $0x4e8] sm:$0xff] }
  0x86   :  { %505 = vmatprep.subr.mxu0 %v90_v54  ;;  %580 = vmatprep.subr.mxu1 %v100_v55  ;;  %v243_v54 = vld [vmem:[#allocation7 + $0x570] sm:$0xff]  ;;  %v225_v55 = vld [vmem:[#allocation7 + $0x4e0] sm:$0xff] }
  0x87   :  { %506 = vmatpush1.msra.mxu0 %v89_v56  ;;  %581 = vmatpush1.msra.mxu1 %v99_v57  ;;  %v236_v56 = vld [vmem:[#allocation7 + $0x538] sm:$0xff]  ;;  %v218_v57 = vld [vmem:[#allocation7 + $0x4a8] sm:$0xff] }
  0x88   :  { %507 = vmatprep.subr.mxu0 %v82_v58  ;;  %582 = vmatprep.subr.mxu1 %v92_v59  ;;  %v235_v58 = vld [vmem:[#allocation7 + $0x530] sm:$0xff]  ;;  %v217_v59 = vld [vmem:[#allocation7 + $0x4a0] sm:$0xff] }
  0x89   :  { %508 = vmatpush1.msra.mxu0 %v81_v60  ;;  %583 = vmatpush1.msra.mxu1 %v91_v61  ;;  %v228_v60 = vld [vmem:[#allocation7 + $0x4f8] sm:$0xff]  ;;  %v210_v61 = vld [vmem:[#allocation7 + $0x468] sm:$0xff] }
  0x8a   :  { %509 = vmatprep.subr.mxu0 %v74_v62  ;;  %584 = vmatprep.subr.mxu1 %v84_v0  ;;  %v227_v62 = vld [vmem:[#allocation7 + $0x4f0] sm:$0xff]  ;;  %v209_v0 = vld [vmem:[#allocation7 + $0x460] sm:$0xff] }
  0x8b   :  { %510 = vmatpush1.msra.mxu0 %v73_v3  ;;  %585 = vmatpush1.msra.mxu1 %v83_v4  ;;  %v220_v3 = vld [vmem:[#allocation7 + $0x4b8] sm:$0xff]  ;;  %v202_v4 = vld [vmem:[#allocation7 + $0x428] sm:$0xff] }
  0x8c   :  { %511 = vmatprep.subr.mxu0 %v322_v5  ;;  %586 = vmatprep.subr.mxu1 %v76_v6  ;;  %v219_v5 = vld [vmem:[#allocation7 + $0x4b0] sm:$0xff]  ;;  %v201_v6 = vld [vmem:[#allocation7 + $0x420] sm:$0xff] }
  0x8d   :  { %512 = vmatpush2.msra.mxu0 %v321_v8  ;;  %587 = vmatpush1.msra.mxu1 %v75_v9  ;;  %v212_v8 = vld [vmem:[#allocation7 + $0x478] sm:$0xff]  ;;  %v211_v9 = vld [vmem:[#allocation7 + $0x470] sm:$0xff] }
  0x8e   :  { %513 = vmatprep.subr.mxu0 %v314_v10  ;;  %588 = vmatprep.subr.mxu1 %v324_v11  ;;  %v204_v10 = vld [vmem:[#allocation7 + $0x438] sm:$0xff]  ;;  %v203_v11 = vld [vmem:[#allocation7 + $0x430] sm:$0xff] }
  0x8f   :  { %514 = vmatpush2.msra.mxu0 %v313_v12  ;;  %589 = vmatpush2.msra.mxu1 %v323_v13 }
  0x90   :  { %515 = vmatprep.subr.mxu0 %v306_v14  ;;  %590 = vmatprep.subr.mxu1 %v316_v15 }
  0x91   :  { %516 = vmatpush2.msra.mxu0 %v305_v16  ;;  %591 = vmatpush2.msra.mxu1 %v315_v17 }
  0x92   :  { %517 = vmatprep.subr.mxu0 %v298_v18  ;;  %592 = vmatprep.subr.mxu1 %v308_v19 }
  0x93   :  { %518 = vmatpush2.msra.mxu0 %v297_v20  ;;  %593 = vmatpush2.msra.mxu1 %v307_v21 }
  0x94   :  { %519 = vmatprep.subr.mxu0 %v290_v22  ;;  %594 = vmatprep.subr.mxu1 %v300_v23 }
  0x95   :  { %520 = vmatpush2.msra.mxu0 %v289_v24  ;;  %595 = vmatpush2.msra.mxu1 %v299_v25 }
  0x96   :  { %521 = vmatprep.subr.mxu0 %v282_v26  ;;  %596 = vmatprep.subr.mxu1 %v292_v27 }
  0x97   :  { %522 = vmatpush2.msra.mxu0 %v281_v28  ;;  %597 = vmatpush2.msra.mxu1 %v291_v29 }
  0x98   :  { %523 = vmatprep.subr.mxu0 %v274_v30  ;;  %598 = vmatprep.subr.mxu1 %v284_v31 }
  0x99   :  { %524 = vmatpush2.msra.mxu0 %v273_v32  ;;  %599 = vmatpush2.msra.mxu1 %v283_v33  ;;  %v681_v32 = vlaneseq }
  0x9a   :  { %525 = vmatprep.subr.mxu0 %v266_v34  ;;  %600 = vmatprep.subr.mxu1 %v276_v35 }
  0x9b   :  { %526 = vmatpush2.msra.mxu0 %v265_v36  ;;  %601 = vmatpush2.msra.mxu1 %v275_v37  ;;  %v2962_v35 = vshrl.u32 %v681_v32, 7  ;;  %v2964_v36 = vand.u32 127, %v681_v32 }
  0x9c   :  { %527 = vmatprep.subr.mxu0 %v258_v38  ;;  %602 = vmatprep.subr.mxu1 %v268_v39 }
  0x9d   :  { %528 = vmatpush2.msra.mxu0 %v257_v40  ;;  %603 = vmatpush2.msra.mxu1 %v267_v41  ;;  %v2971_v37 = vsub.s32 7, %v2962_v35  ;;  %v2976_v40 = vsub.s32 6, %v2962_v35  ;;  %v2978_v41 = vld [vmem:[#allocation9] sm:$0xff]  ;;  %vm1426_vm0 = vcmp.lt.s32.totalorder %v2964_v36, 96  ;;  %vm1539_vm1 = vcmp.lt.s32.totalorder %v2964_v36, 95 }
  0x9e   :  { %529 = vmatprep.subr.mxu0 %v250_v42  ;;  %604 = vmatprep.subr.mxu1 %v260_v43  ;;  %v2990_v43 = vld [vmem:[#allocation9 + $0x40] ss:$0 sm:$0xff]  ;;  %vm1200_vm2 = vcmp.lt.s32.totalorder %v2964_v36, 127  ;;  %vm1313_vm3 = vcmp.lt.s32.totalorder %v2964_v36, 97  ;;  %vm1023_vm4 = vcmp.lt.s32.totalorder %v2964_v36, 1  ;;  %vm797_vm5 = vcmp.lt.s32.totalorder %v2964_v36, 32 }
  0x9f   :  { %530 = vmatpush2.msra.mxu0 %v249_v44  ;;  %605 = vmatpush2.msra.mxu1 %v259_v45  ;;  %v2988_v42 = vrot.slane %v2978_v41, %v2971_v37  ;;  %v2992_v44 = vld [vmem:[#allocation9 + $0x48] ss:$0 sm:$0xff]  ;;  %vm683_vm6 = vcmp.lt.s32.totalorder %v2964_v36, 33  ;;  %vm910_vm7 = vcmp.lt.s32.totalorder %v2964_v36, 31 }
  0xa0   :  { %531 = vmatprep.subr.mxu0 %v242_v46  ;;  %606 = vmatprep.subr.mxu1 %v252_v47  ;;  %v2994_v45 = vld [vmem:[#allocation9 + $0x8] sm:$0xff]  ;;  %v2997_v46 = vsub.s32 4, %v2962_v35  ;;  %v3001_v47 = vsub.s32 5, %v2962_v35 }
  0xa1   :  { %532 = vmatpush2.msra.mxu0 %v241_v48  ;;  %607 = vmatpush2.msra.mxu1 %v251_v49 }
  0xa2   :  { %533 = vmatprep.subr.mxu0 %v234_v50  ;;  %608 = vmatprep.subr.mxu1 %v244_v51  ;;  %v3007_v50 = vrot.slane %v2978_v41, %v2976_v40  ;;  %v3011_v51 = vrot.slane %v2994_v45, %v2971_v37 }
  0xa3   :  { %534 = vmatpush2.msra.mxu0 %v233_v52  ;;  %543 = vmatprep.mubr.f32.mxu0 %v2744_v63 }
  0xa4   :  { %535 = vmatprep.subr.mxu0 %v226_v53  ;;  %609 = vmatpush2.msra.mxu1 %v243_v54 }
  0xa5   :  { %536 = vmatpush2.msra.mxu0 %v225_v55  ;;  %610 = vmatprep.subr.mxu1 %v236_v56  ;;  %v3024_v55 = vrot.slane %v2994_v45, %v2976_v40 }
  0xa6   :  { %537 = vmatprep.subr.mxu0 %v218_v57  ;;  %611 = vmatpush2.msra.mxu1 %v235_v58 }
  0xa7   :  { %538 = vmatpush2.msra.mxu0 %v217_v59  ;;  %612 = vmatprep.subr.mxu1 %v228_v60  ;;  %v3038_v59 = vrot.slane %v2994_v45, %v2997_v46  ;;  %v3042_v60 = vrot.slane %v2978_v41, %v3001_v47 }
  0xa8   :  { %539 = vmatprep.subr.mxu0 %v210_v61  ;;  %613 = vmatpush2.msra.mxu1 %v227_v62  ;;  %v3045_v61 = vsub.s32 3, %v2962_v35 }
  0xa9   :  { %540 = vmatpush2.msra.mxu0 %v209_v0  ;;  %614 = vmatprep.subr.mxu1 %v220_v3  ;;  %4428 = vst [vmem:[#allocation24_spill] sm:$0xff] %v3038_v59 }
  0xaa   :  { %541 = vmatprep.subr.mxu0 %v202_v4  ;;  %615 = vmatpush2.msra.mxu1 %v219_v5  ;;  %v3052_v4 = vrot.slane %v2994_v45, %v3001_v47 }
  0xab   :  { %542 = vmatpush2.msra.mxu0 %v201_v6  ;;  %616 = vmatprep.subr.mxu1 %v212_v8 }
  0xac   :  { %544 = vmatmul.mubr.f32.vlgmr.msra.gmra.mxu0 %v2746_v1  ;;  %617 = vmatpush2.msra.mxu1 %v211_v9 }
  0xad   :  { %618 = vmatprep.subr.mxu1 %v204_v10  ;;  %620 = vmatprep.mubr.f32.mxu1 %v2744_v63 }
  0xae   :  { %619 = vmatpush2.msra.mxu1 %v203_v11  ;;  %549 = vmatprep.mubr.f32.mxu0 %v2749_v2 }
  0xaf   :  { %621 = vmatmul.mubr.f32.vlgmr.msra.gmra.mxu1 %v2746_v1 }
  0xb0   :  { %550 = vmatmul.mubr.f32.gmra.mxu0 %v2755_v7  ;;  %626 = vmatprep.mubr.f32.mxu1 %v2749_v2 }
  0xb3   :  { %627 = vmatmul.mubr.f32.gmra.mxu1 %v2755_v7 }
 0x12a   :  { %v2768_v12 = vpop.f32.mrf.mxu0  ;;  %v2770_v13 = vpop.f32.mrf.mxu1 }
 0x12b   :  { %1515 = vrot.lane.b32.xlu0 %v2770_v13, %s2683_s0  ;;  %1507 = vrot.lane.b32.xlu1 %v2768_v12, %s2683_s0 }
 0x12c   :  { %v2800_v63 = vpop.f32.mrf.mxu0  ;;  %v2810_v1 = vpop.f32.mrf.mxu1 }
 0x12e   :  { %v2836_v2 = vpop.f32.mrf.mxu0  ;;  %v2846_v7 = vpop.f32.mrf.mxu1 }
 0x12f   :  { %1402 = vrot.lane.b32.xlu0 %v2770_v13, %s2684_s3  ;;  %1394 = vrot.lane.b32.xlu1 %v2768_v12, %s2684_s3  ;;  %4418 = vst [vmem:[#allocation14_spill] sm:$0xff] %v2836_v2  ;;  %4419 = vst [vmem:[#allocation15_spill] sm:$0xff] %v2846_v7 }
 0x130   :  { %v2868_v14 = vpop.f32.mrf.mxu0  ;;  %v2882_v15 = vpop.f32.mrf.mxu1 }
 0x131   :  { %4420 = vst [vmem:[#allocation16_spill] sm:$0xff] %v2868_v14  ;;  %4421 = vst [vmem:[#allocation17_spill] sm:$0xff] %v2882_v15 }
 0x133   :  { %1281 = vrot.lane.b32.xlu0 %v2768_v12, %s2685_s15  ;;  %1289 = vrot.lane.b32.xlu1 %v2770_v13, %s2685_s15 }
 0x137   :  { %1176 = vrot.lane.b32.xlu0 %v2770_v13, %s2686_s16  ;;  %1168 = vrot.lane.b32.xlu1 %v2768_v12, %s2686_s16 }
 0x13b   :  { %991 = vrot.lane.b32.xlu0 %v2768_v12, %s2687_s17  ;;  %878 = vrot.lane.b32.xlu1 %v2768_v12, %s2688_s18 }
 0x13f   :  { %765 = vrot.lane.b32.xlu0 %v2768_v12, %s2689_s19  ;;  %649 = vrot.lane.b32.xlu1 %v2768_v12, %s2690_s20 }
 0x143   :  { %999 = vrot.lane.b32.xlu0 %v2770_v13, %s2687_s17  ;;  %886 = vrot.lane.b32.xlu1 %v2770_v13, %s2688_s18 }
 0x147   :  { %773 = vrot.lane.b32.xlu0 %v2770_v13, %s2689_s19  ;;  %1398 = vrot.lane.b32.xlu1 %v2800_v63, %s2684_s3 }
 0x14b   :  { %657 = vrot.lane.b32.xlu0 %v2770_v13, %s2690_s20  ;;  %1172 = vrot.lane.b32.xlu1 %v2800_v63, %s2686_s16 }
 0x14f   :  { %1406 = vrot.lane.b32.xlu1 %v2810_v1, %s2684_s3  ;;  %1511 = vrot.lane.b32.xlu0 %v2800_v63, %s2683_s0 }
 0x153   :  { %995 = vrot.lane.b32.xlu1 %v2800_v63, %s2687_s17  ;;  %1285 = vrot.lane.b32.xlu0 %v2800_v63, %s2685_s15 }
 0x157   :  { %769 = vrot.lane.b32.xlu1 %v2800_v63, %s2689_s19  ;;  %1519 = vrot.lane.b32.xlu0 %v2810_v1, %s2683_s0 }
 0x15b   :  { %1003 = vrot.lane.b32.xlu1 %v2810_v1, %s2687_s17  ;;  %1293 = vrot.lane.b32.xlu0 %v2810_v1, %s2685_s15 }
 0x15f   :  { %777 = vrot.lane.b32.xlu1 %v2810_v1, %s2689_s19  ;;  %1180 = vrot.lane.b32.xlu0 %v2810_v1, %s2686_s16 }
 0x163   :  { %661 = vrot.lane.b32.xlu1 %v2810_v1, %s2690_s20  ;;  %882 = vrot.lane.b32.xlu0 %v2800_v63, %s2688_s18 }
 0x167   :  { %653 = vrot.lane.b32.xlu0 %v2800_v63, %s2690_s20  ;;  %1509 = vrot.lane.b32.xlu1 %v2836_v2, %s2683_s0 }
 0x16b   :  { %890 = vrot.lane.b32.xlu0 %v2810_v1, %s2688_s18  ;;  %1396 = vrot.lane.b32.xlu1 %v2836_v2, %s2684_s3 }
 0x16c   :  { %v2916_v20 = vpop.f32.mrf.mxu0 }
 0x16d   :  { %4424 = vst [vmem:[#allocation20_spill] sm:$0xff] %v2916_v20 }
 0x16f   :  { %1517 = vrot.lane.b32.xlu0 %v2846_v7, %s2683_s0  ;;  %1291 = vrot.lane.b32.xlu1 %v2846_v7, %s2685_s15  ;;  %v2946_v29 = vpop.f32.mrf.mxu1 }
 0x170   :  { %4427 = vst [vmem:[#allocation23_spill] sm:$0xff] %v2946_v29 }
 0x173   :  { %1404 = vrot.lane.b32.xlu0 %v2846_v7, %s2684_s3  ;;  %1170 = vrot.lane.b32.xlu1 %v2836_v2, %s2686_s16 }
 0x177   :  { %1283 = vrot.lane.b32.xlu0 %v2836_v2, %s2685_s15  ;;  %880 = vrot.lane.b32.xlu1 %v2836_v2, %s2688_s18 }
 0x17b   :  { %1178 = vrot.lane.b32.xlu0 %v2846_v7, %s2686_s16  ;;  %651 = vrot.lane.b32.xlu1 %v2836_v2, %s2690_s20 }
 0x17f   :  { %993 = vrot.lane.b32.xlu0 %v2836_v2, %s2687_s17  ;;  %888 = vrot.lane.b32.xlu1 %v2846_v7, %s2688_s18 }
 0x183   :  { %767 = vrot.lane.b32.xlu0 %v2836_v2, %s2689_s19  ;;  %1513 = vrot.lane.b32.xlu1 %v2868_v14, %s2683_s0 }
 0x187   :  { %1001 = vrot.lane.b32.xlu0 %v2846_v7, %s2687_s17  ;;  %1400 = vrot.lane.b32.xlu1 %v2868_v14, %s2684_s3 }
 0x18b   :  { %775 = vrot.lane.b32.xlu0 %v2846_v7, %s2689_s19  ;;  %1174 = vrot.lane.b32.xlu1 %v2868_v14, %s2686_s16 }
 0x18f   :  { %659 = vrot.lane.b32.xlu0 %v2846_v7, %s2690_s20  ;;  %1408 = vrot.lane.b32.xlu1 %v2882_v15, %s2684_s3 }
 0x193   :  { %1287 = vrot.lane.b32.xlu0 %v2868_v14, %s2685_s15  ;;  %997 = vrot.lane.b32.xlu1 %v2868_v14, %s2687_s17 }
 0x197   :  { %1521 = vrot.lane.b32.xlu0 %v2882_v15, %s2683_s0  ;;  %771 = vrot.lane.b32.xlu1 %v2868_v14, %s2689_s19 }
 0x19b   :  { %1295 = vrot.lane.b32.xlu0 %v2882_v15, %s2685_s15  ;;  %1005 = vrot.lane.b32.xlu1 %v2882_v15, %s2687_s17 }
 0x19d   :  { %v2900_v16 = vpop.permute.xlu0 %1515  ;;  %v2902_v17 = vpop.permute.xlu1 %1507 }
 0x19e   :  { %4422 = vst [vmem:[#allocation18_spill] sm:$0xff] %v2902_v17 }
 0x19f   :  { %1182 = vrot.lane.b32.xlu0 %v2882_v15, %s2686_s16  ;;  %779 = vrot.lane.b32.xlu1 %v2882_v15, %s2689_s19 }
 0x1a1   :  { %v2908_v18 = vpop.permute.xlu0 %1402  ;;  %v2910_v19 = vpop.permute.xlu1 %1394 }
 0x1a2   :  { %4423 = vst [vmem:[#allocation19_spill] sm:$0xff] %v2910_v19 }
 0x1a3   :  { %884 = vrot.lane.b32.xlu0 %v2868_v14, %s2688_s18  ;;  %663 = vrot.lane.b32.xlu1 %v2882_v15, %s2690_s20 }
 0x1a5   :  { %v2918_v21 = vpop.permute.xlu0 %1281  ;;  %v2920_v22 = vpop.permute.xlu1 %1289 }
 0x1a6   :  { %4425 = vst [vmem:[#allocation21_spill] sm:$0xff] %v2918_v21 }
 0x1a7   :  { %655 = vrot.lane.b32.xlu0 %v2868_v14, %s2690_s20  ;;  %1523 = vrot.lane.b32.xlu1 %v2916_v20, %s2683_s0 }
 0x1a9   :  { %v2926_v23 = vpop.permute.xlu0 %1176  ;;  %v2928_v24 = vpop.permute.xlu1 %1168 }
 0x1aa   :  { %4426 = vst [vmem:[#allocation22_spill] sm:$0xff] %v2928_v24 }
 0x1ab   :  { %892 = vrot.lane.b32.xlu0 %v2882_v15, %s2688_s18  ;;  %1297 = vrot.lane.b32.xlu1 %v2916_v20, %s2685_s15 }
 0x1ad   :  { %v2934_v25 = vpop.permute.xlu0 %991  ;;  %v2936_v26 = vpop.permute.xlu1 %878 }
 0x1af   :  { %1410 = vrot.lane.b32.xlu0 %v2916_v20, %s2684_s3  ;;  %1184 = vrot.lane.b32.xlu1 %v2916_v20, %s2686_s16 }
 0x1b1   :  { %v2942_v27 = vpop.permute.xlu0 %765  ;;  %v2944_v28 = vpop.permute.xlu1 %649 }
 0x1b3   :  { %1192 = vrot.lane.b32.xlu0 %v2946_v29, %s2686_s16  ;;  %1531 = vrot.lane.b32.xlu1 %v2946_v29, %s2683_s0 }
 0x1b5   :  { %v2952_v30 = vpop.permute.xlu0 %999  ;;  %v2954_v31 = vpop.permute.xlu1 %886 }
 0x1b7   :  { %894 = vrot.lane.b32.xlu0 %v2916_v20, %s2688_s18  ;;  %1418 = vrot.lane.b32.xlu1 %v2946_v29, %s2684_s3 }
 0x1b9   :  { %v2960_v33 = vpop.permute.xlu0 %773  ;;  %v1399_v34 = vpop.permute.xlu1 %1398 }
 0x1ba   :  { %v1437_v52 = vsel %vm1426_vm0, %v1399_v34, %v2908_v18  ;;  %v1439_v56 = vsel %vm1426_vm0, %v2910_v19, %v1399_v34  ;;  %v3076_v34 = vrot.slane %v2978_v41, %v2997_v46 }
 0x1bb   :  { %781 = vrot.lane.b32.xlu0 %v2916_v20, %s2689_s19  ;;  %1305 = vrot.lane.b32.xlu1 %v2946_v29, %s2685_s15  ;;  %v1476_v3 = vmul.f32 %v3011_v51, %v1437_v52  ;;  %v1475_v5 = vmul.f32 %v2988_v42, %v1439_v56  ;;  %v3088_v56 = vpop.f32.mrf.mxu1 }
 0x1bc   :  { %4429 = vst [vmem:[#allocation25_spill] sm:$0xff] %v3076_v34  ;;  %4430 = vst [vmem:[#allocation26_spill] sm:$0xff] %v3088_v56 }
 0x1bd   :  { %v2973_v38 = vpop.permute.xlu0 %657  ;;  %v1173_v39 = vpop.permute.xlu1 %1172 }
 0x1be   :  { %v1211_v6 = vsel %vm1200_vm2, %v1173_v39, %v2926_v23  ;;  %v1213_v10 = vsel %vm1200_vm2, %v2928_v24, %v1173_v39 }
 0x1bf   :  { %1015 = vrot.lane.b32.xlu0 %v2946_v29, %s2687_s17  ;;  %1007 = vrot.lane.b32.xlu1 %v2916_v20, %s2687_s17  ;;  %v1250_v52 = vmul.f32 %v3052_v4, %v1211_v6 }
 0x1c1   :  { %v3003_v48 = vpop.permute.xlu1 %1406  ;;  %v1512_v49 = vpop.permute.xlu0 %1511 }
 0x1c2   :  { %v1550_v53 = vsel %vm1539_vm1, %v1512_v49, %v2900_v16  ;;  %v1552_v54 = vsel %vm1539_vm1, %v2902_v17, %v1512_v49 }
 0x1c3   :  { %v1588_v57 = vmul.f32 %v2990_v43, %v1552_v54  ;;  %789 = vrot.lane.b32.xlu0 %v2946_v29, %s2689_s19  ;;  %665 = vrot.lane.b32.xlu1 %v2916_v20, %s2690_s20  ;;  %v1589_v58 = vmul.f32 %v2992_v44, %v1550_v53  ;;  %v3085_v53 = vrot.slane %v2994_v45, %v3045_v61  ;;  %v4352_v54 = vmov 0.0  }
 0x1c4   :  { %1761 = vmatprep.mubr.f32.mxu0 %v4352_v54  ;;  %1832 = vmatprep.mubr.f32.mxu1 %v4352_v54 }
 0x1c5   :  { %v3047_v62 = vpop.permute.xlu1 %995  ;;  %1711 = vmatprep.subr.mxu0 %v1589_v58  ;;  %v1286_v0 = vpop.permute.xlu0 %1285 }
 0x1c6   :  { %v1324_v8 = vsel %vm1313_vm3, %v1286_v0, %v2920_v22  ;;  %v1326_v9 = vsel %vm1313_vm3, %v2918_v21, %v1286_v0  ;;  %1712 = vmatpush1.msra.mxu0 %v1588_v57  ;;  %v1249_v57 = vmul.f32 %v3042_v60, %v1213_v10  ;;  %v1036_v58 = vsel %vm1023_vm4, %v2934_v25, %v3047_v62 }
 0x1c7   :  { %v1362_v11 = vmul.f32 %v3007_v50, %v1326_v9  ;;  %1713 = vmatprep.subr.mxu0 %v1476_v3  ;;  %673 = vrot.lane.b32.xlu0 %v2946_v29, %s2690_s20  ;;  %v1363_v32 = vmul.f32 %v3024_v55, %v1324_v8  ;;  %v1137_v0 = vmul.f32 %v3038_v59, %v2800_v63  ;;  %v3117_v9 = vpop.f32.mrf.mxu0 }
 0x1c8   :  { %902 = vrot.lane.b32.xlu1 %v2946_v29, %s2688_s18  ;;  %1714 = vmatpush1.msra.mxu0 %v1475_v5  ;;  %v1136_v3 = vmul.f32 %v3076_v34, %v2768_v12  ;;  %v1073_v8 = vmul.f32 %v3085_v53, %v1036_v58 }
 0x1c9   :  { %v3078_v49 = vpop.permute.xlu1 %769  ;;  %1715 = vmatprep.subr.mxu0 %v1363_v32  ;;  %v3080_v39 = vpop.permute.xlu0 %1519 }
 0x1ca   :  { %1716 = vmatpush1.msra.mxu0 %v1362_v11 }
 0x1cb   :  { %1717 = vmatprep.subr.mxu0 %v1250_v52  ;;  %1019 = vrot.lane.b32.xlu0 %v3088_v56, %s2687_s17 }
 0x1cc   :  { %906 = vrot.lane.b32.xlu1 %v3088_v56, %s2688_s18  ;;  %1718 = vmatpush1.msra.mxu0 %v1249_v57 }
 0x1cd   :  { %v3103_v5 = vpop.permute.xlu1 %1003  ;;  %v3105_v6 = vpop.permute.xlu0 %1293  ;;  %1719 = vmatprep.subr.mxu0 %v1137_v0 }
 0x1ce   :  { %1720 = vmatpush1.msra.mxu0 %v1136_v3 }
 0x1cf   :  { %1721 = vmatprep.subr.mxu0 %v1073_v8  ;;  %793 = vrot.lane.b32.xlu0 %v3088_v56, %s2689_s19  ;;  %v3155_v8 = vpop.f32.mrf.mxu0 }
 0x1d0   :  { %677 = vrot.lane.b32.xlu1 %v3088_v56, %s2690_s20  ;;  %4434 = vst [vmem:[#allocation30_spill] sm:$0xff] %v3155_v8 }
 0x1d1   :  { %v3113_v63 = vpop.permute.xlu1 %777  ;;  %v3115_v12 = vpop.permute.xlu0 %1180 }
 0x1d3   :  { %1527 = vrot.lane.b32.xlu0 %v3117_v9, %s2683_s0 }
 0x1d4   :  { %1188 = vrot.lane.b32.xlu1 %v3117_v9, %s2686_s16 }
 0x1d5   :  { %v3123_v10 = vpop.permute.xlu1 %661  ;;  %v3125_v11 = vpop.permute.xlu0 %882 }
 0x1d7   :  { %1414 = vrot.lane.b32.xlu0 %v3117_v9, %s2684_s3 }
 0x1d8   :  { %1422 = vrot.lane.b32.xlu1 %v3088_v56, %s2684_s3 }
 0x1d9   :  { %v3131_v32 = vpop.permute.xlu0 %653  ;;  %v3133_v52 = vpop.permute.xlu1 %1509 }
 0x1da   :  { %4431 = vst [vmem:[#allocation27_spill] sm:$0xff] %v3133_v52 }
 0x1db   :  { %1301 = vrot.lane.b32.xlu0 %v3117_v9, %s2685_s15 }
 0x1dc   :  { %1196 = vrot.lane.b32.xlu1 %v3088_v56, %s2686_s16 }
 0x1dd   :  { %v3139_v57 = vpop.permute.xlu0 %890  ;;  %v3141_v58 = vpop.permute.xlu1 %1396 }
 0x1de   :  { %4432 = vst [vmem:[#allocation28_spill] sm:$0xff] %v3141_v58 }
 0x1df   :  { %1535 = vrot.lane.b32.xlu0 %v3088_v56, %s2683_s0 }
 0x1e0   :  { %898 = vrot.lane.b32.xlu1 %v3117_v9, %s2688_s18 }
 0x1e1   :  { %v3147_v0 = vpop.permute.xlu0 %1517  ;;  %v3149_v3 = vpop.permute.xlu1 %1291 }
 0x1e2   :  { %4433 = vst [vmem:[#allocation29_spill] sm:$0xff] %v3147_v0 }
 0x1e3   :  { %1309 = vrot.lane.b32.xlu0 %v3088_v56, %s2685_s15 }
 0x1e4   :  { %785 = vrot.lane.b32.xlu1 %v3117_v9, %s2689_s19 }
 0x1e5   :  { %v3157_v54 = vpop.permute.xlu0 %1404  ;;  %v3159_v7 = vpop.permute.xlu1 %1170 }
 0x1e6   :  { %4435 = vst [vmem:[#allocation31_spill] sm:$0xff] %v3157_v54  ;;  %4436 = vst [vmem:[#allocation32_spill] sm:$0xff] %v3159_v7 }
 0x1e7   :  { %1011 = vrot.lane.b32.xlu0 %v3117_v9, %s2687_s17 }
 0x1e8   :  { %1525 = vrot.lane.b32.xlu1 %v3155_v8, %s2683_s0 }
 0x1e9   :  { %v3165_v15 = vpop.permute.xlu0 %1283  ;;  %v3167_v34 = vpop.permute.xlu1 %880 }
 0x1ea   :  { %4437 = vst [vmem:[#allocation33_spill] sm:$0xff] %v3165_v15  ;;  %4438 = vst [vmem:[#allocation34_spill] sm:$0xff] %v3167_v34  ;;  %v3185_v34 = vpop.f32.mrf.mxu1 }
 0x1eb   :  { %669 = vrot.lane.b32.xlu0 %v3117_v9, %s2690_s20  ;;  %4441 = vst [vmem:[#allocation37_spill] sm:$0xff] %v3185_v34 }
 0x1ec   :  { %1299 = vrot.lane.b32.xlu1 %v3155_v8, %s2685_s15 }
 0x1ed   :  { %v3173_v2 = vpop.permute.xlu0 %1178  ;;  %v3175_v59 = vpop.permute.xlu1 %651 }
 0x1ee   :  { %4439 = vst [vmem:[#allocation35_spill] sm:$0xff] %v3175_v59 }
 0x1ef   :  { %1412 = vrot.lane.b32.xlu0 %v3155_v8, %s2684_s3 }
 0x1f0   :  { %1186 = vrot.lane.b32.xlu1 %v3155_v8, %s2686_s16 }
 0x1f1   :  { %v3181_v14 = vpop.permute.xlu0 %993  ;;  %v3183_v21 = vpop.permute.xlu1 %888 }
 0x1f2   :  { %4440 = vst [vmem:[#allocation36_spill] sm:$0xff] %v3181_v14 }
 0x1f3   :  { %1194 = vrot.lane.b32.xlu0 %v3185_v34, %s2686_s16 }
 0x1f4   :  { %1533 = vrot.lane.b32.xlu1 %v3185_v34, %s2683_s0 }
 0x1f5   :  { %v3191_v24 = vpop.permute.xlu0 %767  ;;  %v1514_v59 = vpop.permute.xlu1 %1513 }
 0x1f6   :  { %4442 = vst [vmem:[#allocation38_spill] sm:$0xff] %v3191_v24  ;;  %v1551_v17 = vsel %vm1539_vm1, %v1514_v59, %v3147_v0  ;;  %v1553_v19 = vsel %vm1539_vm1, %v3133_v52, %v1514_v59 }
 0x1f7   :  { %v3200_v56 = vmul.f32 %v2990_v43, %v1553_v19  ;;  %v3203_v29 = vmul.f32 %v2992_v44, %v1551_v17  ;;  %896 = vrot.lane.b32.xlu0 %v3155_v8, %s2688_s18 }
 0x1f8   :  { %1420 = vrot.lane.b32.xlu1 %v3185_v34, %s2684_s3 }
 0x1f9   :  { %4443 = vst [vmem:[#allocation39_spill] sm:$0xff] %v3200_v56  ;;  %4444 = vst [vmem:[#allocation40_spill] sm:$0xff] %v3203_v29  ;;  %v1002_v24 = vpop.permute.xlu0 %1001  ;;  %v1401_v20 = vpop.permute.xlu1 %1400 }
 0x1fa   :  { %v1438_v0 = vsel %vm1426_vm0, %v1401_v20, %v3157_v54  ;;  %v1440_v19 = vsel %vm1426_vm0, %v3141_v58, %v1401_v20  ;;  %v3245_v58 = vpop.f32.mrf.mxu1 }
 0x1fb   :  { %v3216_v43 = vmul.f32 %v2988_v42, %v1440_v19  ;;  %v3219_v17 = vmul.f32 %v3011_v51, %v1438_v0  ;;  %783 = vrot.lane.b32.xlu0 %v3155_v8, %s2689_s19  ;;  %4450 = vst [vmem:[#allocation46_spill] sm:$0xff] %v3245_v58 }
 0x1fc   :  { %1307 = vrot.lane.b32.xlu1 %v3185_v34, %s2685_s15 }
 0x1fd   :  { %4445 = vst [vmem:[#allocation41_spill] sm:$0xff] %v3216_v43  ;;  %4446 = vst [vmem:[#allocation42_spill] sm:$0xff] %v3219_v17  ;;  %v776_v44 = vpop.permute.xlu0 %775  ;;  %v1175_v59 = vpop.permute.xlu1 %1174 }
 0x1fe   :  { %v1212_v52 = vsel %vm1200_vm2, %v1175_v59, %v3173_v2  ;;  %v1214_v20 = vsel %vm1200_vm2, %v3159_v7, %v1175_v59 }
 0x1ff   :  { %v3232_v42 = vmul.f32 %v3042_v60, %v1214_v20  ;;  %v3235_v51 = vmul.f32 %v3052_v4, %v1212_v52  ;;  %1017 = vrot.lane.b32.xlu0 %v3185_v34, %s2687_s17  ;;  %v3249_v60 = vld [vmem:[#allocation9 + $0x10] sm:$0xff]  ;;  %v3258_v52 = vsub.s32 1, %v2962_v35 }
 0x200   :  { %1009 = vrot.lane.b32.xlu1 %v3155_v8, %s2687_s17  ;;  %v3255_v4 = vrot.slane %v3249_v60, %v3045_v61 }
 0x201   :  { %4447 = vst [vmem:[#allocation43_spill] sm:$0xff] %v3232_v42  ;;  %4448 = vst [vmem:[#allocation44_spill] sm:$0xff] %v3235_v51  ;;  %v3241_v0 = vpop.permute.xlu0 %659  ;;  %v3243_v19 = vpop.permute.xlu1 %1408 }
 0x202   :  { %4449 = vst [vmem:[#allocation45_spill] sm:$0xff] %v3243_v19 }
 0x203   :  { %1021 = vrot.lane.b32.xlu0 %v3245_v58, %s2687_s17 }
 0x204   :  { %667 = vrot.lane.b32.xlu1 %v3155_v8, %s2690_s20 }
 0x205   :  { %v1288_v59 = vpop.permute.xlu0 %1287  ;;  %v998_v20 = vpop.permute.xlu1 %997 }
 0x206   :  { %v1325_v7 = vsel %vm1313_vm3, %v1288_v59, %v3149_v3  ;;  %v1327_v42 = vsel %vm1313_vm3, %v3165_v15, %v1288_v59  ;;  %v1035_v8 = vsel %vm1023_vm4, %v998_v20, %v1002_v24  ;;  %v1037_v51 = vsel %vm1023_vm4, %v3181_v14, %v998_v20 }
 0x207   :  { %v3272_v43 = vmul.f32 %v3007_v50, %v1327_v42  ;;  %v3275_v17 = vmul.f32 %v3024_v55, %v1325_v7  ;;  %v3278_v56 = vmul.f32 %v3085_v53, %v1037_v51  ;;  %v3281_v54 = vmul.f32 %v3255_v4, %v1035_v8  ;;  %795 = vrot.lane.b32.xlu0 %v3245_v58, %s2689_s19  ;;  %v3296_v53 = vpop.f32.mrf.mxu0  ;;  %v3308_v51 = vld [vmem:[#allocation9 + $0x18] sm:$0xff] }
 0x208   :  { %908 = vrot.lane.b32.xlu1 %v3245_v58, %s2688_s18  ;;  %v3290_v50 = vrot.slane %v3249_v60, %v3258_v52  ;;  %4456 = vst [vmem:[#allocation52_spill] sm:$0xff] %v3296_v53  ;;  %v3312_v59 = vrot.slane %v3249_v60, %v2976_v40  ;;  %v3318_v15 = vrot.slane %v3308_v51, %v3045_v61 }
 0x209   :  { %4451 = vst [vmem:[#allocation47_spill] sm:$0xff] %v3272_v43  ;;  %4452 = vst [vmem:[#allocation48_spill] sm:$0xff] %v3275_v17  ;;  %v3292_v7 = vpop.permute.xlu0 %1521  ;;  %v3294_v55 = vpop.permute.xlu1 %771 }
 0x20a   :  { %4453 = vst [vmem:[#allocation49_spill] sm:$0xff] %v3278_v56  ;;  %4454 = vst [vmem:[#allocation50_spill] sm:$0xff] %v3281_v54  ;;  %v809_v8 = vsel %vm797_vm5, %v3294_v55, %v776_v44  ;;  %v3341_v56 = vrot.slane %v3249_v60, %v3001_v47 }
 0x20b   :  { %4455 = vst [vmem:[#allocation51_spill] sm:$0xff] %v3294_v55  ;;  %v3302_v42 = vmul.f32 %v3290_v50, %v809_v8  ;;  %1529 = vrot.lane.b32.xlu0 %v3296_v53, %s2683_s0 }
 0x20c   :  { %679 = vrot.lane.b32.xlu1 %v3245_v58, %s2690_s20 }
 0x20d   :  { %4457 = vst [vmem:[#allocation53_spill] sm:$0xff] %v3302_v42  ;;  %v3314_v20 = vpop.permute.xlu0 %1295  ;;  %v3320_v8 = vpop.permute.xlu1 %1005 }
 0x20e   :  { %4458 = vst [vmem:[#allocation54_spill] sm:$0xff] %v3314_v20  ;;  %4459 = vst [vmem:[#allocation55_spill] sm:$0xff] %v3320_v8  ;;  %v1323_v55 = vsel %vm1313_vm3, %v3149_v3, %v3314_v20  ;;  %v1033_v42 = vsel %vm1023_vm4, %v1002_v24, %v3320_v8  ;;  %v3344_v3 = vsub.s32 2, %v2962_v35  ;;  %v3347_v24 = vsub.s32 0, %v2962_v35 }
 0x20f   :  { %v3330_v14 = vmul.f32 %v3312_v59, %v1323_v55  ;;  %v3333_v54 = vmul.f32 %v3318_v15, %v1033_v42  ;;  %1416 = vrot.lane.b32.xlu0 %v3296_v53, %s2684_s3  ;;  %v3353_v42 = vrot.slane %v3308_v51, %v3258_v52 }
 0x210   :  { %1190 = vrot.lane.b32.xlu1 %v3296_v53, %s2686_s16 }
 0x211   :  { %4460 = vst [vmem:[#allocation56_spill] sm:$0xff] %v3330_v14  ;;  %4461 = vst [vmem:[#allocation57_spill] sm:$0xff] %v3333_v54  ;;  %v3349_v55 = vpop.permute.xlu0 %1182  ;;  %v3355_v8 = vpop.permute.xlu1 %779 }
 0x212   :  { %4462 = vst [vmem:[#allocation58_spill] sm:$0xff] %v3349_v55  ;;  %4463 = vst [vmem:[#allocation59_spill] sm:$0xff] %v3355_v8  ;;  %v1210_v54 = vsel %vm1200_vm2, %v3173_v2, %v3349_v55  ;;  %v807_v14 = vsel %vm797_vm5, %v776_v44, %v3355_v8  ;;  %v3378_v2 = vrot.slane %v3249_v60, %v3344_v3  ;;  %v3406_v55 = vld [vmem:[#allocation9 + $0x58] ss:$0 sm:$0xff] }
 0x213   :  { %v3365_v35 = vmul.f32 %v3341_v56, %v1210_v54  ;;  %v3368_v43 = vmul.f32 %v3353_v42, %v807_v14  ;;  %1303 = vrot.lane.b32.xlu0 %v3296_v53, %s2685_s15  ;;  %v3384_v14 = vrot.slane %v3308_v51, %v3347_v24  ;;  %4470 = vst [vmem:[#allocation66_spill] sm:$0xff] %v3406_v55 }
 0x214   :  { %1424 = vrot.lane.b32.xlu1 %v3245_v58, %s2684_s3 }
 0x215   :  { %4464 = vst [vmem:[#allocation60_spill] sm:$0xff] %v3365_v35  ;;  %4465 = vst [vmem:[#allocation61_spill] sm:$0xff] %v3368_v43  ;;  %v3380_v44 = vpop.permute.xlu0 %884  ;;  %v3386_v54 = vpop.permute.xlu1 %663 }
 0x216   :  { %4466 = vst [vmem:[#allocation62_spill] sm:$0xff] %v3380_v44  ;;  %4467 = vst [vmem:[#allocation63_spill] sm:$0xff] %v3386_v54  ;;  %v922_v8 = vsel %vm910_vm7, %v3380_v44, %v3183_v21  ;;  %v693_v43 = vsel %vm683_vm6, %v3241_v0, %v3386_v54  ;;  %v1548_v44 = vsel %vm1539_vm1, %v2900_v16, %v3080_v39  ;;  %v3416_v54 = vld [vmem:[#allocation9 + $0x50] ss:$0 sm:$0xff] }
 0x217   :  { %v3397_v35 = vmul.f32 %v3378_v2, %v922_v8  ;;  %v3400_v17 = vmul.f32 %v3384_v14, %v693_v43  ;;  %1537 = vrot.lane.b32.xlu0 %v3245_v58, %s2683_s0  ;;  %v3414_v8 = vrot.slane %v3249_v60, %v3347_v24  ;;  %4471 = vst [vmem:[#allocation67_spill] sm:$0xff] %v3416_v54 }
 0x218   :  { %1198 = vrot.lane.b32.xlu1 %v3245_v58, %s2686_s16  ;;  %v1590_v19 = vmul.f32 %v3416_v54, %v1548_v44  ;;  %v3455_v44 = vrot.slane %v3308_v51, %v2971_v37  ;;  %v3490_v54 = vrot.slane %v3308_v51, %v3001_v47 }
 0x219   :  { %4468 = vst [vmem:[#allocation64_spill] sm:$0xff] %v3397_v35  ;;  %4469 = vst [vmem:[#allocation65_spill] sm:$0xff] %v3400_v17  ;;  %v3418_v43 = vpop.permute.xlu0 %655  ;;  %v3420_v17 = vpop.permute.xlu1 %1523 }
 0x21a   :  { %4472 = vst [vmem:[#allocation68_spill] sm:$0xff] %v3418_v43  ;;  %v695_v35 = vsel %vm683_vm6, %v3418_v43, %v3241_v0  ;;  %v1546_v16 = vsel %vm1539_vm1, %v3080_v39, %v3420_v17  ;;  %v942_v0 = vrot.slane %v3308_v51, %v3344_v3  ;;  %4476 = vst [vmem:[#allocation72_spill] sm:$0xff] %v3455_v44 }
 0x21b   :  { %v3431_v20 = vmul.f32 %v3414_v8, %v695_v35  ;;  %v1591_v29 = vmul.f32 %v3406_v55, %v1546_v16  ;;  %1311 = vrot.lane.b32.xlu0 %v3245_v58, %s2685_s15 }
 0x21c   :  { %900 = vrot.lane.b32.xlu1 %v3296_v53, %s2688_s18 }
 0x21d   :  { %4473 = vst [vmem:[#allocation69_spill] sm:$0xff] %v3431_v20  ;;  %v3441_v43 = vpop.permute.xlu0 %892  ;;  %1782 = vmatprep.subr.mxu1 %v1591_v29  ;;  %v3443_v39 = vpop.permute.xlu1 %1297  ;;  %v3459_v29 = vrot.slane %v3249_v60, %v2971_v37 }
 0x21e   :  { %4474 = vst [vmem:[#allocation70_spill] sm:$0xff] %v3441_v43  ;;  %v920_v35 = vsel %vm910_vm7, %v3183_v21, %v3441_v43  ;;  %1783 = vmatpush1.msra.mxu1 %v1590_v19  ;;  %v1435_v21 = vsel %vm1426_vm0, %v2908_v18, %v3003_v48  ;;  %v3469_v19 = vrot.slane %v3308_v51, %v2976_v40 }
 0x21f   :  { %v3449_v16 = vmul.f32 %v942_v0, %v920_v35  ;;  %1013 = vrot.lane.b32.xlu0 %v3296_v53, %s2687_s17  ;;  %4477 = vst [vmem:[#allocation73_spill] sm:$0xff] %v3459_v29  ;;  %v1320_v43 = vsel %vm1313_vm3, %v3105_v6, %v3443_v39  ;;  %v1322_v18 = vsel %vm1313_vm3, %v2920_v22, %v3105_v6 }
 0x220   :  { %787 = vrot.lane.b32.xlu1 %v3296_v53, %s2689_s19  ;;  %v1477_v55 = vmul.f32 %v3459_v29, %v1435_v21  ;;  %v1209_v22 = vsel %vm1200_vm2, %v2926_v23, %v3115_v12  ;;  %v1365_v6 = vmul.f32 %v3469_v19, %v1320_v43  ;;  %v3512_v21 = vrot.slane %v3308_v51, %v2997_v46 }
 0x221   :  { %4475 = vst [vmem:[#allocation71_spill] sm:$0xff] %v3449_v16  ;;  %v3471_v35 = vpop.permute.xlu0 %1410  ;;  %v3473_v58 = vpop.permute.xlu1 %1184  ;;  %v1364_v29 = vmul.f32 %v3312_v59, %v1322_v18  ;;  %v1251_v51 = vmul.f32 %v3341_v56, %v1209_v22  ;;  %v919_v56 = vsel %vm910_vm7, %v2954_v31, %v3139_v57  ;;  %v694_v22 = vsel %vm683_vm6, %v3131_v32, %v2973_v38 }
 0x222   :  { %v1433_v20 = vsel %vm1426_vm0, %v3003_v48, %v3471_v35  ;;  %v1207_v48 = vsel %vm1200_vm2, %v3115_v12, %v3473_v58  ;;  %4478 = vst [vmem:[#allocation74_spill] sm:$0xff] %v3512_v21  ;;  %v1032_v12 = vsel %vm1023_vm4, %v2952_v30, %v3103_v5  ;;  %v1139_v43 = vmul.f32 %v3512_v21, %v2810_v1 }
 0x223   :  { %v1478_v16 = vmul.f32 %v3455_v44, %v1433_v20  ;;  %671 = vrot.lane.b32.xlu0 %v3296_v53, %s2690_s20  ;;  %v3517_v44 = vrot.slane %v3249_v60, %v2997_v46  ;;  %v1252_v23 = vmul.f32 %v3490_v54, %v1207_v48  ;;  %v1034_v60 = vsel %vm1023_vm4, %v3047_v62, %v2952_v30 }
 0x224   :  { %904 = vrot.lane.b32.xlu1 %v3185_v34, %s2688_s18  ;;  %v921_v30 = vsel %vm910_vm7, %v3125_v11, %v2954_v31  ;;  %v1075_v62 = vmul.f32 %v3318_v15, %v1032_v12  ;;  %v806_v1 = vsel %vm797_vm5, %v2960_v33, %v3113_v63  ;;  %v962_v48 = vmul.f32 %v942_v0, %v919_v56 }
 0x225   :  { %v3506_v20 = vpop.permute.xlu0 %1192  ;;  %1784 = vmatprep.subr.mxu1 %v1478_v16  ;;  %v3508_v53 = vpop.permute.xlu1 %1531  ;;  %4479 = vst [vmem:[#allocation75_spill] sm:$0xff] %v3517_v44  ;;  %v1138_v16 = vmul.f32 %v3517_v44, %v2770_v13  ;;  %v808_v13 = vsel %vm797_vm5, %v3078_v49, %v2960_v33  ;;  %v692_v15 = vsel %vm683_vm6, %v2973_v38, %v3123_v10  ;;  %v3583_v38 = vld [vmem:[%s4347_s2] sm:$0xff]  ;;  %v4504_v44 = vld [vmem:[#allocation19_spill] sm:$0xff] }
 0x226   :  { %1785 = vmatpush1.msra.mxu1 %v1477_v55  ;;  %v849_v33 = vmul.f32 %v3353_v42, %v806_v1  ;;  %v735_v12 = vmul.f32 %v3384_v14, %v692_v15  ;;  %v923_v56 = vsel %vm910_vm7, %v2936_v26, %v3125_v11  ;;  %v810_v11 = vsel %vm797_vm5, %v2942_v27, %v3078_v49 }
 0x227   :  { %1786 = vmatprep.subr.mxu1 %v1365_v6  ;;  %791 = vrot.lane.b32.xlu0 %v3185_v34, %s2689_s19  ;;  %v848_v6 = vmul.f32 %v3290_v50, %v808_v13  ;;  %v3635_v15 = vrot.slane %v2978_v41, %v3258_v52  ;;  %v696_v49 = vsel %vm683_vm6, %v2944_v28, %v3131_v32 }
 0x228   :  { %675 = vrot.lane.b32.xlu1 %v3185_v34, %s2690_s20  ;;  %1787 = vmatpush1.msra.mxu1 %v1364_v29  ;;  %v1074_v29 = vmul.f32 %v3255_v4, %v1034_v60  ;;  %v961_v4 = vmul.f32 %v3378_v2, %v921_v30  ;;  %v734_v2 = vmul.f32 %v3414_v8, %v694_v22 }
 0x229   :  { %v3533_v59 = vpop.permute.xlu0 %894  ;;  %1788 = vmatprep.subr.mxu1 %v1252_v23  ;;  %v3535_v55 = vpop.permute.xlu1 %1418  ;;  %v3598_v60 = vrot.slane %v2978_v41, %v3045_v61  ;;  %v3612_v30 = vrot.slane %v2978_v41, %v3344_v3  ;;  %4485 = vst [vmem:[#allocation80_spill] sm:$0xff] %v3635_v15 }
 0x22a   :  { %1789 = vmatpush1.msra.mxu1 %v1251_v51  ;;  %v4480_v51 = vmov 0.0  }
 0x22b   :  { %1790 = vmatprep.subr.mxu1 %v1139_v43  ;;  %4481 = vst [vmem:[#allocation76_spill] sm:$0xff] %v3598_v60  ;;  %v3602_v43 = vrot.slane %v2994_v45, %v3344_v3  ;;  %4483 = vst [vmem:[#allocation78_spill] sm:$0xff] %v3612_v30 }
 0x22c   :  { %1791 = vmatpush1.msra.mxu1 %v1138_v16 }
 0x22d   :  { %v3559_v18 = vpop.permute.xlu0 %781  ;;  %1792 = vmatprep.subr.mxu1 %v1075_v62  ;;  %v3561_v31 = vpop.permute.xlu1 %1305  ;;  %4482 = vst [vmem:[#allocation77_spill] sm:$0xff] %v3602_v43  ;;  %v3616_v62 = vrot.slane %v2994_v45, %v3258_v52 }
 0x22e   :  { %1793 = vmatpush1.msra.mxu1 %v1074_v29 }
 0x22f   :  { %1794 = vmatprep.subr.mxu1 %v962_v48  ;;  %4484 = vst [vmem:[#allocation79_spill] sm:$0xff] %v3616_v62 }
 0x230   :  { %1795 = vmatpush1.msra.mxu1 %v961_v4  ;;  %v960_v4 = vmul.f32 %v3602_v43, %v923_v56  ;;  %v3667_v56 = vld [vmem:[#allocation9 + $0x68] ss:$0 sm:$0xff] }
 0x231   :  { %v3574_v0 = vpop.permute.xlu0 %1015  ;;  %1796 = vmatprep.subr.mxu1 %v849_v33  ;;  %v3576_v23 = vpop.permute.xlu1 %1007  ;;  %4489 = vst [vmem:[#allocation84_spill] sm:$0xff] %v3667_v56  ;;  %v4499_v43 = vld [vmem:[#allocation23_spill] sm:$0xff] }
 0x232   :  { %1797 = vmatpush1.msra.mxu1 %v848_v6 }
 0x233   :  { %1798 = vmatprep.subr.mxu1 %v735_v12  ;;  %v847_v12 = vmul.f32 %v3616_v62, %v810_v11  ;;  %v3671_v11 = vld [vmem:[#allocation9 + $0x28] sm:$0xff]  ;;  %v4498_v62 = vld [vmem:[#allocation20_spill] sm:$0xff] }
 0x234   :  { %1799 = vmatpush1.msra.mxu1 %v734_v2  ;;  %v3690_v34 = vrot.slane %v3671_v11, %v2971_v37 }
 0x235   :  { %v3585_v50 = vpop.permute.xlu0 %789  ;;  %v3587_v42 = vpop.permute.xlu1 %665  ;;  %2561 = vmatmul.mubr.msk.f32.vlgmr.msra.gmra.mxu1 %vm1693_vm8, %v3583_v38 }
 0x236   :  { %1974 = vmatprep.mubr.f32.mxu1 %v4480_v51  ;;  %4491 = vst [vmem:[#allocation86_spill] sm:$0xff] %v3690_v34 }
 0x239   :  { %v3592_v14 = vpop.permute.xlu0 %673 }
 0x23a   :  { %v3594_v8 = vpop.permute.xlu1 %902 }
 0x23d   :  { %v3608_v16 = vpop.permute.xlu0 %1019 }
 0x23e   :  { %v1038_v29 = vsel %vm1023_vm4, %v3608_v16, %v2934_v25  ;;  %v3622_v1 = vpop.permute.xlu1 %906  ;;  %v3639_v25 = vrot.slane %v2994_v45, %v3347_v24 }
 0x23f   :  { %v1072_v13 = vmul.f32 %v3598_v60, %v1038_v29  ;;  %v925_v48 = vsel %vm910_vm7, %v3622_v1, %v2936_v26  ;;  %v3651_v26 = vrot.slane %v2978_v41, %v3347_v24  ;;  %v3665_v41 = vld [vmem:[#allocation9 + $0x60] ss:$0 sm:$0xff] }
 0x240   :  { %4486 = vst [vmem:[#allocation81_spill] sm:$0xff] %v3639_v25  ;;  %v959_v22 = vmul.f32 %v3612_v30, %v925_v48  ;;  %4488 = vst [vmem:[#allocation83_spill] sm:$0xff] %v3665_v41  ;;  %v637_v29 = vld [vmem:[#allocation9 + $0x20] sm:$0xff] }
 0x241   :  { %1722 = vmatpush1.msra.mxu0 %v1072_v13  ;;  %v3647_v33 = vpop.permute.xlu0 %793  ;;  %4487 = vst [vmem:[#allocation82_spill] sm:$0xff] %v3651_v26 }
 0x242   :  { %v812_v45 = vsel %vm797_vm5, %v3647_v33, %v2942_v27  ;;  %v3657_v6 = vpop.permute.xlu1 %677  ;;  %1723 = vmatprep.subr.mxu0 %v960_v4  ;;  %v733_v27 = vmul.f32 %v3639_v25, %v696_v49  ;;  %v3673_v4 = vld [vmem:[#allocation9 + $0x30] sm:$0xff]  ;;  %v3719_v25 = vrot.slane %v637_v29, %v2976_v40 }
 0x243   :  { %v846_v32 = vmul.f32 %v3635_v15, %v812_v45  ;;  %v698_v2 = vsel %vm683_vm6, %v3657_v6, %v2944_v28  ;;  %1724 = vmatpush1.msra.mxu0 %v959_v22  ;;  %v3675_v45 = vld [vmem:[#allocation9 + $0x38] sm:$0xff] }
 0x244   :  { %1725 = vmatprep.subr.mxu0 %v847_v12  ;;  %v732_v13 = vmul.f32 %v3651_v26, %v698_v2  ;;  %v3686_v2 = vrot.slane %v637_v29, %v2971_v37  ;;  %v3696_v26 = vrot.slane %v3671_v11, %v2997_v46  ;;  %4496 = vst [vmem:[#allocation91_spill] sm:$0xff] %v3719_v25 }
 0x245   :  { %1726 = vmatpush1.msra.mxu0 %v846_v32  ;;  %v1528_v48 = vpop.permute.xlu0 %1527 }
 0x246   :  { %v1189_v28 = vpop.permute.xlu1 %1188  ;;  %v1542_v22 = vsel %vm1539_vm1, %v1528_v48, %v3508_v53  ;;  %v1544_v49 = vsel %vm1539_vm1, %v3420_v17, %v1528_v48  ;;  %1727 = vmatprep.subr.mxu0 %v733_v27  ;;  %4490 = vst [vmem:[#allocation85_spill] sm:$0xff] %v3686_v2  ;;  %4492 = vst [vmem:[#allocation87_spill] sm:$0xff] %v3696_v26  ;;  %v3699_v17 = vrot.slane %v637_v29, %v2997_v46 }
 0x247   :  { %v1592_v12 = vmul.f32 %v3665_v41, %v1544_v49  ;;  %v1593_v32 = vmul.f32 %v3667_v56, %v1542_v22  ;;  %1728 = vmatpush1.msra.mxu0 %v732_v13  ;;  %v3703_v27 = vrot.slane %v3673_v4, %v2997_v46  ;;  %v3707_v48 = vrot.slane %v3675_v45, %v2997_v46 }
 0x248   :  { %2560 = vmatmul.mubr.msk.f32.vlgmr.msra.gmra.mxu0 %vm1693_vm8, %v3583_v38  ;;  %4493 = vst [vmem:[#allocation88_spill] sm:$0xff] %v3699_v17  ;;  %v3723_v46 = vrot.slane %v3671_v11, %v2976_v40  ;;  %v1141_v15 = vmul.f32 %v3696_v26, %v3117_v9  ;;  %v1140_v30 = vmul.f32 %v3699_v17, %v4498_v62  ;;  %v4502_v9 = vld [vmem:[#allocation26_spill] sm:$0xff] }
 0x249   :  { %4494 = vst [vmem:[#allocation89_spill] sm:$0xff] %v3703_v27  ;;  %1853 = vmatprep.subr.mxu0 %v1593_v32  ;;  %v1415_v13 = vpop.permute.xlu0 %1414  ;;  %4495 = vst [vmem:[#allocation90_spill] sm:$0xff] %v3707_v48  ;;  %1903 = vmatprep.mubr.f32.mxu0 %v4480_v51  ;;  %v3745_v26 = vmul.f32 %v3707_v48, %v4502_v9  ;;  %v1205_v62 = vsel %vm1200_vm2, %v3473_v58, %v1189_v28 }
 0x24a   :  { %v1423_v22 = vpop.permute.xlu1 %1422  ;;  %v1429_v49 = vsel %vm1426_vm0, %v1415_v13, %v3535_v55  ;;  %v1431_v41 = vsel %vm1426_vm0, %v3471_v35, %v1415_v13  ;;  %1854 = vmatpush1.msra.mxu0 %v1592_v12  ;;  %4497 = vst [vmem:[#allocation92_spill] sm:$0xff] %v3723_v46  ;;  %v3731_v35 = vmul.f32 %v3703_v27, %v4499_v43 }
 0x24b   :  { %v1479_v56 = vmul.f32 %v3686_v2, %v1431_v41  ;;  %v1480_v32 = vmul.f32 %v3690_v34, %v1429_v49  ;;  %v3734_v41 = vrot.slane %v637_v29, %v3344_v3  ;;  %v3737_v12 = vrot.slane %v637_v29, %v3001_v47 }
 0x24c   :  { %v3741_v13 = vrot.slane %v3671_v11, %v3001_v47  ;;  %v1203_v43 = vsel %vm1200_vm2, %v1189_v28, %v3506_v20  ;;  %v3760_v9 = vrot.slane %v637_v29, %v3258_v52  ;;  %v3763_v48 = vrot.slane %v637_v29, %v3045_v61 }
 0x24d   :  { %4500 = vst [vmem:[#allocation20_spill] sm:$0xff] %v3737_v12  ;;  %1855 = vmatprep.subr.mxu0 %v1480_v32  ;;  %v1302_v49 = vpop.permute.xlu0 %1301  ;;  %v3768_v28 = vrot.slane %v637_v29, %v3347_v24  ;;  %v3772_v2 = vrot.slane %v3675_v45, %v3045_v61  ;;  %v1427_v51 = vsel %vm1426_vm0, %v3535_v55, %v1423_v22 }
 0x24e   :  { %4501 = vst [vmem:[#allocation23_spill] sm:$0xff] %v3741_v13  ;;  %v1197_v27 = vpop.permute.xlu1 %1196  ;;  %v1316_v17 = vsel %vm1313_vm3, %v1302_v49, %v3561_v31  ;;  %v1318_v32 = vsel %vm1313_vm3, %v3443_v39, %v1302_v49  ;;  %1856 = vmatpush1.msra.mxu0 %v1479_v56  ;;  %v3776_v39 = vrot.slane %v3675_v45, %v3344_v3  ;;  %v3782_v49 = vld [vmem:[#allocation9 + $0x70] ss:$0 sm:$0xff] }
 0x24f   :  { %v1366_v34 = vmul.f32 %v3719_v25, %v1318_v32  ;;  %v1367_v58 = vmul.f32 %v3723_v46, %v1316_v17  ;;  %v3780_v56 = vrot.slane %v3675_v45, %v3258_v52  ;;  %v3784_v32 = vld [vmem:[#allocation9 + $0x78] ss:$0 sm:$0xff]  ;;  %v1253_v17 = vmul.f32 %v3737_v12, %v1205_v62 }
 0x250   :  { %4503 = vst [vmem:[#allocation26_spill] sm:$0xff] %v3784_v32  ;;  %v1254_v29 = vmul.f32 %v3741_v13, %v1203_v43  ;;  %v3790_v46 = vrot.slane %v3673_v4, %v2971_v37  ;;  %v3794_v25 = vrot.slane %v3675_v45, %v2971_v37  ;;  %v1441_v62 = vsel %vm1426_vm0, %v1423_v22, %v4504_v44  ;;  %v4505_v13 = vld [vmem:[#allocation18_spill] sm:$0xff] }
 0x251   :  { %1857 = vmatprep.subr.mxu0 %v1367_v58  ;;  %v1536_v60 = vpop.permute.xlu0 %1535  ;;  %v3812_v55 = vrot.slane %v3673_v4, %v2976_v40  ;;  %v3816_v44 = vrot.slane %v3675_v45, %v2976_v40  ;;  %v3832_v22 = vrot.slane %v3671_v11, %v3344_v3 }
 0x252   :  { %v899_v12 = vpop.permute.xlu1 %898  ;;  %v1540_v43 = vsel %vm1539_vm1, %v3508_v53, %v1536_v60  ;;  %v1554_v37 = vsel %vm1539_vm1, %v1536_v60, %v4505_v13  ;;  %1858 = vmatpush1.msra.mxu0 %v1366_v34  ;;  %v3820_v53 = vrot.slane %v3675_v45, %v3347_v24  ;;  %v3824_v34 = vrot.slane %v3673_v4, %v3001_v47 }
 0x253   :  { %v1594_v58 = vmul.f32 %v3782_v49, %v1540_v43  ;;  %v1595_v21 = vmul.f32 %v3784_v32, %v1554_v37  ;;  %1859 = vmatprep.subr.mxu0 %v1254_v29  ;;  %v3828_v60 = vrot.slane %v3675_v45, %v3001_v47  ;;  %v1481_v40 = vmul.f32 %v3790_v46, %v1427_v51  ;;  %v4506_v37 = vld [vmem:[#allocation22_spill] sm:$0xff]  ;;  %v4507_v32 = vld [vmem:[#allocation21_spill] sm:$0xff] }
 0x254   :  { %1860 = vmatpush1.msra.mxu0 %v1253_v17  ;;  %v1482_v13 = vmul.f32 %v3794_v25, %v1441_v62  ;;  %v3838_v29 = vrot.slane %v3673_v4, %v3344_v3  ;;  %v1215_v47 = vsel %vm1200_vm2, %v1197_v27, %v4506_v37  ;;  %v1201_v3 = vsel %vm1200_vm2, %v3506_v20, %v1197_v27 }
 0x255   :  { %1924 = vmatprep.subr.mxu1 %v1595_v21  ;;  %v1310_v43 = vpop.permute.xlu0 %1309  ;;  %1861 = vmatprep.subr.mxu0 %v1141_v15  ;;  %v3856_v62 = vrot.slane %v3671_v11, %v3045_v61  ;;  %v3868_v20 = vrot.slane %v3673_v4, %v3258_v52  ;;  %v3872_v27 = vrot.slane %v3673_v4, %v3045_v61 }
 0x256   :  { %v786_v45 = vpop.permute.xlu1 %785  ;;  %v1314_v17 = vsel %vm1313_vm3, %v3561_v31, %v1310_v43  ;;  %v1328_v51 = vsel %vm1313_vm3, %v1310_v43, %v4507_v32  ;;  %1862 = vmatpush1.msra.mxu0 %v1140_v30  ;;  %1925 = vmatpush1.msra.mxu1 %v1594_v58  ;;  %v917_v31 = vsel %vm910_vm7, %v3139_v57, %v3533_v59 }
 0x257   :  { %v1368_v21 = vmul.f32 %v3812_v55, %v1314_v17  ;;  %v1369_v15 = vmul.f32 %v3816_v44, %v1328_v51  ;;  %1926 = vmatprep.subr.mxu1 %v1482_v13  ;;  %v3864_v30 = vrot.slane %v3671_v11, %v3258_v52  ;;  %v1030_v32 = vsel %vm1023_vm4, %v3103_v5, %v3576_v23 }
 0x258   :  { %1927 = vmatpush1.msra.mxu1 %v1481_v40  ;;  %v1256_v57 = vmul.f32 %v3828_v60, %v1215_v47  ;;  %v3881_v13 = vrot.slane %v3671_v11, %v3347_v24  ;;  %v3885_v52 = vrot.slane %v3673_v4, %v3347_v24  ;;  %v1024_v61 = vsel %vm1023_vm4, %v3574_v0, %v3608_v16 }
 0x259   :  { %1928 = vmatprep.subr.mxu1 %v1369_v15  ;;  %v1012_v58 = vpop.permute.xlu0 %1011  ;;  %v1255_v40 = vmul.f32 %v3824_v34, %v1201_v3  ;;  %v915_v5 = vsel %vm910_vm7, %v3533_v59, %v899_v12  ;;  %v963_v24 = vmul.f32 %v3734_v41, %v917_v31  ;;  %v804_v16 = vsel %vm797_vm5, %v3113_v63, %v3559_v18 }
 0x25a   :  { %v1028_v11 = vsel %vm1023_vm4, %v3576_v23, %v1012_v58  ;;  %v3898_v43 = vpop.permute.xlu1 %1525  ;;  %1929 = vmatpush1.msra.mxu1 %v1368_v21  ;;  %v1026_v4 = vsel %vm1023_vm4, %v1012_v58, %v3574_v0  ;;  %v1076_v37 = vmul.f32 %v3763_v48, %v1030_v32  ;;  %v690_v23 = vsel %vm683_vm6, %v3123_v10, %v3587_v42 }
 0x25b   :  { %v1077_v59 = vmul.f32 %v3856_v62, %v1028_v11  ;;  %1930 = vmatprep.subr.mxu1 %v1256_v57  ;;  %v911_v47 = vsel %vm910_vm7, %v3594_v8, %v3622_v1  ;;  %v802_v63 = vsel %vm797_vm5, %v3559_v18, %v786_v45  ;;  %v1079_v0 = vmul.f32 %v3772_v2, %v1024_v61  ;;  %v4508_v61 = vld [vmem:[#allocation29_spill] sm:$0xff]  ;;  %v4509_v11 = vld [vmem:[#allocation66_spill] sm:$0xff] }
 0x25c   :  { %1931 = vmatpush1.msra.mxu1 %v1255_v40  ;;  %v913_v17 = vsel %vm910_vm7, %v899_v12, %v3594_v8  ;;  %v964_v51 = vmul.f32 %v3832_v22, %v915_v5  ;;  %v798_v1 = vsel %vm797_vm5, %v3585_v50, %v3647_v33  ;;  %v1078_v18 = vmul.f32 %v3872_v27, %v1026_v4 }
 0x25d   :  { %1932 = vmatprep.subr.mxu1 %v3745_v26  ;;  %v670_v10 = vpop.permute.xlu0 %669  ;;  %1863 = vmatprep.subr.mxu0 %v1077_v59  ;;  %v966_v8 = vmul.f32 %v3776_v39, %v911_v47  ;;  %v800_v26 = vsel %vm797_vm5, %v786_v45, %v3585_v50  ;;  %v851_v12 = vmul.f32 %v3864_v30, %v802_v63  ;;  %v4511_v59 = vld [vmem:[#allocation40_spill] sm:$0xff]  ;;  %v4513_v63 = vld [vmem:[#allocation67_spill] sm:$0xff] }
 0x25e   :  { %v688_v3 = vsel %vm683_vm6, %v3587_v42, %v670_v10  ;;  %v3935_v21 = vpop.permute.xlu1 %1299  ;;  %1864 = vmatpush1.msra.mxu0 %v1076_v37  ;;  %1933 = vmatpush1.msra.mxu1 %v3731_v35  ;;  %v850_v33 = vmul.f32 %v3760_v9, %v804_v16  ;;  %v684_v42 = vsel %vm683_vm6, %v3592_v14, %v3657_v6  ;;  %v4510_v16 = vld [vmem:[#allocation45_spill] sm:$0xff] }
 0x25f   :  { %1865 = vmatprep.subr.mxu0 %v964_v51  ;;  %1934 = vmatprep.subr.mxu1 %v1079_v0  ;;  %v965_v15 = vmul.f32 %v3838_v29, %v913_v17  ;;  %v853_v35 = vmul.f32 %v3780_v56, %v798_v1  ;;  %v686_v50 = vsel %vm683_vm6, %v670_v10, %v3592_v14  ;;  %v4514_v17 = vld [vmem:[#allocation54_spill] sm:$0xff]  ;;  %v4515_v10 = vld [vmem:[#allocation39_spill] sm:$0xff]  ;;  %v4516_v1 = vld [vmem:[#allocation72_spill] sm:$0xff] }
 0x260   :  { %1866 = vmatpush1.msra.mxu0 %v963_v24  ;;  %1935 = vmatpush1.msra.mxu1 %v1078_v18  ;;  %v737_v45 = vmul.f32 %v3881_v13, %v688_v3  ;;  %v736_v32 = vmul.f32 %v3768_v28, %v690_v23  ;;  %v852_v6 = vmul.f32 %v3868_v20, %v800_v26  ;;  %v4512_v23 = vld [vmem:[#allocation31_spill] sm:$0xff]  ;;  %v4517_v3 = vld [vmem:[#allocation42_spill] sm:$0xff] }
 0x261   :  { %1867 = vmatprep.subr.mxu0 %v851_v12  ;;  %1936 = vmatprep.subr.mxu1 %v966_v8  ;;  %v3954_v31 = vpop.permute.xlu0 %1412  ;;  %v1547_v57 = vsel %vm1539_vm1, %v3292_v7, %v3898_v43  ;;  %v739_v14 = vmul.f32 %v3820_v53, %v684_v42  ;;  %v1549_v40 = vsel %vm1539_vm1, %v4508_v61, %v3292_v7  ;;  %v4518_v8 = vld [vmem:[#allocation73_spill] sm:$0xff]  ;;  %v4519_v12 = vld [vmem:[#allocation58_spill] sm:$0xff]  ;;  %v4525_v61 = vld [vmem:[#allocation24_spill] sm:$0xff] }
 0x262   :  { %v3962_v58 = vpop.permute.xlu1 %1186  ;;  %1868 = vmatpush1.msra.mxu0 %v850_v33  ;;  %1937 = vmatpush1.msra.mxu1 %v965_v15  ;;  %v738_v5 = vmul.f32 %v3885_v52, %v686_v50  ;;  %v1599_v24 = vmul.f32 %v4509_v11, %v1547_v57  ;;  %v1434_v4 = vsel %vm1426_vm0, %v4510_v16, %v3954_v31  ;;  %v4520_v42 = vld [vmem:[#allocation41_spill] sm:$0xff]  ;;  %v4521_v50 = vld [vmem:[#allocation48_spill] sm:$0xff] }
 0x263   :  { %1869 = vmatprep.subr.mxu0 %v737_v45  ;;  %1938 = vmatprep.subr.mxu1 %v853_v35  ;;  %v1436_v7 = vsel %vm1426_vm0, %v4512_v23, %v4510_v16  ;;  %v1598_v0 = vmul.f32 %v4513_v63, %v1549_v40  ;;  %v1321_v51 = vsel %vm1313_vm3, %v4514_v17, %v3935_v21  ;;  %v4523_v57 = vld [vmem:[#allocation44_spill] sm:$0xff]  ;;  %v4529_v16 = vld [vmem:[#allocation25_spill] sm:$0xff]  ;;  %v4531_v23 = vld [vmem:[#allocation74_spill] sm:$0xff] }
 0x264   :  { %1870 = vmatpush1.msra.mxu0 %v736_v32  ;;  %1939 = vmatpush1.msra.mxu1 %v852_v6  ;;  %v1486_v18 = vmul.f32 %v4516_v1, %v1434_v4  ;;  %v1485_v26 = vmul.f32 %v4518_v8, %v1436_v7  ;;  %v1208_v33 = vsel %vm1200_vm2, %v4519_v12, %v3962_v58  ;;  %v4522_v32 = vld [vmem:[#allocation47_spill] sm:$0xff]  ;;  %v4527_v11 = vld [vmem:[#allocation56_spill] sm:$0xff] }
 0x265   :  { %1940 = vmatprep.subr.mxu1 %v739_v14  ;;  %2085 = vmatprep.subr.mxu0 %v4511_v59  ;;  %v3976_v37 = vpop.permute.xlu0 %1194  ;;  %v1373_v35 = vmul.f32 %v3469_v19, %v1321_v51  ;;  %v1260_v6 = vmul.f32 %v3490_v54, %v1208_v33  ;;  %v4524_v14 = vld [vmem:[#allocation16_spill] sm:$0xff]  ;;  %v4530_v54 = vld [vmem:[#allocation17_spill] sm:$0xff]  ;;  %v4534_v17 = vld [vmem:[#allocation75_spill] sm:$0xff] }
 0x266   :  { %v3982_v47 = vpop.permute.xlu1 %1533  ;;  %2562 = vmatmul.mubr.msk.f32.vlgmr.msra.gmra.mxu0 %vm1693_vm8, %v3583_v38  ;;  %1941 = vmatpush1.msra.mxu1 %v738_v5  ;;  %v1145_v40 = vmul.f32 %v4525_v61, %v4524_v14  ;;  %v4526_v5 = vld [vmem:[#allocation43_spill] sm:$0xff]  ;;  %v1147_v7 = vmul.f32 %v4531_v23, %v4530_v54  ;;  %v4532_v63 = vld [vmem:[#allocation60_spill] sm:$0xff]  ;;  %v4540_v33 = vld [vmem:[#allocation62_spill] sm:$0xff] }
 0x267   :  { %2086 = vmatpush1.msra.mxu0 %v4515_v10  ;;  %2156 = vmatprep.subr.mxu1 %v1599_v24  ;;  %v4528_v24 = vld [vmem:[#allocation14_spill] sm:$0xff]  ;;  %v4535_v10 = vld [vmem:[#allocation49_spill] sm:$0xff]  ;;  %v4539_v12 = vld [vmem:[#allocation71_spill] sm:$0xff] }
 0x268   :  { %2087 = vmatprep.subr.mxu0 %v4517_v3  ;;  %2563 = vmatmul.mubr.msk.f32.vlgmr.msra.gmra.mxu1 %vm1693_vm8, %v3583_v38  ;;  %v1144_v4 = vmul.f32 %v4529_v16, %v4528_v24  ;;  %v4537_v3 = vld [vmem:[#allocation57_spill] sm:$0xff] }
 0x269   :  { %2088 = vmatpush1.msra.mxu0 %v4520_v42  ;;  %2157 = vmatpush1.msra.mxu1 %v1598_v0  ;;  %v4002_v15 = vpop.permute.xlu0 %896  ;;  %v4533_v0 = vld [vmem:[#allocation15_spill] sm:$0xff]  ;;  %v4541_v42 = vld [vmem:[#allocation34_spill] sm:$0xff]  ;;  %v4544_v14 = vld [vmem:[#allocation61_spill] sm:$0xff] }
 0x26a   :  { %2089 = vmatprep.subr.mxu0 %v4521_v50  ;;  %2158 = vmatprep.subr.mxu1 %v1486_v18  ;;  %v4006_v45 = vpop.permute.xlu1 %1420  ;;  %v1146_v51 = vmul.f32 %v4534_v17, %v4533_v0  ;;  %v4536_v18 = vmov 0.0   ;;  %v4542_v50 = vld [vmem:[#allocation64_spill] sm:$0xff]  ;;  %v4547_v24 = vld [vmem:[#allocation77_spill] sm:$0xff] }
 0x26b   :  { %2090 = vmatpush1.msra.mxu0 %v4522_v32  ;;  %2159 = vmatpush1.msra.mxu1 %v1485_v26  ;;  %v4538_v26 = vld [vmem:[#allocation50_spill] sm:$0xff]  ;;  %v4549_v54 = vld [vmem:[#allocation69_spill] sm:$0xff] }
 0x26c   :  { %2091 = vmatprep.subr.mxu0 %v4523_v57  ;;  %2160 = vmatprep.subr.mxu1 %v1373_v35  ;;  %v924_v35 = vsel %vm910_vm7, %v4541_v42, %v4540_v33  ;;  %v4554_v33 = vld [vmem:[#allocation78_spill] sm:$0xff] }
 0x26d   :  { %2092 = vmatpush1.msra.mxu0 %v4526_v5  ;;  %2161 = vmatpush1.msra.mxu1 %v4527_v11  ;;  %v4015_v19 = vpop.permute.xlu0 %783  ;;  %v4546_v11 = vld [vmem:[#allocation53_spill] sm:$0xff]  ;;  %v968_v16 = vmul.f32 %v4547_v24, %v924_v35 }
 0x26e   :  { %2093 = vmatprep.subr.mxu0 %v1145_v40  ;;  %2162 = vmatprep.subr.mxu1 %v1260_v6  ;;  %v4019_v59 = vpop.permute.xlu1 %1307  ;;  %v4543_v6 = vld [vmem:[#allocation36_spill] sm:$0xff] }
 0x26f   :  { %2094 = vmatpush1.msra.mxu0 %v1144_v4  ;;  %2163 = vmatpush1.msra.mxu1 %v4532_v63  ;;  %v4545_v40 = vld [vmem:[#allocation76_spill] sm:$0xff]  ;;  %v4548_v4 = vld [vmem:[#allocation65_spill] sm:$0xff]  ;;  %v4551_v63 = vld [vmem:[#allocation38_spill] sm:$0xff] }
 0x270   :  { %2095 = vmatprep.subr.mxu0 %v4535_v10  ;;  %2164 = vmatprep.subr.mxu1 %v1147_v7  ;;  %v4550_v7 = vld [vmem:[#allocation51_spill] sm:$0xff] }
 0x271   :  { %2165 = vmatpush1.msra.mxu1 %v1146_v51  ;;  %v4027_v1 = vpop.permute.xlu0 %1017  ;;  %2135 = vmatprep.mubr.f32.mxu0 %v4536_v18  ;;  %v811_v0 = vsel %vm797_vm5, %v4551_v63, %v4550_v7  ;;  %v4559_v7 = vld [vmem:[#allocation82_spill] sm:$0xff] }
 0x272   :  { %2166 = vmatprep.subr.mxu1 %v4537_v3  ;;  %v4031_v8 = vpop.permute.xlu1 %1009  ;;  %2206 = vmatprep.mubr.f32.mxu1 %v4536_v18  ;;  %v4552_v3 = vld [vmem:[#allocation68_spill] sm:$0xff] }
 0x273   :  { %2167 = vmatpush1.msra.mxu1 %v4538_v26  ;;  %v4553_v26 = vld [vmem:[#allocation35_spill] sm:$0xff] }
 0x274   :  { %2168 = vmatprep.subr.mxu1 %v4539_v12  ;;  %v697_v12 = vsel %vm683_vm6, %v4553_v26, %v4552_v3 }
 0x275   :  { %2169 = vmatpush1.msra.mxu1 %v4542_v50  ;;  %v4041_v32 = vpop.permute.xlu0 %1021  ;;  %v4555_v50 = vld [vmem:[#allocation79_spill] sm:$0xff] }
 0x276   :  { %v1039_v57 = vsel %vm1023_vm4, %v4041_v32, %v4543_v6  ;;  %2170 = vmatprep.subr.mxu1 %v4544_v14  ;;  %v4048_v61 = vpop.permute.xlu1 %667  ;;  %v855_v6 = vmul.f32 %v4555_v50, %v811_v0  ;;  %v4556_v14 = vld [vmem:[#allocation80_spill] sm:$0xff] }
 0x277   :  { %v1080_v5 = vmul.f32 %v4545_v40, %v1039_v57  ;;  %2171 = vmatpush1.msra.mxu1 %v4546_v11  ;;  %v4557_v11 = vld [vmem:[#allocation81_spill] sm:$0xff] }
 0x278   :  { %2172 = vmatprep.subr.mxu1 %v4548_v4  ;;  %v741_v24 = vmul.f32 %v4557_v11, %v697_v12  ;;  %v4558_v4 = vld [vmem:[#allocation84_spill] sm:$0xff]  ;;  %v4560_v12 = vld [vmem:[#allocation83_spill] sm:$0xff] }
 0x279   :  { %2173 = vmatpush1.msra.mxu1 %v4549_v54  ;;  %2096 = vmatpush1.msra.mxu0 %v1080_v5  ;;  %v4055_v23 = vpop.permute.xlu0 %795 }
 0x27a   :  { %v4061_v17 = vpop.permute.xlu1 %908  ;;  %2097 = vmatprep.subr.mxu0 %v968_v16  ;;  %2565 = vmatmul.mubr.msk.f32.vlgmr.msra.gmra.mxu1 %vm1693_vm8, %v3583_v38  ;;  %v813_v51 = vsel %vm797_vm5, %v4055_v23, %v4551_v63 }
 0x27b   :  { %v926_v10 = vsel %vm910_vm7, %v4061_v17, %v4541_v42  ;;  %2348 = vmatprep.mubr.f32.mxu1 %v4536_v18  ;;  %v854_v40 = vmul.f32 %v4556_v14, %v813_v51 }
 0x27c   :  { %v967_v35 = vmul.f32 %v4554_v33, %v926_v10 }
 0x27d   :  { %v1530_v57 = vpop.permute.xlu0 %1529 }
 0x27e   :  { %2098 = vmatpush1.msra.mxu0 %v967_v35  ;;  %v4081_v5 = vpop.permute.xlu1 %679  ;;  %v1543_v42 = vsel %vm1539_vm1, %v1530_v57, %v3982_v47  ;;  %v1545_v0 = vsel %vm1539_vm1, %v3898_v43, %v1530_v57  ;;  %v4561_v35 = vld [vmem:[#allocation85_spill] sm:$0xff] }
 0x27f   :  { %v699_v16 = vsel %vm683_vm6, %v4081_v5, %v4553_v26  ;;  %v1601_v54 = vmul.f32 %v4558_v4, %v1543_v42  ;;  %2099 = vmatprep.subr.mxu0 %v855_v6  ;;  %v1600_v33 = vmul.f32 %v4560_v12, %v1545_v0  ;;  %v4562_v6 = vld [vmem:[#allocation86_spill] sm:$0xff]  ;;  %v4568_v12 = vld [vmem:[#allocation27_spill] sm:$0xff] }
 0x280   :  { %v740_v63 = vmul.f32 %v4559_v7, %v699_v16  ;;  %2100 = vmatpush1.msra.mxu0 %v854_v40  ;;  %v4564_v16 = vld [vmem:[#allocation92_spill] sm:$0xff] }
 0x281   :  { %2101 = vmatprep.subr.mxu0 %v741_v24  ;;  %v1417_v51 = vpop.permute.xlu0 %1416  ;;  %v4563_v24 = vld [vmem:[#allocation91_spill] sm:$0xff] }
 0x282   :  { %2102 = vmatpush1.msra.mxu0 %v740_v63  ;;  %v1191_v10 = vpop.permute.xlu1 %1190  ;;  %v1430_v3 = vsel %vm1426_vm0, %v1417_v51, %v4006_v45  ;;  %v1432_v26 = vsel %vm1426_vm0, %v3954_v31, %v1417_v51  ;;  %v4566_v63 = vld [vmem:[#allocation23_spill] sm:$0xff] }
 0x283   :  { %v1487_v50 = vmul.f32 %v4561_v35, %v1432_v26  ;;  %v1488_v14 = vmul.f32 %v4562_v6, %v1430_v3  ;;  %2227 = vmatprep.subr.mxu0 %v1601_v54  ;;  %2564 = vmatmul.mubr.msk.f32.vlgmr.msra.gmra.mxu0 %vm1693_vm8, %v3583_v38  ;;  %v1204_v57 = vsel %vm1200_vm2, %v1191_v10, %v3976_v37  ;;  %v4565_v54 = vld [vmem:[#allocation20_spill] sm:$0xff] }
 0x284   :  { %2228 = vmatpush1.msra.mxu0 %v1600_v33  ;;  %2277 = vmatprep.mubr.f32.mxu0 %v4536_v18  ;;  %v1206_v31 = vsel %vm1200_vm2, %v3962_v58, %v1191_v10  ;;  %v1262_v0 = vmul.f32 %v4566_v63, %v1204_v57  ;;  %v4567_v10 = vld [vmem:[#allocation28_spill] sm:$0xff]  ;;  %v4572_v57 = vld [vmem:[#allocation30_spill] sm:$0xff] }
 0x285   :  { %v1304_v43 = vpop.permute.xlu0 %1303  ;;  %2229 = vmatprep.subr.mxu0 %v1488_v14  ;;  %v1261_v7 = vmul.f32 %v4565_v54, %v1206_v31  ;;  %v4571_v14 = vld [vmem:[#allocation87_spill] sm:$0xff]  ;;  %v4573_v31 = vld [vmem:[#allocation88_spill] sm:$0xff]  ;;  %v4576_v63 = vld [vmem:[#allocation70_spill] sm:$0xff] }
 0x286   :  { %v1425_v40 = vpop.permute.xlu1 %1424  ;;  %v1317_v42 = vsel %vm1313_vm3, %v1304_v43, %v4019_v59  ;;  %v1319_v11 = vsel %vm1313_vm3, %v3935_v21, %v1304_v43  ;;  %2230 = vmatpush1.msra.mxu0 %v1487_v50  ;;  %v4569_v50 = vld [vmem:[#allocation26_spill] sm:$0xff] }
 0x287   :  { %v1374_v18 = vmul.f32 %v4563_v24, %v1319_v11  ;;  %v1375_v4 = vmul.f32 %v4564_v16, %v1317_v42  ;;  %v1428_v51 = vsel %vm1426_vm0, %v4006_v45, %v1425_v40  ;;  %v1442_v3 = vsel %vm1426_vm0, %v1425_v40, %v4567_v10  ;;  %v4570_v45 = vld [vmem:[#allocation52_spill] sm:$0xff] }
 0x288   :  { %v1149_v43 = vmul.f32 %v4571_v14, %v4570_v45  ;;  %v1148_v40 = vmul.f32 %v4573_v31, %v4572_v57  ;;  %v1489_v42 = vmul.f32 %v3790_v46, %v1428_v51  ;;  %v4574_v24 = vld [vmem:[#allocation32_spill] sm:$0xff]  ;;  %v4582_v45 = vld [vmem:[#allocation59_spill] sm:$0xff] }
 0x289   :  { %2231 = vmatprep.subr.mxu0 %v1375_v4  ;;  %v1538_v58 = vpop.permute.xlu0 %1537  ;;  %v4575_v4 = vld [vmem:[#allocation33_spill] sm:$0xff]  ;;  %v805_v14 = vsel %vm797_vm5, %v4582_v45, %v4015_v19 }
 0x28a   :  { %v1199_v21 = vpop.permute.xlu1 %1198  ;;  %v1541_v26 = vsel %vm1539_vm1, %v3982_v47, %v1538_v58  ;;  %v1555_v33 = vsel %vm1539_vm1, %v1538_v58, %v4568_v12  ;;  %2232 = vmatpush1.msra.mxu0 %v1374_v18  ;;  %v1490_v47 = vmul.f32 %v3794_v25, %v1442_v3  ;;  %v4579_v12 = vld [vmem:[#allocation90_spill] sm:$0xff] }
 0x28b   :  { %v1602_v35 = vmul.f32 %v3782_v49, %v1541_v26  ;;  %v1603_v6 = vmul.f32 %v4569_v50, %v1555_v33  ;;  %2233 = vmatprep.subr.mxu0 %v1262_v0  ;;  %v1216_v49 = vsel %vm1200_vm2, %v1199_v21, %v4574_v24  ;;  %v1202_v25 = vsel %vm1200_vm2, %v3976_v37, %v1199_v21  ;;  %v4577_v0 = vld [vmem:[#allocation55_spill] sm:$0xff]  ;;  %v4578_v26 = vld [vmem:[#allocation46_spill] sm:$0xff]  ;;  %v4581_v50 = vld [vmem:[#allocation89_spill] sm:$0xff] }
 0x28c   :  { %2234 = vmatpush1.msra.mxu0 %v1261_v7  ;;  %v1031_v58 = vsel %vm1023_vm4, %v4577_v0, %v4031_v8  ;;  %v1264_v51 = vmul.f32 %v3828_v60, %v1216_v49 }
 0x28d   :  { %2298 = vmatprep.subr.mxu1 %v1603_v6  ;;  %v1312_v11 = vpop.permute.xlu0 %1311  ;;  %2235 = vmatprep.subr.mxu0 %v1149_v43 }
 0x28e   :  { %v901_v18 = vpop.permute.xlu1 %900  ;;  %v1315_v16 = vsel %vm1313_vm3, %v4019_v59, %v1312_v11  ;;  %v1329_v54 = vsel %vm1313_vm3, %v1312_v11, %v4575_v4  ;;  %2236 = vmatpush1.msra.mxu0 %v1148_v40  ;;  %2299 = vmatpush1.msra.mxu1 %v1602_v35  ;;  %v918_v59 = vsel %vm910_vm7, %v4576_v63, %v4002_v15 }
 0x28f   :  { %v1376_v46 = vmul.f32 %v3812_v55, %v1315_v16  ;;  %v1377_v7 = vmul.f32 %v3816_v44, %v1329_v54  ;;  %2300 = vmatprep.subr.mxu1 %v1490_v47  ;;  %v1025_v55 = vsel %vm1023_vm4, %v4027_v1, %v4041_v32  ;;  %v1263_v44 = vmul.f32 %v3824_v34, %v1202_v25 }
 0x290   :  { %2301 = vmatpush1.msra.mxu1 %v1489_v42  ;;  %v916_v10 = vsel %vm910_vm7, %v4002_v15, %v901_v18  ;;  %v1151_v15 = vmul.f32 %v4579_v12, %v4578_v26  ;;  %v971_v33 = vmul.f32 %v3734_v41, %v918_v59  ;;  %v1084_v35 = vmul.f32 %v3763_v48, %v1031_v58  ;;  %v4583_v41 = vld [vmem:[#allocation63_spill] sm:$0xff] }
 0x291   :  { %2302 = vmatprep.subr.mxu1 %v1377_v7  ;;  %v1014_v37 = vpop.permute.xlu0 %1013  ;;  %v691_v48 = vsel %vm683_vm6, %v4583_v41, %v4048_v61 }
 0x292   :  { %v788_v3 = vpop.permute.xlu1 %787  ;;  %v1029_v21 = vsel %vm1023_vm4, %v4031_v8, %v1014_v37  ;;  %2303 = vmatpush1.msra.mxu1 %v1376_v46  ;;  %v1027_v32 = vsel %vm1023_vm4, %v1014_v37, %v4027_v1  ;;  %v4580_v8 = vld [vmem:[#allocation37_spill] sm:$0xff]  ;;  %v1087_v1 = vmul.f32 %v3772_v2, %v1025_v55  ;;  %v744_v47 = vmul.f32 %v3768_v28, %v691_v48 }
 0x293   :  { %v803_v60 = vsel %vm797_vm5, %v4015_v19, %v788_v3  ;;  %v1085_v34 = vmul.f32 %v3856_v62, %v1029_v21  ;;  %2304 = vmatprep.subr.mxu1 %v1264_v51  ;;  %v1150_v6 = vmul.f32 %v4581_v50, %v4580_v8  ;;  %v972_v62 = vmul.f32 %v3832_v22, %v916_v10 }
 0x294   :  { %2305 = vmatpush1.msra.mxu1 %v1263_v44  ;;  %v859_v57 = vmul.f32 %v3864_v30, %v803_v60  ;;  %v1086_v31 = vmul.f32 %v3872_v27, %v1027_v32  ;;  %v858_v30 = vmul.f32 %v3760_v9, %v805_v14 }
 0x295   :  { %2306 = vmatprep.subr.mxu1 %v1151_v15  ;;  %v672_v43 = vpop.permute.xlu0 %671  ;;  %2237 = vmatprep.subr.mxu0 %v1085_v34 }
 0x296   :  { %v905_v40 = vpop.permute.xlu1 %904  ;;  %2238 = vmatpush1.msra.mxu0 %v1084_v35  ;;  %2307 = vmatpush1.msra.mxu1 %v1150_v6  ;;  %v689_v19 = vsel %vm683_vm6, %v4048_v61, %v672_v43 }
 0x297   :  { %v912_v2 = vsel %vm910_vm7, %v905_v40, %v4061_v17  ;;  %v914_v22 = vsel %vm910_vm7, %v901_v18, %v905_v40  ;;  %2239 = vmatprep.subr.mxu0 %v972_v62  ;;  %2308 = vmatprep.subr.mxu1 %v1087_v1  ;;  %v745_v11 = vmul.f32 %v3881_v13, %v689_v19 }
 0x298   :  { %v973_v27 = vmul.f32 %v3838_v29, %v914_v22  ;;  %v974_v42 = vmul.f32 %v3776_v39, %v912_v2  ;;  %2240 = vmatpush1.msra.mxu0 %v971_v33  ;;  %2309 = vmatpush1.msra.mxu1 %v1086_v31 }
 0x299   :  { %v792_v17 = vpop.permute.xlu0 %791  ;;  %2241 = vmatprep.subr.mxu0 %v859_v57 }
 0x29a   :  { %v676_v24 = vpop.permute.xlu1 %675  ;;  %2310 = vmatprep.subr.mxu1 %v974_v42  ;;  %v799_v61 = vsel %vm797_vm5, %v792_v17, %v4055_v23  ;;  %v801_v9 = vsel %vm797_vm5, %v788_v3, %v792_v17  ;;  %2242 = vmatpush1.msra.mxu0 %v858_v30 }
 0x29b   :  { %v685_v39 = vsel %vm683_vm6, %v676_v24, %v4081_v5  ;;  %v687_v28 = vsel %vm683_vm6, %v672_v43, %v676_v24  ;;  %v860_v29 = vmul.f32 %v3868_v20, %v801_v9  ;;  %v861_v13 = vmul.f32 %v3780_v56, %v799_v61  ;;  %2311 = vmatpush1.msra.mxu1 %v973_v27 }
 0x29c   :  { %2243 = vmatprep.subr.mxu0 %v745_v11  ;;  %v747_v49 = vmul.f32 %v3820_v53, %v685_v39  ;;  %v746_v23 = vmul.f32 %v3885_v52, %v687_v28 }
 0x29d   :  { %2244 = vmatpush1.msra.mxu0 %v744_v47  ;;  %2312 = vmatprep.subr.mxu1 %v861_v13 }
 0x29e   :  { %2566 = vmatmul.mubr.msk.f32.vlgmr.msra.gmra.mxu0 %vm1693_vm8, %v3583_v38  ;;  %2313 = vmatpush1.msra.mxu1 %v860_v29 }
 0x29f   :  { %2314 = vmatprep.subr.mxu1 %v747_v49 }
 0x2a0   :  { %2315 = vmatpush1.msra.mxu1 %v746_v23 }
 0x2a1   :  { %2567 = vmatmul.mubr.msk.f32.vlgmr.msra.gmra.mxu1 %vm1693_vm8, %v3583_v38 }
 0x2f5   :  { %v4240_v20 = vpop.f32.mrf.mxu1 }
 0x2f7   :  { %v4243_v5 = vpop.f32.mrf.mxu1 }
 0x308   :  { %v4234_v36 = vpop.f32.mrf.mxu0 }
 0x30a   :  { %v4236_v56 = vpop.f32.mrf.mxu0 }
 0x30b   :  { %v1989_v53 = vadd.f32 %v4236_v56, %v4234_v36 }
 0x30d   :  { %v1990_v52 = vadd.f32 %v1989_v53, %v4240_v20 }
 0x30f   :  { %v1991_v18 = vadd.f32 %v1990_v52, %v4243_v5 }
 0x326   :  { %v4246_v16 = vpop.f32.mrf.mxu0 }
 0x327   :  { %v1992_v4 = vadd.f32 %v1991_v18, %v4246_v16 }
 0x328   :  { %v4249_v38 = vpop.f32.mrf.mxu0  ;;  %v4251_v54 = vpop.f32.mrf.mxu1 }
 0x329   :  { %v1993_v25 = vadd.f32 %v1992_v4, %v4249_v38 }
 0x32a   :  { %v4254_v46 = vpop.f32.mrf.mxu1 }
 0x32b   :  { %v1994_v7 = vadd.f32 %v1993_v25, %v4251_v54 }
 0x32d   :  { %v1995_v63 = vadd.f32 %v1994_v7, %v4254_v46 }
 0x32f   :  { %1996 = vadd.xlane.f32.xlu0 %v1995_v63 }
 0x33a   :  { %v4264_v51 = vpop.f32.mrf.mxu1 }
 0x33c   :  { %v4267_v55 = vpop.f32.mrf.mxu1 }
 0x343   :  { %v4258_v59 = vpop.f32.mrf.mxu0 }
 0x345   :  { %v4260_v0 = vpop.f32.mrf.mxu0 }
 0x346   :  { %v2364_v58 = vadd.f32 %v4260_v0, %v4258_v59 }
 0x348   :  { %v2365_v37 = vadd.f32 %v2364_v58, %v4264_v51 }
 0x34a   :  { %v2366_v44 = vadd.f32 %v2365_v37, %v4267_v55 }
 0x35e   :  { %v4270_v10 = vpop.f32.mrf.mxu0 }
 0x35f   :  { %v2367_v3 = vadd.f32 %v2366_v44, %v4270_v10 }
 0x360   :  { %v4273_v21 = vpop.f32.mrf.mxu0 }
 0x361   :  { %v2368_v60 = vadd.f32 %v2367_v3, %v4273_v21  ;;  %v4276_v32 = vpop.f32.mrf.mxu1 }
 0x363   :  { %v2369_v34 = vadd.f32 %v2368_v60, %v4276_v32  ;;  %v4279_v26 = vpop.f32.mrf.mxu1 }
 0x365   :  { %v2370_v12 = vadd.f32 %v2369_v34, %v4279_v26 }
 0x367   :  { %2371 = vadd.xlane.f32.xlu1 %v2370_v12 }
 0x3b8   :  { %v1997_v15 = vpop.xlane.xlu0 %1996 }
 0x3f0   :  { %v2372_v33 = vpop.xlane.xlu1 %2371 }
 0x3f1   :  { %v2373_v35 = vadd.f32 %v2372_v33, %v1997_v15 }
 0x3f3   :  { %v4282_v8 = vmul.f32 0.00048828125, %v2373_v35  ;;  %v2692_v35 = vmov 0  }
 0x3f4   :  { %2586 = vset.pattern.permute.xlu1 %v2692_v35  ;;  %2587 = vset.pattern.permute.xlu0 %v2692_v35 }
 0x3f5   :  { %v2383_v50 = vsub.f32 %v4234_v36, %v4282_v8  ;;  %v2384_v6 = vsub.f32 %v4236_v56, %v4282_v8  ;;  %v2385_v45 = vsub.f32 %v4240_v20, %v4282_v8  ;;  %v2386_v14 = vsub.f32 %v4243_v5, %v4282_v8 }
 0x3f6   :  { %v2387_v43 = vsub.f32 %v4246_v16, %v4282_v8  ;;  %v2417_v57 = vsub.f32 %v4258_v59, %v4282_v8  ;;  %v2418_v31 = vsub.f32 %v4260_v0, %v4282_v8  ;;  %v2419_v40 = vsub.f32 %v4264_v51, %v4282_v8 }
 0x3f7   :  { %v2391_v1 = vmul.f32 %v2383_v50, %v2383_v50  ;;  %v2392_v62 = vmul.f32 %v2384_v6, %v2384_v6  ;;  %v2393_v41 = vmul.f32 %v2385_v45, %v2385_v45  ;;  %v2388_v2 = vsub.f32 %v4249_v38, %v4282_v8 }
 0x3f8   :  { %v2394_v22 = vmul.f32 %v2386_v14, %v2386_v14  ;;  %v2420_v30 = vsub.f32 %v4267_v55, %v4282_v8  ;;  %v2425_v27 = vmul.f32 %v2417_v57, %v2417_v57  ;;  %v2426_v42 = vmul.f32 %v2418_v31, %v2418_v31 }
 0x3f9   :  { %v2399_v48 = vadd.f32 %v2392_v62, %v2391_v1  ;;  %v2389_v47 = vsub.f32 %v4251_v54, %v4282_v8  ;;  %v2395_v17 = vmul.f32 %v2387_v43, %v2387_v43  ;;  %v2421_v24 = vsub.f32 %v4270_v10, %v4282_v8  ;;  %v2444_v62 = vld [vmem:[%s4349_s4] sm:$0xff]  ;;  %s2693_s4 = smov [#allocation10]  }
 0x3fa   :  { %v2427_v61 = vmul.f32 %v2419_v40, %v2419_v40  ;;  %v2433_v9 = vadd.f32 %v2426_v42, %v2425_v27  ;;  %v2390_v39 = vsub.f32 %v4254_v46, %v4282_v8  ;;  %v2396_v28 = vmul.f32 %v2388_v2, %v2388_v2 }
 0x3fb   :  { %v2400_v19 = vadd.f32 %v2399_v48, %v2393_v41  ;;  %v2422_v13 = vsub.f32 %v4273_v21, %v4282_v8  ;;  %v2428_v49 = vmul.f32 %v2420_v30, %v2420_v30  ;;  %v2397_v53 = vmul.f32 %v2389_v47, %v2389_v47  ;;  %v2448_v48 = vld [vmem:[%s4350_s5] sm:$0xff]  ;;  %s2539_s5 = sshll.u32 %s2693_s4, 4  ;;  %s2540_s5 = int_to_ptr.vmem [resolvable:$true] %s2539_s5 }
 0x3fc   :  { %v2434_v23 = vadd.f32 %v2433_v9, %v2427_v61  ;;  %v2423_v18 = vsub.f32 %v4276_v32, %v4282_v8  ;;  %v2429_v4 = vmul.f32 %v2421_v24, %v2421_v24  ;;  %v2398_v7 = vmul.f32 %v2390_v39, %v2390_v39  ;;  %s2650_s28 = scalar_lea.vmem %s2540_s5, 2048  ;;  %p2655_p2 = scmp.lt.s32.totalorder %s2540_s5, %s2540_s5 }
 0x3fd   :  { %v2401_v11 = vadd.f32 %v2400_v19, %v2394_v22  ;;  %v2424_v58 = vsub.f32 %v4279_v26, %v4282_v8  ;;  %v2430_v37 = vmul.f32 %v2422_v13, %v2422_v13  ;;  %p2651_p1 = scmp.ne.s32.totalorder %s2540_s5, %s2650_s28  ;;  %p2656_p3 = scmp.lt.s32.totalorder %s2650_s28, %s2650_s28 }
 0x3fe   :  { %v2435_v25 = vadd.f32 %v2434_v23, %v2428_v49  ;;  %v2431_v60 = vmul.f32 %v2423_v18, %v2423_v18 }
 0x3ff   :  { %v2402_v29 = vadd.f32 %v2401_v11, %v2395_v17  ;;  %v2432_v12 = vmul.f32 %v2424_v58, %v2424_v58  ;;  %p2657_p4 = por %p2656_p3, %p2655_p2 }
 0x400   :  { %v2436_v44 = vadd.f32 %v2435_v25, %v2429_v4 }
 0x401   :  { %v2403_v52 = vadd.f32 %v2402_v29, %v2396_v28  ;;  %p2658_p5 = pnand %p2657_p4, %p2651_p1 }
 0x402   :  { %v2437_v34 = vadd.f32 %v2436_v44, %v2430_v37 }
 0x403   :  { %v2404_v63 = vadd.f32 %v2403_v52, %v2397_v53 }
 0x404   :  { %v2438_v15 = vadd.f32 %v2437_v34, %v2431_v60 }
 0x405   :  { %v2405_v3 = vadd.f32 %v2404_v63, %v2398_v7 }
 0x406   :  { %v2439_v33 = vadd.f32 %v2438_v15, %v2432_v12 }
 0x407   :  { %2406 = vadd.xlane.f32.xlu0 %v2405_v3 }
 0x40b   :  { %2440 = vadd.xlane.f32.xlu0 %v2439_v33 }
 0x490   :  { %v2407_v50 = vpop.xlane.xlu0 %2406 }
 0x494   :  { %v2441_v6 = vpop.xlane.xlu0 %2440 }
 0x495   :  { %v2442_v45 = vadd.f32 %v2441_v6, %v2407_v50 }
 0x497   :  { %v2443_v14 = vmul.f32 0.00048828125, %v2442_v45 }
 0x499   :  { %v2445_v1 = vadd.f32 1e-05, %v2443_v14 }
 0x49b   :  { %2588 = vrsqrt.f32 %v2445_v1 }
 0x4a8   :  { %v2589_v43 = vpop.eup %2588 }
 0x4a9   :  { %v2447_v41 = vmul.f32 %v2589_v43, %v2444_v62 }
 0x4ab   :  { %2453 = vperm.xlu1 %2586, %v2447_v41   ;;  %v2449_v57 = vmul.f32 %v2447_v41, %v4282_v8 }
 0x4ad   :  { %v2450_v31 = vsub.f32 %v2448_v48, %v2449_v57 }
 0x4af   :  { %2466 = vperm.xlu0 %2587, %v2450_v31  }
 0x526   :  { %v2454_v40 = vpop.permute.xlu1 %2453 }
 0x527   :  { %v2456_v2 = vmul.f32 %v2454_v40, %v4234_v36  ;;  %v2457_v22 = vmul.f32 %v2454_v40, %v4236_v56  ;;  %v2458_v19 = vmul.f32 %v2454_v40, %v4240_v20  ;;  %v2459_v30 = vmul.f32 %v2454_v40, %v4243_v5 }
 0x528   :  { %v2460_v27 = vmul.f32 %v2454_v40, %v4246_v16  ;;  %v2461_v42 = vmul.f32 %v2454_v40, %v4249_v38  ;;  %v2462_v47 = vmul.f32 %v2454_v40, %v4251_v54  ;;  %v2463_v17 = vmul.f32 %v2454_v40, %v4254_v46 }
 0x529   :  { %v2501_v8 = vmul.f32 %v2454_v40, %v4258_v59  ;;  %v2502_v11 = vmul.f32 %v2454_v40, %v4260_v0  ;;  %v2503_v36 = vmul.f32 %v2454_v40, %v4264_v51  ;;  %v2504_v56 = vmul.f32 %v2454_v40, %v4267_v55 }
 0x52a   :  { %v2505_v20 = vmul.f32 %v2454_v40, %v4270_v10  ;;  %v2506_v5 = vmul.f32 %v2454_v40, %v4273_v21  ;;  %v2507_v16 = vmul.f32 %v2454_v40, %v4276_v32  ;;  %v2508_v38 = vmul.f32 %v2454_v40, %v4279_v26  ;;  %v2467_v24 = vpop.permute.xlu0 %2466 }
 0x52b   :  { %v2469_v54 = vadd.f32 %v2467_v24, %v2456_v2  ;;  %v2470_v61 = vadd.f32 %v2467_v24, %v2457_v22  ;;  %v2471_v46 = vadd.f32 %v2467_v24, %v2458_v19  ;;  %v2472_v9 = vadd.f32 %v2467_v24, %v2459_v30 }
 0x52c   :  { %v2473_v59 = vadd.f32 %v2467_v24, %v2460_v27  ;;  %v2474_v39 = vadd.f32 %v2467_v24, %v2461_v42  ;;  %v2475_v0 = vadd.f32 %v2467_v24, %v2462_v47  ;;  %v2476_v28 = vadd.f32 %v2467_v24, %v2463_v17 }
 0x52d   :  { %v2477_v51 = vmax.f32 %v2469_v54, 0.0  ;;  %v2478_v29 = vmax.f32 %v2470_v61, 0.0  ;;  %v2479_v55 = vmax.f32 %v2471_v46, 0.0  ;;  %v2480_v13 = vmax.f32 %v2472_v9, 0.0 }
 0x52e   :  { %v2481_v10 = vmax.f32 %v2473_v59, 0.0  ;;  %v2482_v49 = vmax.f32 %v2474_v39, 0.0  ;;  %v2483_v21 = vmax.f32 %v2475_v0, 0.0  ;;  %v2484_v23 = vmax.f32 %v2476_v28, 0.0 }
 0x52f   :  { %2485 = vst [vmem:[#allocation10] sm:$0xff] %v2477_v51  ;;  %2486 = vst [vmem:[#allocation10 + $0x8] sm:$0xff] %v2478_v29  ;;  %v2509_v32 = vadd.f32 %v2501_v8, %v2467_v24  ;;  %v2510_v26 = vadd.f32 %v2502_v11, %v2467_v24  ;;  %v2511_v53 = vadd.f32 %v2503_v36, %v2467_v24 }
 0x530   :  { %2487 = vst [vmem:[#allocation10 + $0x10] sm:$0xff] %v2479_v55  ;;  %2488 = vst [vmem:[#allocation10 + $0x18] sm:$0xff] %v2480_v13  ;;  %v2512_v52 = vadd.f32 %v2504_v56, %v2467_v24  ;;  %v2513_v18 = vadd.f32 %v2505_v20, %v2467_v24  ;;  %v2514_v4 = vadd.f32 %v2506_v5, %v2467_v24 }
 0x531   :  { %2489 = vst [vmem:[#allocation10 + $0x20] sm:$0xff] %v2481_v10  ;;  %2490 = vst [vmem:[#allocation10 + $0x28] sm:$0xff] %v2482_v49  ;;  %v2515_v25 = vadd.f32 %v2507_v16, %v2467_v24  ;;  %v2516_v7 = vadd.f32 %v2508_v38, %v2467_v24  ;;  %v2517_v63 = vmax.f32 %v2509_v32, 0.0  ;;  %v2518_v58 = vmax.f32 %v2510_v26, 0.0 }
 0x532   :  { %2491 = vst [vmem:[#allocation10 + $0x30] sm:$0xff] %v2483_v21  ;;  %2492 = vst [vmem:[#allocation10 + $0x38] sm:$0xff] %v2484_v23  ;;  %v2519_v37 = vmax.f32 %v2511_v53, 0.0  ;;  %v2520_v44 = vmax.f32 %v2512_v52, 0.0  ;;  %v2521_v3 = vmax.f32 %v2513_v18, 0.0  ;;  %v2522_v60 = vmax.f32 %v2514_v4, 0.0 }
 0x533   :  { %v2523_v34 = vmax.f32 %v2515_v25, 0.0  ;;  %v2524_v12 = vmax.f32 %v2516_v7, 0.0  ;;  %2526 = vst [vmem:[#allocation10 + $0x40] sm:$0xff] %v2517_v63  ;;  %2527 = vst [vmem:[#allocation10 + $0x48] sm:$0xff] %v2518_v58 }
 0x534   :  { %2528 = vst [vmem:[#allocation10 + $0x50] sm:$0xff] %v2519_v37  ;;  %2529 = vst [vmem:[#allocation10 + $0x58] sm:$0xff] %v2520_v44 }
 0x535   :  { %2530 = vst [vmem:[#allocation10 + $0x60] sm:$0xff] %v2521_v3  ;;  %2531 = vst [vmem:[#allocation10 + $0x68] sm:$0xff] %v2522_v60 }
 0x536   :  { %2532 = vst [vmem:[#allocation10 + $0x70] sm:$0xff] %v2523_v34  ;;  %2533 = vst [vmem:[#allocation10 + $0x78] sm:$0xff] %v2524_v12 }
 0x537   :  { %2661 = shalt.err (!%p2658_p5)
}
 0x538   :  { %2545 = dma.vmem_to_hbm [thread:$0]  %s2540_s5, 2048, %s4351_s6, [#allocation6], %s2677_s24, %s2677_s24, %s2678_s25  }
 0x539   :  { %2674 = dma.done.wait [#allocation6], 2048  }
 0x53a   :  { %2675 = vsyncadd [#allocation6], 4294965248 }
 0x53b   :  { %2549 = vsyncpa [#allocation5], 1 }
 0x53c   :  { %2550 = vsyncpa [#allocation8], 1 }
 0x53d   :  { %2551 = vsyncpa [#allocation6], 1 }

</bundles_post_ra>
